<compile_context>
chip_gen: v6e
topology: v6e:2x2x1
jax: 0.10.0
libtpu: 0.0.40
codegen_flags: <defaults>
</compile_context>

<pallas_src>
import jax
import jax.numpy as jnp
from jax.experimental import pallas as pl
from jax.experimental.pallas import tpu as pltpu

OUT_CHANNELS = 2560                       # efficientnet-b7 final feature channels
N_ROOT, N_VOWEL, N_CONST = 168, 11, 7
N_HEADS = N_ROOT + N_VOWEL + N_CONST      # 186
N_HEADS_PAD = 256                         # lane-dense (multiple of 128) head width

# Spatial rows per tile.  At 1024: ~0.5 MiB double-buffered patch tiles +
# ~1.3 MiB resident stem weights + ~10-15 MiB elementwise intermediates,
# comfortably inside a 48 MiB scoped VMEM limit on v5e/v6e/v7x.
_MAX_TILE_HW = 1024


def _round_up(x, m):
    return ((x + m - 1) // m) * m


def _swish_dtype():
    """bf16 swish on chips with bf16 VPU/EUP (v6e/v7x); f32 on v5e and older."""
    try:
        kind = jax.devices()[0].device_kind.lower()
    except Exception:
        return jnp.float32
    if any(v in kind for v in ("v2", "v3", "v4", "v5")):
        return jnp.float32
    return jnp.bfloat16


# ----------------------------------------------------------------------------
# Kernel 1: stem matmul + swish + global avg-pool partial sums
# ----------------------------------------------------------------------------
def _fused_stem_pool_call(patches, w_stem, b_stem, *, tile_hw, swish_dtype):
    """Returns (2, B, 1, C) f32 per-channel spatial partial sums."""
    B, hw_pad, kpad = patches.shape
    C = w_stem.shape[1]
    n_t2 = hw_pad // (2 * tile_hw)        # spatial tiles per half

    def kernel(p_ref, ws_ref, bs_ref, psum_ref, acc_ref):
        t = pl.program_id(2)

        @pl.when(t == 0)
        def _init():
            acc_ref[...] = jnp.zeros_like(acc_ref)

        # Conv stem as im2col matmul (+ bias), then swish (SiLU).  The swish
        # runs in bf16 where the VPU/EUP support it; pool accumulation is f32.
        y = jnp.dot(p_ref[...], ws_ref[...], preferred_element_type=jnp.float32)
        y = (y + bs_ref[...]).astype(swish_dtype)
        y = y * jax.nn.sigmoid(y)
        # Zero-padded spatial rows are NOT masked here: each contributes the
        # constant swish(b_stem), which the wrapper subtracts once at pooling
        # finalization (saves a full (tile, C) select pass on every tile).
        acc_ref[...] += jnp.sum(y, axis=0, keepdims=True, dtype=jnp.float32)

        @pl.when(t == pl.num_programs(2) - 1)
        def _done():
            psum_ref[...] = acc_ref[...]

    flops = 2 * B * hw_pad * kpad * C
    transcendentals = B * hw_pad * C
    bytes_accessed = (patches.size * patches.dtype.itemsize
                      + w_stem.size * w_stem.dtype.itemsize
                      + b_stem.size * 4
                      + 2 * B * C * 4)

    return pl.pallas_call(
        kernel,
        out_shape=jax.ShapeDtypeStruct((2, B, 1, C), jnp.float32),
        grid_spec=pltpu.PrefetchScalarGridSpec(
            num_scalar_prefetch=0,
            # (batch, spatial-half, spatial-tile): two parallel axes keep both
            # TensorCores busy even at B == 1; last axis is the pool reduction.
            grid=(B, 2, n_t2),
            in_specs=[
                # (B, HW_pad, Kpad) bf16 patches: pipelined over batch + space.
                pl.BlockSpec((None, tile_hw, kpad),
                             lambda b, c, t: (b, c * n_t2 + t, 0)),
                # Stem weight / bias: resident across the whole grid (constant
                # index_map); their double buffers are < 1.5 MiB total.
                pl.BlockSpec((kpad, C), lambda b, c, t: (0, 0)),
                pl.BlockSpec((1, C), lambda b, c, t: (0, 0)),
            ],
            out_specs=pl.BlockSpec((None, None, 1, C),
                                   lambda b, c, t: (c, b, 0, 0)),
            scratch_shapes=[pltpu.VMEM((1, C), jnp.float32)],
        ),
        compiler_params=pltpu.CompilerParams(
            dimension_semantics=("parallel", "parallel", "arbitrary"),
            vmem_limit_bytes=48 * 1024 * 1024),
        cost_estimate=pl.CostEstimate(
            flops=flops, transcendentals=transcendentals,
            bytes_accessed=bytes_accessed),
    )(patches, w_stem, b_stem)


# ----------------------------------------------------------------------------
# Kernel 2: combine partial sums -> avg-pool -> fused classification heads
# ----------------------------------------------------------------------------
def _pool_heads_call(psum, corr, w_heads, b_heads, *, inv_hw):
    _, B, C = psum.shape
    NH = w_heads.shape[1]

    def kernel(ps_ref, corr_ref, wh_ref, bh_ref, out_ref):
        # AdaptiveAvgPool2d(1) + view(bs, -1); Dropout(p=0.2) is the identity
        # at inference.  Head projection stays in f32 (tiny, bit-close).
        pooled = (ps_ref[0] + ps_ref[1] - corr_ref[...]) * inv_hw
        out_ref[...] = (jnp.dot(pooled, wh_ref[...],
                                preferred_element_type=jnp.float32)
                        + bh_ref[...])

    return pl.pallas_call(
        kernel,
        out_shape=jax.ShapeDtypeStruct((B, NH), jnp.float32),
    )(psum, corr, w_heads, b_heads)


# ----------------------------------------------------------------------------
# Glue (plain JAX): NCHW->NHWC, im2col for the 3x3 stride-2 "SAME" conv stem
# ----------------------------------------------------------------------------
def _im2col_3x3_s2_same(x_nhwc):
    """TF/torch-style 'SAME' 3x3 stride-2 im2col (asymmetric pad for even H/W)."""
    B, H, W, Cin = x_nhwc.shape
    Ho, Wo = -(-H // 2), -(-W // 2)
    pad_h = max((Ho - 1) * 2 + 3 - H, 0)
    pad_w = max((Wo - 1) * 2 + 3 - W, 0)
    xp = jnp.pad(x_nhwc, ((0, 0),
                          (pad_h // 2, pad_h - pad_h // 2),
                          (pad_w // 2, pad_w - pad_w // 2),
                          (0, 0)))
    pieces = []
    for dh in range(3):                    # channel order: (kh, kw, cin)
        for dw in range(3):
            pieces.append(xp[:, dh:dh + 2 * (Ho - 1) + 1:2,
                             dw:dw + 2 * (Wo - 1) + 1:2, :])
    patches = jnp.concatenate(pieces, axis=-1)          # (B, Ho, Wo, 9*Cin)
    return patches.reshape(B, Ho * Wo, 9 * Cin), Ho, Wo


def effnet_forward(x_nchw, params):
    B = x_nchw.shape[0]
    x = jnp.transpose(x_nchw, (0, 2, 3, 1))             # NCHW -> NHWC
    patches, Ho, Wo = _im2col_3x3_s2_same(x)             # (B, HW, K) f32
    hw, K = patches.shape[1], patches.shape[2]

    # Lane-dense contraction (multiple of 128) and a bf16-sublane-friendly
    # spatial tile (multiple of 16); HW is padded to 2 * tile_hw * n_t2.
    kpad = _round_up(max(K, 128), 128)
    tile_hw = min(_MAX_TILE_HW, _round_up(-(-hw // 2), 16))
    hw_pad = _round_up(hw, 2 * tile_hw)
    n_pad = hw_pad - hw

    patches = jnp.pad(patches, ((0, 0), (0, n_pad), (0, kpad - K)))
    patches = patches.astype(jnp.bfloat16)

    w_stem = jnp.pad(params["w_stem"], ((0, kpad - K), (0, 0))).astype(jnp.bfloat16)
    b_stem = params["b_stem"].astype(jnp.float32).reshape(1, OUT_CHANNELS)

    swish_dtype = _swish_dtype()
    psum = _fused_stem_pool_call(patches, w_stem, b_stem,
                                 tile_hw=tile_hw, swish_dtype=swish_dtype)
    psum = psum.reshape(2, B, OUT_CHANNELS)

    # Each zero-padded spatial row contributed exactly swish(b_stem) to the
    # sums (same dtype path as the kernel); subtract that constant once.
    sb = b_stem.astype(swish_dtype)
    corr = float(n_pad) * (sb * jax.nn.sigmoid(sb)).astype(jnp.float32)

    # Fuse the three narrow heads into one lane-dense (2560, 256) f32 matmul;
    # the 168/11/7 logits are sliced back out below.
    w_heads = jnp.concatenate(
        [params["w_root"], params["w_vowel"], params["w_const"]], axis=1)
    w_heads = jnp.pad(w_heads, ((0, 0), (0, N_HEADS_PAD - N_HEADS)))
    w_heads = w_heads.astype(jnp.float32)
    b_heads = jnp.concatenate(
        [params["b_root"], params["b_vowel"], params["b_const"]], axis=1)
    b_heads = jnp.pad(b_heads, ((0, 0), (0, N_HEADS_PAD - N_HEADS)))
    b_heads = b_heads.astype(jnp.float32)

    logits = _pool_heads_call(psum, corr, w_heads, b_heads,
                              inv_hw=1.0 / float(hw))
    out_root = logits[:, :N_ROOT]
    out_vowel = logits[:, N_ROOT:N_ROOT + N_VOWEL]
    out_const = logits[:, N_ROOT + N_VOWEL:N_HEADS]
    return out_root, out_vowel, out_const


# ----------------------------------------------------------------------------
# Pure-JAX f32 reference (same stand-in architecture) for a correctness check
# ----------------------------------------------------------------------------
def _effnet_reference(x_nchw, params):
    x = jnp.transpose(x_nchw, (0, 2, 3, 1))
    patches, _, _ = _im2col_3x3_s2_same(x)
    y = patches @ params["w_stem"] + params["b_stem"]
    y = y * jax.nn.sigmoid(y)
    pooled = jnp.mean(y, axis=1)
    return (pooled @ params["w_root"] + params["b_root"],
            pooled @ params["w_vowel"] + params["b_vowel"],
            pooled @ params["w_const"] + params["b_const"])


# ----------------------------------------------------------------------------
if __name__ == "__main__":
    key = jax.random.PRNGKey(0)
    B, Cin, H, W = 2, 3, 16, 16
    k0, k1, k2, k3, k4 = jax.random.split(key, 5)

    x = jax.random.normal(k0, (B, Cin, H, W), jnp.float32)

    params = {
        "w_stem":  jax.random.normal(k1, (9 * Cin, OUT_CHANNELS), jnp.float32) * 0.05,
        "b_stem":  jnp.zeros((1, OUT_CHANNELS), jnp.float32),
        "w_root":  jax.random.normal(k2, (OUT_CHANNELS, N_ROOT), jnp.float32) * 0.02,
        "b_root":  jnp.zeros((1, N_ROOT), jnp.float32),
        "w_vowel": jax.random.normal(k3, (OUT_CHANNELS, N_VOWEL), jnp.float32) * 0.02,
        "b_vowel": jnp.zeros((1, N_VOWEL), jnp.float32),
        "w_const": jax.random.normal(k4, (OUT_CHANNELS, N_CONST), jnp.float32) * 0.02,
        "b_const": jnp.zeros((1, N_CONST), jnp.float32),
    }

    out_root, out_vowel, out_const = jax.jit(effnet_forward)(x, params)
    jax.block_until_ready((out_root, out_vowel, out_const))

    assert out_root.shape == (B, N_ROOT)
    assert out_vowel.shape == (B, N_VOWEL)
    assert out_const.shape == (B, N_CONST)

    ref_root, ref_vowel, ref_const = _effnet_reference(x, params)
    for got, want in ((out_root, ref_root), (out_vowel, ref_vowel),
                      (out_const, ref_const)):
        err = float(jnp.max(jnp.abs(got - want)))
        assert err < 5e-2, f"mismatch vs f32 reference: {err}"

    print("KERNEL_OK")
</pallas_src>

<mosaic_0001>
module attributes {stable_mosaic.version = 11 : i64} {
  func.func @kernel(%arg0: i32, %arg1: i32, %arg2: i32, %arg3: memref<1x32x128xbf16, #tpu.memory_space<vmem>>, %arg4: memref<128x2560xbf16, #tpu.memory_space<vmem>>, %arg5: memref<1x2560xf32, #tpu.memory_space<vmem>>, %arg6: memref<1x1x1x2560xf32, #tpu.memory_space<vmem>>, %arg7: memref<1x2560xf32, #tpu.memory_space<vmem>>) attributes {dimension_semantics = [#tpu.dimension_semantics<parallel>, #tpu.dimension_semantics<parallel>, #tpu.dimension_semantics<arbitrary>], iteration_bounds = array<i64: 2, 2, 1>, scalar_prefetch = 0 : i64, scratch_operands = 1 : i64, tpu.core_type = #tpu.core_type<tc>, window_params = [{transform_indices = @transform_0, window_bounds = array<i64: 1, 32, 128>}, {pipeline_mode = #tpu.pipeline_mode<synchronous>, transform_indices = @transform_1, window_bounds = array<i64: 128, 2560>}, {pipeline_mode = #tpu.pipeline_mode<synchronous>, transform_indices = @transform_2, window_bounds = array<i64: 1, 2560>}, {transform_indices = @transform_3, window_bounds = array<i64: 1, 1, 1, 2560>}]} {
    %c0_i32 = arith.constant 0 : i32
    %0 = arith.cmpi eq, %arg2, %c0_i32 : i32
    %1 = arith.extui %0 : i1 to i32
    %c0_i32_0 = arith.constant 0 : i32
    %2 = arith.cmpi ne, %1, %c0_i32_0 : i32
    scf.if %2 {
      %cst_15 = arith.constant 0.000000e+00 : f32
      %26 = vector.broadcast %cst_15 : f32 to vector<1x2560xf32>
      %c0_16 = arith.constant 0 : index
      %c0_17 = arith.constant 0 : index
      %27 = vector.load %arg7[%c0_16, %c0_17] : memref<1x2560xf32, #tpu.memory_space<vmem>>, vector<1x2560xf32>
      tpu.vector_store %arg7[%c0_16, %c0_17], %26 {strides = array<i32>} : memref<1x2560xf32, #tpu.memory_space<vmem>>, vector<1x2560xf32>,
    } else {
    }
    %c0 = arith.constant 0 : index
    %c0_1 = arith.constant 0 : index
    %c0_2 = arith.constant 0 : index
    %3 = vector.load %arg3[%c0, %c0_1, %c0_2] : memref<1x32x128xbf16, #tpu.memory_space<vmem>>, vector<1x32x128xbf16>
    %4 = vector.shape_cast %3 : vector<1x32x128xbf16> to vector<32x128xbf16>
    %c0_3 = arith.constant 0 : index
    %c0_4 = arith.constant 0 : index
    %5 = vector.load %arg4[%c0_3, %c0_4] : memref<128x2560xbf16, #tpu.memory_space<vmem>>, vector<128x2560xbf16>
    %cst = arith.constant dense<0.000000e+00> : vector<32x2560xf32>
    %6 = tpu.matmul %4, %5, %cst {dimension_numbers = #tpu.dot_dimension_numbers<[1], [0], [0], [1], [0, 0, 1, 1], [], []>} : vector<32x128xbf16>, vector<128x2560xbf16>, vector<32x2560xf32> -> vector<32x2560xf32>
    %c0_5 = arith.constant 0 : index
    %c0_6 = arith.constant 0 : index
    %7 = vector.load %arg5[%c0_5, %c0_6] : memref<1x2560xf32, #tpu.memory_space<vmem>>, vector<1x2560xf32>
    %8 = vector.broadcast %7 : vector<1x2560xf32> to vector<32x2560xf32>
    %9 = arith.addf %6, %8 : vector<32x2560xf32>
    %10 = arith.truncf %9 : vector<32x2560xf32> to vector<32x2560xbf16>
    %11 = arith.negf %10 : vector<32x2560xbf16>
    %12 = math.exp %11 : vector<32x2560xbf16>
    %cst_7 = arith.constant 1.000000e+00 : bf16
    %13 = vector.broadcast %cst_7 : bf16 to vector<32x2560xbf16>
    %14 = arith.addf %13, %12 : vector<32x2560xbf16>
    %15 = arith.divf %13, %14 : vector<32x2560xbf16>
    %16 = arith.mulf %10, %15 : vector<32x2560xbf16>
    %c0_8 = arith.constant 0 : index
    %c0_9 = arith.constant 0 : index
    %17 = vector.load %arg7[%c0_8, %c0_9] : memref<1x2560xf32, #tpu.memory_space<vmem>>, vector<1x2560xf32>
    %18 = arith.extf %16 : vector<32x2560xbf16> to vector<32x2560xf32>
    %cst_10 = arith.constant dense<0.000000e+00> : vector<2560xf32>
    %19 = vector.multi_reduction <add>, %18, %cst_10 [0] : vector<32x2560xf32> to vector<2560xf32>
    %20 = vector.shape_cast %19 : vector<2560xf32> to vector<1x2560xf32>
    %21 = arith.addf %17, %20 : vector<1x2560xf32>
    %c0_11 = arith.constant 0 : index
    %c0_12 = arith.constant 0 : index
    %22 = vector.load %arg7[%c0_11, %c0_12] : memref<1x2560xf32, #tpu.memory_space<vmem>>, vector<1x2560xf32>
    tpu.vector_store %arg7[%c0_11, %c0_12], %21 {strides = array<i32>} : memref<1x2560xf32, #tpu.memory_space<vmem>>, vector<1x2560xf32>,
    %c0_i32_13 = arith.constant 0 : i32
    %23 = arith.cmpi eq, %arg2, %c0_i32_13 : i32
    %24 = arith.extui %23 : i1 to i32
    %c0_i32_14 = arith.constant 0 : i32
    %25 = arith.cmpi ne, %24, %c0_i32_14 : i32
    scf.if %25 {
      %c0_15 = arith.constant 0 : index
      %c0_16 = arith.constant 0 : index
      %26 = vector.load %arg7[%c0_15, %c0_16] : memref<1x2560xf32, #tpu.memory_space<vmem>>, vector<1x2560xf32>
      %c0_17 = arith.constant 0 : index
      %c0_18 = arith.constant 0 : index
      %c0_19 = arith.constant 0 : index
      %c0_20 = arith.constant 0 : index
      %27 = vector.load %arg6[%c0_17, %c0_18, %c0_19, %c0_20] : memref<1x1x1x2560xf32, #tpu.memory_space<vmem>>, vector<1x1x1x2560xf32>
      %28 = vector.shape_cast %27 : vector<1x1x1x2560xf32> to vector<1x2560xf32>
      %29 = vector.shape_cast %26 : vector<1x2560xf32> to vector<1x1x1x2560xf32>
      tpu.vector_store %arg6[%c0_17, %c0_18, %c0_19, %c0_20], %29 {strides = array<i32>} : memref<1x1x1x2560xf32, #tpu.memory_space<vmem>>, vector<1x1x1x2560xf32>,
    } else {
    }
    return
  }
  func.func @transform_0(%arg0: i32, %arg1: i32, %arg2: i32) -> (i32, i32, i32) {
    %c1_i32 = arith.constant 1 : i32
    %0 = arith.muli %arg1, %c1_i32 : i32
    %1 = arith.addi %0, %arg2 : i32
    %c0_i32 = arith.constant 0 : i32
    %c0_i32_0 = arith.constant 0 : i32
    return %arg0, %1, %c0_i32 : i32, i32, i32
  }
  func.func @transform_1(%arg0: i32, %arg1: i32, %arg2: i32) -> (i32, i32) {
    %c0_i32 = arith.constant 0 : i32
    %c0_i32_0 = arith.constant 0 : i32
    %c0_i32_1 = arith.constant 0 : i32
    return %c0_i32, %c0_i32_0 : i32, i32
  }
  func.func @transform_2(%arg0: i32, %arg1: i32, %arg2: i32) -> (i32, i32) {
    %c0_i32 = arith.constant 0 : i32
    %c0_i32_0 = arith.constant 0 : i32
    %c0_i32_1 = arith.constant 0 : i32
    return %c0_i32, %c0_i32_0 : i32, i32
  }
  func.func @transform_3(%arg0: i32, %arg1: i32, %arg2: i32) -> (i32, i32, i32, i32) {
    %c0_i32 = arith.constant 0 : i32
    %c0_i32_0 = arith.constant 0 : i32
    %c0_i32_1 = arith.constant 0 : i32
    return %arg1, %arg0, %c0_i32, %c0_i32_0 : i32, i32, i32, i32
  }
}

module attributes {stable_mosaic.version = 11 : i64} {
  func.func @kernel(%arg0: memref<2x2x2560xf32, #tpu.memory_space<vmem>>, %arg1: memref<1x2560xf32, #tpu.memory_space<vmem>>, %arg2: memref<2560x256xf32, #tpu.memory_space<vmem>>, %arg3: memref<1x256xf32, #tpu.memory_space<vmem>>, %arg4: memref<2x256xf32, #tpu.memory_space<vmem>>) attributes {dimension_semantics = [], scalar_prefetch = 0 : i64, scratch_operands = 0 : i64, tpu.core_type = #tpu.core_type<tc>} {
    %c0 = arith.constant 0 : index
    %c0_0 = arith.constant 0 : index
    %c0_1 = arith.constant 0 : index
    %0 = vector.load %arg0[%c0, %c0_0, %c0_1] : memref<2x2x2560xf32, #tpu.memory_space<vmem>>, vector<1x2x2560xf32>
    %1 = vector.shape_cast %0 : vector<1x2x2560xf32> to vector<2x2560xf32>
    %c1 = arith.constant 1 : index
    %c0_2 = arith.constant 0 : index
    %c0_3 = arith.constant 0 : index
    %2 = vector.load %arg0[%c1, %c0_2, %c0_3] : memref<2x2x2560xf32, #tpu.memory_space<vmem>>, vector<1x2x2560xf32>
    %3 = vector.shape_cast %2 : vector<1x2x2560xf32> to vector<2x2560xf32>
    %4 = arith.addf %1, %3 : vector<2x2560xf32>
    %c0_4 = arith.constant 0 : index
    %c0_5 = arith.constant 0 : index
    %5 = vector.load %arg1[%c0_4, %c0_5] : memref<1x2560xf32, #tpu.memory_space<vmem>>, vector<1x2560xf32>
    %6 = vector.broadcast %5 : vector<1x2560xf32> to vector<2x2560xf32>
    %7 = arith.subf %4, %6 : vector<2x2560xf32>
    %cst = arith.constant 1.562500e-02 : f32
    %8 = vector.broadcast %cst : f32 to vector<2x2560xf32>
    %9 = arith.mulf %7, %8 : vector<2x2560xf32>
    %c0_6 = arith.constant 0 : index
    %c0_7 = arith.constant 0 : index
    %10 = vector.load %arg2[%c0_6, %c0_7] : memref<2560x256xf32, #tpu.memory_space<vmem>>, vector<2560x256xf32>
    %cst_8 = arith.constant dense<0.000000e+00> : vector<2x256xf32>
    %11 = tpu.matmul %9, %10, %cst_8 {dimension_numbers = #tpu.dot_dimension_numbers<[1], [0], [0], [1], [0, 0, 1, 1], [], []>} : vector<2x2560xf32>, vector<2560x256xf32>, vector<2x256xf32> -> vector<2x256xf32>
    %c0_9 = arith.constant 0 : index
    %c0_10 = arith.constant 0 : index
    %12 = vector.load %arg3[%c0_9, %c0_10] : memref<1x256xf32, #tpu.memory_space<vmem>>, vector<1x256xf32>
    %13 = vector.broadcast %12 : vector<1x256xf32> to vector<2x256xf32>
    %14 = arith.addf %11, %13 : vector<2x256xf32>
    %c0_11 = arith.constant 0 : index
    %c0_12 = arith.constant 0 : index
    %15 = vector.load %arg4[%c0_11, %c0_12] : memref<2x256xf32, #tpu.memory_space<vmem>>, vector<2x256xf32>
    tpu.vector_store %arg4[%c0_11, %c0_12], %14 {strides = array<i32>} : memref<2x256xf32, #tpu.memory_space<vmem>>, vector<2x256xf32>,
    return
  }
}

</mosaic_0001>

<bundles_post_ra>
// kernel: effnet_forward.2
= control target key start
LH: loop header
LB: loop body
LE: loop exit
PB: predicated region body
PF: predicated region fallthrough
CT: control target
= control target key end

     0   :  { %s3444_s12 = smov 0   ;;  %s3446_s13 = smov 0   ;;  %s4459_s0 = inlined_call_operand.vmem [shape: bf16[2,64,128], index: 0, kind: input, shape index: {}]   ;;  %s4460_s1 = inlined_call_operand.vmem [shape: bf16[128,2560], index: 1, kind: input, shape index: {}]   ;;  %s4461_s2 = inlined_call_operand.vmem [shape: f32[1,2560], index: 2, kind: input, shape index: {}]   ;;  %s4462_s3 = inlined_call_operand.vmem [shape: f32[2,2,1,2560], index: 3, kind: output, shape index: {}]  }
   0x1   :  { %s3448_s14 = smov 0   ;;  %s3450_s15 = smov 0  }
   0x2   :  { %s3452_s16 = smov 0  }
   0x3 LB: > { %s28_s17 = sadd.s32 1, %s3411_s14  ;;  %s32_s18 = sadd.s32 1, %s3415_s15  ;;  %s3419_s16 = sphi %s3452_s16, %s13_s16   ;;  %s3415_s15 = sphi %s3450_s15, %s4468_s15   ;;  %s3411_s14 = sphi %s3448_s14, %s4467_s14   ;;  %s3407_s13 = sphi %s3446_s13, %s4466_s13   ;;  %s3403_s12 = sphi %s3444_s12, %s4465_s12  }
   0x4   : > { %p30_p0 = scmp.ge.s32.totalorder %s28_s17, 2  ;;  %p2726_p1 = scmp.ge.s32.totalorder %s3419_s16, 1 }
   0x5   : > { %p169_p2 = scmp.lt.s32.totalorder %s3419_s16, 5 }
   0x6   : > { %s4470_s17 = smov (%p30_p0, %s28_s17), 0  ;;  %s4472_s18 = smov (!%p30_p0, %s32_s18), %s3415_s15 }
   0x7   : > { %p170_p3 = pnand %p2726_p1, %p169_p2  ;;  %p34_p4 = scmp.ge.s32.totalorder %s4472_s18, 2 }
   0x8   : > { %s2727_s23 = sshll.u32 (!%p170_p3), %s3403_s12, 2  ;;  %p203_p5 = scmp.lt.s32.totalorder (!%p170_p3), %s3407_s13, 1 }
   0x9   : > { %s4474_s18 = smov (%p34_p4, %s4472_s18), 0  ;;  %173 = sbr.rel (%p170_p3) target bundleno = 479 (0x1df), region = 32 }
   0xa   : > { %p205_p6 = scmp.lt.s32.totalorder (!%p170_p3), %s2727_s23, 7  ;;  %p213_p7 = scmp.lt.s32.totalorder (!%p170_p3), %s3403_s12, 1 }
   0xe   : > { %v2979_v0 = vld [vmem:[%s4460_s1 + $0x464] ss:$80 sps:$4 sm:$0xff]   ;;  %v2981_v1 = vld [vmem:[%s4460_s1 + $0x46c] ss:$80 sps:$4 sm:$0xff]   ;;  %v3421_v2 = vmov 0   ;;  %s4476_s13 = smov (!%p203_p5, %s3407_s13), 1 }
   0xf   : > { %1348 = vmatprep.mubr.bf16.mxu0 %v3421_v2  ;;  %1401 = vmatprep.mubr.bf16.mxu1 %v3421_v2  ;;  %v2983_v3 = vld [vmem:[%s4460_s1 + $0x460] ss:$80 sps:$4 sm:$0xff]   ;;  %v2984_v4 = vld [vmem:[%s4460_s1 + $0x468] ss:$80 sps:$4 sm:$0xff]   ;;  %v2985_v5 = vld [vmem:[%s4460_s1 + $0x3c4] ss:$80 sps:$4 sm:$0xff]  }
  0x10   : > { %1316 = vmatprep.subr.bf16.mxu0 %v2979_v0  ;;  %1369 = vmatprep.subr.bf16.mxu1 %v2981_v1  ;;  %v2987_v6 = vld [vmem:[%s4460_s1 + $0x3cc] ss:$80 sps:$4 sm:$0xff]   ;;  %v2989_v7 = vld [vmem:[%s4460_s1 + $0x3c0] ss:$80 sps:$4 sm:$0xff]   ;;  %v2990_v8 = vld [vmem:[%s4460_s1 + $0x3c8] ss:$80 sps:$4 sm:$0xff]  }
  0x11   : > { %1317 = vmatpush1.bf16.msra.mxu0 %v2983_v3  ;;  %1370 = vmatpush1.bf16.msra.mxu1 %v2984_v4  ;;  %v2991_v9 = vld [vmem:[%s4460_s1 + $0x324] ss:$80 sps:$4 sm:$0xff]   ;;  %v2993_v10 = vld [vmem:[%s4460_s1 + $0x32c] ss:$80 sps:$4 sm:$0xff]   ;;  %v2995_v11 = vld [vmem:[%s4460_s1 + $0x320] ss:$80 sps:$4 sm:$0xff]  }
  0x12   : > { %1318 = vmatprep.subr.bf16.mxu0 %v2985_v5  ;;  %1371 = vmatprep.subr.bf16.mxu1 %v2987_v6  ;;  %v2996_v12 = vld [vmem:[%s4460_s1 + $0x328] ss:$80 sps:$4 sm:$0xff]   ;;  %v2997_v13 = vld [vmem:[%s4460_s1 + $0x284] ss:$80 sps:$4 sm:$0xff]   ;;  %v2999_v14 = vld [vmem:[%s4460_s1 + $0x28c] ss:$80 sps:$4 sm:$0xff]  }
  0x13   : > { %s4478_s23 = smov (!%p205_p6, %s2727_s23), 7  ;;  %v3001_v15 = vld [vmem:[%s4460_s1 + $0x280] ss:$80 sps:$4 sm:$0xff]   ;;  %s2728_s4 = sshll.u32 %s4476_s13, 3  ;;  %v3002_v16 = vld [vmem:[%s4460_s1 + $0x288] ss:$80 sps:$4 sm:$0xff]  }
  0x14   : > { %v3003_v17 = vld [vmem:[%s4460_s1 + $0x1e4] ss:$80 sps:$4 sm:$0xff]   ;;  %v3005_v18 = vld [vmem:[%s4460_s1 + $0x1ec] ss:$80 sps:$4 sm:$0xff]   ;;  %s208_s11 = sadd.s32 %s2728_s4, %s4478_s23  ;;  %v3007_v19 = vld [vmem:[%s4460_s1 + $0x1e0] ss:$80 sps:$4 sm:$0xff]  }
  0x15   : > { %1319 = vmatpush1.bf16.msra.mxu0 %v2989_v7  ;;  %1372 = vmatpush1.bf16.msra.mxu1 %v2990_v8  ;;  %v3008_v20 = vld [vmem:[%s4460_s1 + $0x1e8] ss:$80 sps:$4 sm:$0xff]   ;;  %v3009_v21 = vld [vmem:[%s4460_s1 + $0x144] ss:$80 sps:$4 sm:$0xff]   ;;  %v3011_v22 = vld [vmem:[%s4460_s1 + $0x14c] ss:$80 sps:$4 sm:$0xff]  }
  0x16   : > { %1320 = vmatprep.subr.bf16.mxu0 %v2991_v9  ;;  %1373 = vmatprep.subr.bf16.mxu1 %v2993_v10  ;;  %s2729_s23 = sshll.u32 %s208_s11, 2  ;;  %v3013_v23 = vld [vmem:[%s4460_s1 + $0x140] ss:$80 sps:$4 sm:$0xff]   ;;  %v3014_v24 = vld [vmem:[%s4460_s1 + $0x148] ss:$80 sps:$4 sm:$0xff]   ;;  %s4480_s12 = smov (!%p213_p7, %s3403_s12), 1 }
  0x17   : > { %v3015_v25 = vld [vmem:[%s4460_s1 + $0xa4] ss:$80 sps:$4 sm:$0xff]   ;;  %s3564_s9 = scalar_lea.vmem %s4459_s0, %s2729_s23  ;;  %v3017_v26 = vld [vmem:[%s4460_s1 + $0xac] ss:$80 sps:$4 sm:$0xff]   ;;  %v3019_v27 = vld [vmem:[%s4460_s1 + $0xa0] ss:$80 sps:$4 sm:$0xff]  }
  0x18   : > { %v3020_v28 = vld [vmem:[%s4460_s1 + $0xa8] ss:$80 sps:$4 sm:$0xff]   ;;  %v3021_v29 = vld [vmem:[%s4460_s1 + $0x4] ss:$80 sps:$4 sm:$0xff]   ;;  %v3023_v30 = vld [vmem:[%s4460_s1 + $0xc] ss:$80 sps:$4 sm:$0xff]  }
  0x19   : > { %1321 = vmatpush1.bf16.msra.mxu0 %v2995_v11  ;;  %1374 = vmatpush1.bf16.msra.mxu1 %v2996_v12  ;;  %v3025_v31 = vld [vmem:[%s4460_s1] ss:$80 sps:$4 sm:$0xff]   ;;  %v3026_v32 = vld [vmem:[%s4460_s1 + $0x8] ss:$80 sps:$4 sm:$0xff]   ;;  %v3030_v33 = vld [vmem:[%s4460_s1 + $0x474] ss:$80 sps:$4 sm:$0xff]  }
  0x1a   : > { %1322 = vmatprep.subr.bf16.mxu0 %v2997_v13  ;;  %1375 = vmatprep.subr.bf16.mxu1 %v2999_v14  ;;  %v3033_v34 = vld [vmem:[%s4460_s1 + $0x47c] ss:$80 sps:$4 sm:$0xff]   ;;  %v3594_v35 = vld [vmem:[%s3564_s9] sm:$0xff]   ;;  %v3031_v37 = vld [vmem:[%s4460_s1 + $0x478] ss:$80 sps:$4 sm:$0xff]   ;;  %s2934_s5 = smul.u32 20, %s4476_s13 }
  0x1b   : > { %v3028_v36 = vld [vmem:[%s4460_s1 + $0x470] ss:$80 sps:$4 sm:$0xff]   ;;  %v3036_v38 = vld [vmem:[%s4460_s1 + $0x3d4] ss:$80 sps:$4 sm:$0xff]   ;;  %v3039_v39 = vld [vmem:[%s4460_s1 + $0x3dc] ss:$80 sps:$4 sm:$0xff]  }
  0x1c   : > { %v3034_v40 = vld [vmem:[%s4460_s1 + $0x3d0] ss:$80 sps:$4 sm:$0xff]   ;;  %v3037_v41 = vld [vmem:[%s4460_s1 + $0x3d8] ss:$80 sps:$4 sm:$0xff]   ;;  %v3043_v42 = vld [vmem:[%s4460_s1 + $0x334] ss:$80 sps:$4 sm:$0xff]  }
  0x1d   : > { %1323 = vmatpush1.bf16.msra.mxu0 %v3001_v15  ;;  %1376 = vmatpush1.bf16.msra.mxu1 %v3002_v16  ;;  %v3046_v43 = vld [vmem:[%s4460_s1 + $0x33c] ss:$80 sps:$4 sm:$0xff]   ;;  %v3041_v45 = vld [vmem:[%s4460_s1 + $0x330] ss:$80 sps:$4 sm:$0xff]   ;;  %v3044_v46 = vld [vmem:[%s4460_s1 + $0x338] ss:$80 sps:$4 sm:$0xff]  }
  0x1e   : > { %1324 = vmatprep.subr.bf16.mxu0 %v3003_v17  ;;  %1377 = vmatprep.subr.bf16.mxu1 %v3005_v18  ;;  %v3625_v44 = vld [vmem:[%s3564_s9 + $0x8] sm:$0xff]   ;;  %v3049_v47 = vld [vmem:[%s4460_s1 + $0x294] ss:$80 sps:$4 sm:$0xff]   ;;  %v3047_v49 = vld [vmem:[%s4460_s1 + $0x290] ss:$80 sps:$4 sm:$0xff]   ;;  %s2935_s6 = smul.u32 40, %s4480_s12 }
  0x1f   : > { %v3052_v48 = vld [vmem:[%s4460_s1 + $0x29c] ss:$80 sps:$4 sm:$0xff]   ;;  %v3050_v50 = vld [vmem:[%s4460_s1 + $0x298] ss:$80 sps:$4 sm:$0xff]   ;;  %v3055_v51 = vld [vmem:[%s4460_s1 + $0x1f4] ss:$80 sps:$4 sm:$0xff]  }
  0x20   : > { %v3058_v52 = vld [vmem:[%s4460_s1 + $0x1fc] ss:$80 sps:$4 sm:$0xff]   ;;  %v3053_v53 = vld [vmem:[%s4460_s1 + $0x1f0] ss:$80 sps:$4 sm:$0xff]   ;;  %v3056_v54 = vld [vmem:[%s4460_s1 + $0x1f8] ss:$80 sps:$4 sm:$0xff]   ;;  %s219_s12 = sadd.s32 %s2935_s6, %s2934_s5 }
  0x21   : > { %1325 = vmatpush1.bf16.msra.mxu0 %v3007_v19  ;;  %1378 = vmatpush1.bf16.msra.mxu1 %v3008_v20  ;;  %v3061_v55 = vld [vmem:[%s4460_s1 + $0x154] ss:$80 sps:$4 sm:$0xff]   ;;  %v3064_v56 = vld [vmem:[%s4460_s1 + $0x15c] ss:$80 sps:$4 sm:$0xff]   ;;  %v3059_v57 = vld [vmem:[%s4460_s1 + $0x150] ss:$80 sps:$4 sm:$0xff]   ;;  %s4321_s8 = scalar_lea.vmem %s4462_s3, %s219_s12 }
  0x22   : > { %1326 = vmatprep.subr.bf16.mxu0 %v3009_v21  ;;  %1379 = vmatprep.subr.bf16.mxu1 %v3011_v22  ;;  %v3062_v58 = vld [vmem:[%s4460_s1 + $0x158] ss:$80 sps:$4 sm:$0xff]   ;;  %v3067_v59 = vld [vmem:[%s4460_s1 + $0xb4] ss:$80 sps:$4 sm:$0xff]   ;;  %v3070_v60 = vld [vmem:[%s4460_s1 + $0xbc] ss:$80 sps:$4 sm:$0xff]  }
  0x23   : > { %v3065_v61 = vld [vmem:[%s4460_s1 + $0xb0] ss:$80 sps:$4 sm:$0xff]   ;;  %v3068_v62 = vld [vmem:[%s4460_s1 + $0xb8] ss:$80 sps:$4 sm:$0xff]   ;;  %v3073_v63 = vld [vmem:[%s4460_s1 + $0x14] ss:$80 sps:$4 sm:$0xff]  }
  0x24   : > { %v3076_v0 = vld [vmem:[%s4460_s1 + $0x1c] ss:$80 sps:$4 sm:$0xff]   ;;  %v3071_v1 = vld [vmem:[%s4460_s1 + $0x10] ss:$80 sps:$4 sm:$0xff]   ;;  %v3074_v3 = vld [vmem:[%s4460_s1 + $0x18] ss:$80 sps:$4 sm:$0xff]  }
  0x25   : > { %1327 = vmatpush1.bf16.msra.mxu0 %v3013_v23  ;;  %1380 = vmatpush1.bf16.msra.mxu1 %v3014_v24  ;;  %v3079_v4 = vld [vmem:[%s4460_s1 + $0x484] ss:$80 sps:$4 sm:$0xff]   ;;  %v3082_v5 = vld [vmem:[%s4460_s1 + $0x48c] ss:$80 sps:$4 sm:$0xff]   ;;  %v3077_v6 = vld [vmem:[%s4460_s1 + $0x480] ss:$80 sps:$4 sm:$0xff]  }
  0x26   : > { %1328 = vmatprep.subr.bf16.mxu0 %v3015_v25  ;;  %1381 = vmatprep.subr.bf16.mxu1 %v3017_v26  ;;  %v3080_v7 = vld [vmem:[%s4460_s1 + $0x488] ss:$80 sps:$4 sm:$0xff]   ;;  %v3085_v8 = vld [vmem:[%s4460_s1 + $0x3e4] ss:$80 sps:$4 sm:$0xff]   ;;  %v3088_v9 = vld [vmem:[%s4460_s1 + $0x3ec] ss:$80 sps:$4 sm:$0xff]  }
  0x27   : > { %v3083_v10 = vld [vmem:[%s4460_s1 + $0x3e0] ss:$80 sps:$4 sm:$0xff]   ;;  %v3086_v11 = vld [vmem:[%s4460_s1 + $0x3e8] ss:$80 sps:$4 sm:$0xff]   ;;  %v3091_v12 = vld [vmem:[%s4460_s1 + $0x344] ss:$80 sps:$4 sm:$0xff]  }
  0x28   : > { %v3094_v13 = vld [vmem:[%s4460_s1 + $0x34c] ss:$80 sps:$4 sm:$0xff]   ;;  %v3089_v14 = vld [vmem:[%s4460_s1 + $0x340] ss:$80 sps:$4 sm:$0xff]   ;;  %v3092_v15 = vld [vmem:[%s4460_s1 + $0x348] ss:$80 sps:$4 sm:$0xff]  }
  0x29   : > { %1329 = vmatpush1.bf16.msra.mxu0 %v3019_v27  ;;  %1382 = vmatpush1.bf16.msra.mxu1 %v3020_v28  ;;  %v3097_v16 = vld [vmem:[%s4460_s1 + $0x2a4] ss:$80 sps:$4 sm:$0xff]   ;;  %v3100_v17 = vld [vmem:[%s4460_s1 + $0x2ac] ss:$80 sps:$4 sm:$0xff]   ;;  %v3095_v18 = vld [vmem:[%s4460_s1 + $0x2a0] ss:$80 sps:$4 sm:$0xff]  }
  0x2a   : > { %1330 = vmatprep.subr.bf16.mxu0 %v3021_v29  ;;  %1383 = vmatprep.subr.bf16.mxu1 %v3023_v30  ;;  %v3098_v19 = vld [vmem:[%s4460_s1 + $0x2a8] ss:$80 sps:$4 sm:$0xff]   ;;  %v3103_v20 = vld [vmem:[%s4460_s1 + $0x204] ss:$80 sps:$4 sm:$0xff]   ;;  %v3106_v21 = vld [vmem:[%s4460_s1 + $0x20c] ss:$80 sps:$4 sm:$0xff]  }
  0x2b   : > { %v3101_v22 = vld [vmem:[%s4460_s1 + $0x200] ss:$80 sps:$4 sm:$0xff]   ;;  %v3104_v23 = vld [vmem:[%s4460_s1 + $0x208] ss:$80 sps:$4 sm:$0xff]   ;;  %v3109_v24 = vld [vmem:[%s4460_s1 + $0x164] ss:$80 sps:$4 sm:$0xff]  }
  0x2c   : > { %v3112_v25 = vld [vmem:[%s4460_s1 + $0x16c] ss:$80 sps:$4 sm:$0xff]   ;;  %v3107_v26 = vld [vmem:[%s4460_s1 + $0x160] ss:$80 sps:$4 sm:$0xff]   ;;  %v3110_v27 = vld [vmem:[%s4460_s1 + $0x168] ss:$80 sps:$4 sm:$0xff]  }
  0x2d   : > { %1331 = vmatpush1.bf16.msra.mxu0 %v3025_v31  ;;  %1384 = vmatpush1.bf16.msra.mxu1 %v3026_v32  ;;  %v3115_v28 = vld [vmem:[%s4460_s1 + $0xc4] ss:$80 sps:$4 sm:$0xff]   ;;  %v3118_v29 = vld [vmem:[%s4460_s1 + $0xcc] ss:$80 sps:$4 sm:$0xff]   ;;  %v3113_v30 = vld [vmem:[%s4460_s1 + $0xc0] ss:$80 sps:$4 sm:$0xff]  }
  0x2e   : > { %1422 = vmatprep.subr.bf16.mxu0 %v3030_v33  ;;  %1475 = vmatprep.subr.bf16.mxu1 %v3033_v34  ;;  %v3116_v31 = vld [vmem:[%s4460_s1 + $0xc8] ss:$80 sps:$4 sm:$0xff]   ;;  %v3121_v32 = vld [vmem:[%s4460_s1 + $0x24] ss:$80 sps:$4 sm:$0xff]   ;;  %v3124_v33 = vld [vmem:[%s4460_s1 + $0x2c] ss:$80 sps:$4 sm:$0xff]  }
  0x2f   : > { %v3119_v34 = vld [vmem:[%s4460_s1 + $0x20] ss:$80 sps:$4 sm:$0xff]  }
  0x30   : > { %1349 = vmatmul.mubr.bf16.vlgmr.msra.gmra.mxu0 %v3594_v35  ;;  %1402 = vmatmul.mubr.bf16.vlgmr.msra.gmra.mxu1 %v3594_v35 }
  0x31   : > { %1423 = vmatpush1.bf16.msra.mxu0 %v3028_v36  ;;  %1476 = vmatpush1.bf16.msra.mxu1 %v3031_v37  ;;  %v3122_v36 = vld [vmem:[%s4460_s1 + $0x28] ss:$80 sps:$4 sm:$0xff]   ;;  %v3127_v37 = vld [vmem:[%s4460_s1 + $0x494] ss:$80 sps:$4 sm:$0xff]  }
  0x32   : > { %1424 = vmatprep.subr.bf16.mxu0 %v3036_v38  ;;  %1477 = vmatprep.subr.bf16.mxu1 %v3039_v39  ;;  %v3130_v38 = vld [vmem:[%s4460_s1 + $0x49c] ss:$80 sps:$4 sm:$0xff]   ;;  %v3125_v39 = vld [vmem:[%s4460_s1 + $0x490] ss:$80 sps:$4 sm:$0xff]  }
  0x33   : > { %1358 = vmatprep.mubr.bf16.mxu0 %v3421_v2  ;;  %1411 = vmatprep.mubr.bf16.mxu1 %v3421_v2 }
  0x35   : > { %1425 = vmatpush1.bf16.msra.mxu0 %v3034_v40  ;;  %1478 = vmatpush1.bf16.msra.mxu1 %v3037_v41  ;;  %v3128_v40 = vld [vmem:[%s4460_s1 + $0x498] ss:$80 sps:$4 sm:$0xff]   ;;  %v3133_v41 = vld [vmem:[%s4460_s1 + $0x3f4] ss:$80 sps:$4 sm:$0xff]  }
  0x36   : > { %1426 = vmatprep.subr.bf16.mxu0 %v3043_v42  ;;  %1479 = vmatprep.subr.bf16.mxu1 %v3046_v43  ;;  %v3136_v42 = vld [vmem:[%s4460_s1 + $0x3fc] ss:$80 sps:$4 sm:$0xff]   ;;  %v3131_v43 = vld [vmem:[%s4460_s1 + $0x3f0] ss:$80 sps:$4 sm:$0xff]  }
  0x38   : > { %1359 = vmatmul.mubr.bf16.gmra.mxu0 %v3625_v44  ;;  %1412 = vmatmul.mubr.bf16.gmra.mxu1 %v3625_v44 }
  0x39   : > { %1427 = vmatpush1.bf16.msra.mxu0 %v3041_v45  ;;  %1480 = vmatpush1.bf16.msra.mxu1 %v3044_v46  ;;  %v3134_v45 = vld [vmem:[%s4460_s1 + $0x3f8] ss:$80 sps:$4 sm:$0xff]   ;;  %v3139_v46 = vld [vmem:[%s4460_s1 + $0x354] ss:$80 sps:$4 sm:$0xff]  }
  0x3a   : > { %1428 = vmatprep.subr.bf16.mxu0 %v3049_v47  ;;  %1481 = vmatprep.subr.bf16.mxu1 %v3052_v48  ;;  %v3142_v47 = vld [vmem:[%s4460_s1 + $0x35c] ss:$80 sps:$4 sm:$0xff]   ;;  %v3137_v48 = vld [vmem:[%s4460_s1 + $0x350] ss:$80 sps:$4 sm:$0xff]  }
  0x3b   : > { %1454 = vmatprep.mubr.bf16.mxu0 %v3421_v2  ;;  %1507 = vmatprep.mubr.bf16.mxu1 %v3421_v2 }
  0x3d   : > { %1429 = vmatpush1.bf16.msra.mxu0 %v3047_v49  ;;  %1482 = vmatpush1.bf16.msra.mxu1 %v3050_v50  ;;  %v3140_v49 = vld [vmem:[%s4460_s1 + $0x358] ss:$80 sps:$4 sm:$0xff]   ;;  %v3145_v50 = vld [vmem:[%s4460_s1 + $0x2b4] ss:$80 sps:$4 sm:$0xff]  }
  0x3e   : > { %1430 = vmatprep.subr.bf16.mxu0 %v3055_v51  ;;  %1483 = vmatprep.subr.bf16.mxu1 %v3058_v52  ;;  %v3148_v51 = vld [vmem:[%s4460_s1 + $0x2bc] ss:$80 sps:$4 sm:$0xff]   ;;  %v3143_v52 = vld [vmem:[%s4460_s1 + $0x2b0] ss:$80 sps:$4 sm:$0xff]  }
  0x41   : > { %1431 = vmatpush1.bf16.msra.mxu0 %v3053_v53  ;;  %1484 = vmatpush1.bf16.msra.mxu1 %v3056_v54  ;;  %v3146_v53 = vld [vmem:[%s4460_s1 + $0x2b8] ss:$80 sps:$4 sm:$0xff]   ;;  %v3151_v54 = vld [vmem:[%s4460_s1 + $0x214] ss:$80 sps:$4 sm:$0xff]  }
  0x42   : > { %1432 = vmatprep.subr.bf16.mxu0 %v3061_v55  ;;  %1485 = vmatprep.subr.bf16.mxu1 %v3064_v56  ;;  %v3154_v55 = vld [vmem:[%s4460_s1 + $0x21c] ss:$80 sps:$4 sm:$0xff]   ;;  %v3149_v56 = vld [vmem:[%s4460_s1 + $0x210] ss:$80 sps:$4 sm:$0xff]  }
  0x45   : > { %1433 = vmatpush1.bf16.msra.mxu0 %v3059_v57  ;;  %1486 = vmatpush1.bf16.msra.mxu1 %v3062_v58  ;;  %v3152_v57 = vld [vmem:[%s4460_s1 + $0x218] ss:$80 sps:$4 sm:$0xff]   ;;  %v3157_v58 = vld [vmem:[%s4460_s1 + $0x174] ss:$80 sps:$4 sm:$0xff]  }
  0x46   : > { %1434 = vmatprep.subr.bf16.mxu0 %v3067_v59  ;;  %1487 = vmatprep.subr.bf16.mxu1 %v3070_v60  ;;  %v3160_v59 = vld [vmem:[%s4460_s1 + $0x17c] ss:$80 sps:$4 sm:$0xff]   ;;  %v3155_v60 = vld [vmem:[%s4460_s1 + $0x170] ss:$80 sps:$4 sm:$0xff]  }
  0x49   : > { %1435 = vmatpush1.bf16.msra.mxu0 %v3065_v61  ;;  %1488 = vmatpush1.bf16.msra.mxu1 %v3068_v62  ;;  %v3158_v61 = vld [vmem:[%s4460_s1 + $0x178] ss:$80 sps:$4 sm:$0xff]   ;;  %v3163_v62 = vld [vmem:[%s4460_s1 + $0xd4] ss:$80 sps:$4 sm:$0xff]  }
  0x4a   : > { %1436 = vmatprep.subr.bf16.mxu0 %v3073_v63  ;;  %1489 = vmatprep.subr.bf16.mxu1 %v3076_v0  ;;  %v3166_v63 = vld [vmem:[%s4460_s1 + $0xdc] ss:$80 sps:$4 sm:$0xff]   ;;  %v3161_v0 = vld [vmem:[%s4460_s1 + $0xd0] ss:$80 sps:$4 sm:$0xff]  }
  0x4d   : > { %1437 = vmatpush1.bf16.msra.mxu0 %v3071_v1  ;;  %1490 = vmatpush1.bf16.msra.mxu1 %v3074_v3  ;;  %v3164_v1 = vld [vmem:[%s4460_s1 + $0xd8] ss:$80 sps:$4 sm:$0xff]   ;;  %v3169_v3 = vld [vmem:[%s4460_s1 + $0x34] ss:$80 sps:$4 sm:$0xff]  }
  0x4e   : > { %1528 = vmatprep.subr.bf16.mxu0 %v3079_v4  ;;  %1581 = vmatprep.subr.bf16.mxu1 %v3082_v5  ;;  %v3172_v4 = vld [vmem:[%s4460_s1 + $0x3c] ss:$80 sps:$4 sm:$0xff]   ;;  %v3167_v5 = vld [vmem:[%s4460_s1 + $0x30] ss:$80 sps:$4 sm:$0xff]  }
  0x50   : > { %1455 = vmatmul.mubr.bf16.vlgmr.msra.gmra.mxu0 %v3594_v35  ;;  %1508 = vmatmul.mubr.bf16.vlgmr.msra.gmra.mxu1 %v3594_v35 }
  0x51   : > { %1529 = vmatpush1.bf16.msra.mxu0 %v3077_v6  ;;  %1582 = vmatpush1.bf16.msra.mxu1 %v3080_v7  ;;  %v3170_v6 = vld [vmem:[%s4460_s1 + $0x38] ss:$80 sps:$4 sm:$0xff]   ;;  %v3175_v7 = vld [vmem:[%s4460_s1 + $0x4a4] ss:$80 sps:$4 sm:$0xff]  }
  0x52   : > { %1530 = vmatprep.subr.bf16.mxu0 %v3085_v8  ;;  %1583 = vmatprep.subr.bf16.mxu1 %v3088_v9  ;;  %v3178_v8 = vld [vmem:[%s4460_s1 + $0x4ac] ss:$80 sps:$4 sm:$0xff]   ;;  %v3173_v9 = vld [vmem:[%s4460_s1 + $0x4a0] ss:$80 sps:$4 sm:$0xff]  }
  0x53   : > { %1464 = vmatprep.mubr.bf16.mxu0 %v3421_v2  ;;  %1517 = vmatprep.mubr.bf16.mxu1 %v3421_v2 }
  0x55   : > { %1531 = vmatpush1.bf16.msra.mxu0 %v3083_v10  ;;  %1584 = vmatpush1.bf16.msra.mxu1 %v3086_v11  ;;  %v3176_v10 = vld [vmem:[%s4460_s1 + $0x4a8] ss:$80 sps:$4 sm:$0xff]   ;;  %v3181_v11 = vld [vmem:[%s4460_s1 + $0x404] ss:$80 sps:$4 sm:$0xff]  }
  0x56   : > { %1532 = vmatprep.subr.bf16.mxu0 %v3091_v12  ;;  %1585 = vmatprep.subr.bf16.mxu1 %v3094_v13  ;;  %v3184_v12 = vld [vmem:[%s4460_s1 + $0x40c] ss:$80 sps:$4 sm:$0xff]   ;;  %v3179_v13 = vld [vmem:[%s4460_s1 + $0x400] ss:$80 sps:$4 sm:$0xff]  }
  0x58   : > { %1465 = vmatmul.mubr.bf16.gmra.mxu0 %v3625_v44  ;;  %1518 = vmatmul.mubr.bf16.gmra.mxu1 %v3625_v44 }
  0x59   : > { %1533 = vmatpush1.bf16.msra.mxu0 %v3089_v14  ;;  %1586 = vmatpush1.bf16.msra.mxu1 %v3092_v15  ;;  %v3182_v14 = vld [vmem:[%s4460_s1 + $0x408] ss:$80 sps:$4 sm:$0xff]   ;;  %v3187_v15 = vld [vmem:[%s4460_s1 + $0x364] ss:$80 sps:$4 sm:$0xff]  }
  0x5a   : > { %1534 = vmatprep.subr.bf16.mxu0 %v3097_v16  ;;  %1587 = vmatprep.subr.bf16.mxu1 %v3100_v17  ;;  %v3190_v16 = vld [vmem:[%s4460_s1 + $0x36c] ss:$80 sps:$4 sm:$0xff]   ;;  %v3185_v17 = vld [vmem:[%s4460_s1 + $0x360] ss:$80 sps:$4 sm:$0xff]  }
  0x5b   : > { %1560 = vmatprep.mubr.bf16.mxu0 %v3421_v2  ;;  %1613 = vmatprep.mubr.bf16.mxu1 %v3421_v2 }
  0x5d   : > { %1535 = vmatpush1.bf16.msra.mxu0 %v3095_v18  ;;  %1588 = vmatpush1.bf16.msra.mxu1 %v3098_v19  ;;  %v3188_v18 = vld [vmem:[%s4460_s1 + $0x368] ss:$80 sps:$4 sm:$0xff]   ;;  %v3193_v19 = vld [vmem:[%s4460_s1 + $0x2c4] ss:$80 sps:$4 sm:$0xff]  }
  0x5e   : > { %1536 = vmatprep.subr.bf16.mxu0 %v3103_v20  ;;  %1589 = vmatprep.subr.bf16.mxu1 %v3106_v21  ;;  %v3196_v20 = vld [vmem:[%s4460_s1 + $0x2cc] ss:$80 sps:$4 sm:$0xff]   ;;  %v3191_v21 = vld [vmem:[%s4460_s1 + $0x2c0] ss:$80 sps:$4 sm:$0xff]  }
  0x61   : > { %1537 = vmatpush1.bf16.msra.mxu0 %v3101_v22  ;;  %1590 = vmatpush1.bf16.msra.mxu1 %v3104_v23  ;;  %v3194_v22 = vld [vmem:[%s4460_s1 + $0x2c8] ss:$80 sps:$4 sm:$0xff]   ;;  %v3199_v23 = vld [vmem:[%s4460_s1 + $0x224] ss:$80 sps:$4 sm:$0xff]  }
  0x62   : > { %1538 = vmatprep.subr.bf16.mxu0 %v3109_v24  ;;  %1591 = vmatprep.subr.bf16.mxu1 %v3112_v25  ;;  %v3202_v24 = vld [vmem:[%s4460_s1 + $0x22c] ss:$80 sps:$4 sm:$0xff]   ;;  %v3197_v25 = vld [vmem:[%s4460_s1 + $0x220] ss:$80 sps:$4 sm:$0xff]  }
  0x65   : > { %1539 = vmatpush1.bf16.msra.mxu0 %v3107_v26  ;;  %1592 = vmatpush1.bf16.msra.mxu1 %v3110_v27  ;;  %v3200_v26 = vld [vmem:[%s4460_s1 + $0x228] ss:$80 sps:$4 sm:$0xff]   ;;  %v3205_v27 = vld [vmem:[%s4460_s1 + $0x184] ss:$80 sps:$4 sm:$0xff]  }
  0x66   : > { %1540 = vmatprep.subr.bf16.mxu0 %v3115_v28  ;;  %1593 = vmatprep.subr.bf16.mxu1 %v3118_v29  ;;  %v3208_v28 = vld [vmem:[%s4460_s1 + $0x18c] ss:$80 sps:$4 sm:$0xff]   ;;  %v3203_v29 = vld [vmem:[%s4460_s1 + $0x180] ss:$80 sps:$4 sm:$0xff]  }
  0x69   : > { %1541 = vmatpush1.bf16.msra.mxu0 %v3113_v30  ;;  %1594 = vmatpush1.bf16.msra.mxu1 %v3116_v31  ;;  %v3206_v30 = vld [vmem:[%s4460_s1 + $0x188] ss:$80 sps:$4 sm:$0xff]   ;;  %v3211_v31 = vld [vmem:[%s4460_s1 + $0xe4] ss:$80 sps:$4 sm:$0xff]  }
  0x6a   : > { %1542 = vmatprep.subr.bf16.mxu0 %v3121_v32  ;;  %1595 = vmatprep.subr.bf16.mxu1 %v3124_v33  ;;  %v3214_v32 = vld [vmem:[%s4460_s1 + $0xec] ss:$80 sps:$4 sm:$0xff]   ;;  %v3209_v33 = vld [vmem:[%s4460_s1 + $0xe0] ss:$80 sps:$4 sm:$0xff]  }
  0x6d   : > { %1543 = vmatpush1.bf16.msra.mxu0 %v3119_v34  ;;  %1596 = vmatpush1.bf16.msra.mxu1 %v3122_v36  ;;  %v3212_v34 = vld [vmem:[%s4460_s1 + $0xe8] ss:$80 sps:$4 sm:$0xff]   ;;  %v3217_v36 = vld [vmem:[%s4460_s1 + $0x44] ss:$80 sps:$4 sm:$0xff]  }
  0x6e   : > { %1634 = vmatprep.subr.bf16.mxu0 %v3127_v37  ;;  %1687 = vmatprep.subr.bf16.mxu1 %v3130_v38  ;;  %v3220_v37 = vld [vmem:[%s4460_s1 + $0x4c] ss:$80 sps:$4 sm:$0xff]   ;;  %v3215_v38 = vld [vmem:[%s4460_s1 + $0x40] ss:$80 sps:$4 sm:$0xff]  }
  0x70   : > { %1561 = vmatmul.mubr.bf16.vlgmr.msra.gmra.mxu0 %v3594_v35  ;;  %1614 = vmatmul.mubr.bf16.vlgmr.msra.gmra.mxu1 %v3594_v35 }
  0x71   : > { %1635 = vmatpush1.bf16.msra.mxu0 %v3125_v39  ;;  %1688 = vmatpush1.bf16.msra.mxu1 %v3128_v40  ;;  %v3218_v39 = vld [vmem:[%s4460_s1 + $0x48] ss:$80 sps:$4 sm:$0xff]   ;;  %v229_v40 = vlaneseq }
  0x72   : > { %1636 = vmatprep.subr.bf16.mxu0 %v3133_v41  ;;  %1689 = vmatprep.subr.bf16.mxu1 %v3136_v42 }
  0x73   : > { %1570 = vmatprep.mubr.bf16.mxu0 %v3421_v2  ;;  %1623 = vmatprep.mubr.bf16.mxu1 %v3421_v2  ;;  %v4016_v41 = vshrl.u32 %v229_v40, 7  ;;  %vm4236_vm0 = vcmp.lt.s32.totalorder %v229_v40, 512 }
  0x75   : > { %1637 = vmatpush1.bf16.msra.mxu0 %v3131_v43  ;;  %1690 = vmatpush1.bf16.msra.mxu1 %v3134_v45  ;;  %v4019_v42 = vsub.s32 0, %v4016_v41  ;;  %v4022_v43 = vsub.s32 2, %v4016_v41 }
  0x76   : > { %1638 = vmatprep.subr.bf16.mxu0 %v3139_v46  ;;  %1691 = vmatprep.subr.bf16.mxu1 %v3142_v47 }
  0x78   : > { %1571 = vmatmul.mubr.bf16.gmra.mxu0 %v3625_v44  ;;  %1624 = vmatmul.mubr.bf16.gmra.mxu1 %v3625_v44 }
  0x79   : > { %1639 = vmatpush1.bf16.msra.mxu0 %v3137_v48  ;;  %1692 = vmatpush1.bf16.msra.mxu1 %v3140_v49 }
  0x7a   : > { %1640 = vmatprep.subr.bf16.mxu0 %v3145_v50  ;;  %1693 = vmatprep.subr.bf16.mxu1 %v3148_v51 }
  0x7b   : > { %1666 = vmatprep.mubr.bf16.mxu0 %v3421_v2  ;;  %1719 = vmatprep.mubr.bf16.mxu1 %v3421_v2 }
  0x7d   : > { %1641 = vmatpush1.bf16.msra.mxu0 %v3143_v52  ;;  %1694 = vmatpush1.bf16.msra.mxu1 %v3146_v53 }
  0x7e   : > { %1642 = vmatprep.subr.bf16.mxu0 %v3151_v54  ;;  %1695 = vmatprep.subr.bf16.mxu1 %v3154_v55 }
  0x81   : > { %1643 = vmatpush1.bf16.msra.mxu0 %v3149_v56  ;;  %1696 = vmatpush1.bf16.msra.mxu1 %v3152_v57 }
  0x82   : > { %1644 = vmatprep.subr.bf16.mxu0 %v3157_v58  ;;  %1697 = vmatprep.subr.bf16.mxu1 %v3160_v59 }
  0x85   : > { %1645 = vmatpush1.bf16.msra.mxu0 %v3155_v60  ;;  %1698 = vmatpush1.bf16.msra.mxu1 %v3158_v61 }
  0x86   : > { %1646 = vmatprep.subr.bf16.mxu0 %v3163_v62  ;;  %1699 = vmatprep.subr.bf16.mxu1 %v3166_v63 }
  0x89   : > { %1647 = vmatpush1.bf16.msra.mxu0 %v3161_v0  ;;  %1700 = vmatpush1.bf16.msra.mxu1 %v3164_v1 }
  0x8a   : > { %1648 = vmatprep.subr.bf16.mxu0 %v3169_v3  ;;  %1701 = vmatprep.subr.bf16.mxu1 %v3172_v4 }
  0x8d   : > { %1649 = vmatpush1.bf16.msra.mxu0 %v3167_v5  ;;  %1702 = vmatpush1.bf16.msra.mxu1 %v3170_v6 }
  0x8e   : > { %1740 = vmatprep.subr.bf16.mxu0 %v3175_v7  ;;  %1793 = vmatprep.subr.bf16.mxu1 %v3178_v8 }
  0x90   : > { %1667 = vmatmul.mubr.bf16.vlgmr.msra.gmra.mxu0 %v3594_v35  ;;  %1720 = vmatmul.mubr.bf16.vlgmr.msra.gmra.mxu1 %v3594_v35 }
  0x91   : > { %1741 = vmatpush1.bf16.msra.mxu0 %v3173_v9  ;;  %1794 = vmatpush1.bf16.msra.mxu1 %v3176_v10 }
  0x92   : > { %1742 = vmatprep.subr.bf16.mxu0 %v3181_v11  ;;  %1795 = vmatprep.subr.bf16.mxu1 %v3184_v12 }
  0x93   : > { %1676 = vmatprep.mubr.bf16.mxu0 %v3421_v2  ;;  %1729 = vmatprep.mubr.bf16.mxu1 %v3421_v2 }
  0x95   : > { %1743 = vmatpush1.bf16.msra.mxu0 %v3179_v13  ;;  %1796 = vmatpush1.bf16.msra.mxu1 %v3182_v14 }
  0x96   : > { %1744 = vmatprep.subr.bf16.mxu0 %v3187_v15  ;;  %1797 = vmatprep.subr.bf16.mxu1 %v3190_v16 }
  0x98   : > { %1677 = vmatmul.mubr.bf16.gmra.mxu0 %v3625_v44  ;;  %1730 = vmatmul.mubr.bf16.gmra.mxu1 %v3625_v44 }
  0x99   : > { %1745 = vmatpush1.bf16.msra.mxu0 %v3185_v17  ;;  %1798 = vmatpush1.bf16.msra.mxu1 %v3188_v18 }
  0x9a   : > { %1746 = vmatprep.subr.bf16.mxu0 %v3193_v19  ;;  %1799 = vmatprep.subr.bf16.mxu1 %v3196_v20 }
  0x9b   : > { %1772 = vmatprep.mubr.bf16.mxu0 %v3421_v2  ;;  %1825 = vmatprep.mubr.bf16.mxu1 %v3421_v2 }
  0x9d   : > { %1747 = vmatpush1.bf16.msra.mxu0 %v3191_v21  ;;  %1800 = vmatpush1.bf16.msra.mxu1 %v3194_v22 }
  0x9e   : > { %1748 = vmatprep.subr.bf16.mxu0 %v3199_v23  ;;  %1801 = vmatprep.subr.bf16.mxu1 %v3202_v24 }
  0xa1   : > { %1749 = vmatpush1.bf16.msra.mxu0 %v3197_v25  ;;  %1802 = vmatpush1.bf16.msra.mxu1 %v3200_v26 }
  0xa2   : > { %1750 = vmatprep.subr.bf16.mxu0 %v3205_v27  ;;  %1803 = vmatprep.subr.bf16.mxu1 %v3208_v28 }
  0xa5   : > { %1751 = vmatpush1.bf16.msra.mxu0 %v3203_v29  ;;  %1804 = vmatpush1.bf16.msra.mxu1 %v3206_v30 }
  0xa6   : > { %1752 = vmatprep.subr.bf16.mxu0 %v3211_v31  ;;  %1805 = vmatprep.subr.bf16.mxu1 %v3214_v32 }
  0xa9   : > { %1753 = vmatpush1.bf16.msra.mxu0 %v3209_v33  ;;  %1806 = vmatpush1.bf16.msra.mxu1 %v3212_v34 }
  0xaa   : > { %1754 = vmatprep.subr.bf16.mxu0 %v3217_v36  ;;  %1807 = vmatprep.subr.bf16.mxu1 %v3220_v37 }
  0xad   : > { %1755 = vmatpush1.bf16.msra.mxu0 %v3215_v38  ;;  %1808 = vmatpush1.bf16.msra.mxu1 %v3218_v39 }
  0xb0   : > { %1773 = vmatmul.mubr.bf16.vlgmr.msra.gmra.mxu0 %v3594_v35  ;;  %1826 = vmatmul.mubr.bf16.vlgmr.msra.gmra.mxu1 %v3594_v35  ;;  %v4027_v35 = vld [vmem:[%s4461_s2] sm:$0xff] }
  0xb1   : > { %1782 = vmatprep.mubr.bf16.mxu0 %v3421_v2  ;;  %1835 = vmatprep.mubr.bf16.mxu1 %v3421_v2  ;;  %v4030_v2 = vsub.s32 1, %v4016_v41  ;;  %v407_v47 = vrot.slane %v4027_v35, %v4019_v42  ;;  %v415_v48 = vrot.slane %v4027_v35, %v4022_v43 }
  0xb3   : > { %v411_v49 = vrot.slane %v4027_v35, %v4030_v2 }
  0xb8   : > { %1783 = vmatmul.mubr.bf16.gmra.mxu0 %v3625_v44  ;;  %1836 = vmatmul.mubr.bf16.gmra.mxu1 %v3625_v44  ;;  %v4033_v44 = vsub.s32 3, %v4016_v41 }
  0xba   : > { %v419_v51 = vrot.slane %v4027_v35, %v4033_v44 }
  0xf0   : > { %v1350_v45 = vpop.f32.mrf.mxu0  ;;  %v1403_v46 = vpop.f32.mrf.mxu1 }
  0xf1   : > { %v1351_v55 = vadd.f32 %v1350_v45, %v407_v47  ;;  %v1404_v56 = vadd.f32 %v1403_v46, %v415_v48 }
  0xf2   : > { %v1352_v50 = vpop.f32.mrf.mxu0  ;;  %v1405_v52 = vpop.f32.mrf.mxu1 }
  0xf3   : > { %v1353_v59 = vadd.f32 %v1352_v50, %v411_v49  ;;  %v1406_v60 = vadd.f32 %v1405_v52, %v419_v51  ;;  %v426_v50 = vsub.s32 5, %v4016_v41 }
  0xf4   : > { %v1354_v53 = vpop.f32.mrf.mxu0  ;;  %v1407_v54 = vpop.f32.mrf.mxu1 }
  0xf5   : > { %v1355_v57 = vadd.f32 %v1354_v53, %v407_v47  ;;  %v1408_v58 = vadd.f32 %v1407_v54, %v415_v48 }
  0xf6   : > { %v1356_v61 = vpop.f32.mrf.mxu0  ;;  %v1409_v62 = vpop.f32.mrf.mxu1 }
  0xf7   : > { %v4043_v63 = vpack.c.bf16 %v1355_v57, %v1351_v55  ;;  %v4045_v0 = vpack.c.bf16 %v1408_v58, %v1404_v56  ;;  %v1357_v1 = vadd.f32 %v1356_v61, %v411_v49  ;;  %v1410_v3 = vadd.f32 %v1409_v62, %v419_v51 }
  0xf8   : > { %v1360_v4 = vpop.f32.mrf.mxu0  ;;  %v1413_v5 = vpop.f32.mrf.mxu1 }
  0xf9   : > { %v2892_v6 = vmul.bf16 3216621497, %v4043_v63  ;;  %v2894_v7 = vmul.bf16 3216621497, %v4045_v0  ;;  %v4049_v8 = vpack.c.bf16 %v1357_v1, %v1353_v59  ;;  %v4051_v9 = vpack.c.bf16 %v1410_v3, %v1406_v60 }
  0xfa   : > { %v1361_v10 = vadd.f32 %v1360_v4, %v407_v47  ;;  %v1362_v11 = vpop.f32.mrf.mxu0  ;;  %v1415_v12 = vpop.f32.mrf.mxu1  ;;  %v1414_v15 = vadd.f32 %v1413_v5, %v415_v48  ;;  %v4082_v59 = vrot.slane %v4027_v35, %v426_v50 }
  0xfb   : > { %3221 = vpow.bf16 %v2892_v6  ;;  %v2893_v13 = vmul.bf16 3216621497, %v4049_v8  ;;  %v2895_v14 = vmul.bf16 3216621497, %v4051_v9  ;;  %v1363_v16 = vadd.f32 %v1362_v11, %v411_v49 }
  0xfc   : > { %3223 = vpow.bf16 %v2894_v7  ;;  %v1364_v17 = vpop.f32.mrf.mxu0  ;;  %v1417_v18 = vpop.f32.mrf.mxu1  ;;  %v1416_v19 = vadd.f32 %v1415_v12, %v419_v51 }
  0xfd   : > { %3225 = vpow.bf16 %v2893_v13  ;;  %v1365_v20 = vadd.f32 %v1364_v17, %v407_v47  ;;  %v1418_v21 = vadd.f32 %v1417_v18, %v415_v48  ;;  %v422_v47 = vsub.s32 4, %v4016_v41 }
  0xfe   : > { %3227 = vpow.bf16 %v2895_v14  ;;  %v1366_v22 = vpop.f32.mrf.mxu0  ;;  %v1419_v23 = vpop.f32.mrf.mxu1  ;;  %v430_v48 = vsub.s32 6, %v4016_v41 }
  0xff   : > { %v4055_v24 = vpack.c.bf16 %v1365_v20, %v1361_v10  ;;  %v4057_v25 = vpack.c.bf16 %v1418_v21, %v1414_v15  ;;  %v1367_v26 = vadd.f32 %v1366_v22, %v411_v49  ;;  %v1420_v27 = vadd.f32 %v1419_v23, %v419_v51 }
 0x100   : > { %v434_v51 = vsub.s32 7, %v4016_v41  ;;  %v423_v52 = vrot.slane %v4027_v35, %v422_v47  ;;  %v4077_v54 = vrot.slane %v4027_v35, %v430_v48 }
 0x101   : > { %v2912_v28 = vmul.bf16 3216621497, %v4055_v24  ;;  %v2914_v29 = vmul.bf16 3216621497, %v4057_v25  ;;  %v4061_v30 = vpack.c.bf16 %v1367_v26, %v1363_v16  ;;  %v4063_v31 = vpack.c.bf16 %v1420_v27, %v1416_v19 }
 0x102   : > { %v4087_v3 = vrot.slane %v4027_v35, %v434_v51 }
 0x103   : > { %3229 = vpow.bf16 %v2912_v28  ;;  %v2913_v32 = vmul.bf16 3216621497, %v4061_v30  ;;  %v2915_v33 = vmul.bf16 3216621497, %v4063_v31 }
 0x104   : > { %3231 = vpow.bf16 %v2914_v29 }
 0x105   : > { %3233 = vpow.bf16 %v2913_v32  ;;  %v3422_v32 = vmov 1966171168  }
 0x106   : > { %3235 = vpow.bf16 %v2915_v33  ;;  %v4103_v33 = vunpack.c.l.s4 %v3422_v32 }
 0x109   : > { %v3222_v34 = vpop.eup %3221 }
 0x10a   : > { %v3224_v36 = vpop.eup %3223  ;;  %v2046_v37 = vadd.bf16 1065369472, %v3222_v34 }
 0x10b   : > { %v3226_v38 = vpop.eup %3225  ;;  %v2048_v39 = vadd.bf16 1065369472, %v3224_v36 }
 0x10c   : > { %v3228_v45 = vpop.eup %3227  ;;  %3237 = vrcp.bf16 %v2046_v37  ;;  %v2047_v46 = vadd.bf16 1065369472, %v3226_v38 }
 0x10d   : > { %3239 = vrcp.bf16 %v2048_v39  ;;  %v2049_v49 = vadd.bf16 1065369472, %v3228_v45 }
 0x10e   : > { %3241 = vrcp.bf16 %v2047_v46 }
 0x10f   : > { %3243 = vrcp.bf16 %v2049_v49 }
 0x110   : > { %v1456_v53 = vpop.f32.mrf.mxu0  ;;  %v1509_v55 = vpop.f32.mrf.mxu1 }
 0x111   : > { %v3230_v56 = vpop.eup %3229  ;;  %v1457_v6 = vadd.f32 %v1456_v53, %v423_v52  ;;  %v1510_v7 = vadd.f32 %v1509_v55, %v4077_v54 }
 0x112   : > { %v3232_v57 = vpop.eup %3231  ;;  %v2066_v58 = vadd.bf16 1065369472, %v3230_v56  ;;  %v1458_v60 = vpop.f32.mrf.mxu0 }
 0x113   : > { %v1511_v61 = vpop.f32.mrf.mxu1  ;;  %v3234_v62 = vpop.eup %3233  ;;  %v2068_v1 = vadd.bf16 1065369472, %v3232_v57  ;;  %v1459_v15 = vadd.f32 %v1458_v60, %v4082_v59 }
 0x114   : > { %v3236_v4 = vpop.eup %3235  ;;  %3245 = vrcp.bf16 %v2066_v58  ;;  %v2067_v5 = vadd.bf16 1065369472, %v3234_v62  ;;  %v1460_v10 = vpop.f32.mrf.mxu0  ;;  %v1512_v20 = vadd.f32 %v1511_v61, %v4087_v3 }
 0x115   : > { %v1513_v11 = vpop.f32.mrf.mxu1  ;;  %3247 = vrcp.bf16 %v2068_v1  ;;  %v2069_v12 = vadd.bf16 1065369472, %v3236_v4  ;;  %v1461_v13 = vadd.f32 %v1460_v10, %v423_v52 }
 0x116   : > { %v1514_v14 = vadd.f32 %v1513_v11, %v4077_v54  ;;  %3249 = vrcp.bf16 %v2067_v5  ;;  %v1462_v16 = vpop.f32.mrf.mxu0 }
 0x117   : > { %v1515_v17 = vpop.f32.mrf.mxu1  ;;  %3251 = vrcp.bf16 %v2069_v12  ;;  %v4092_v35 = vpack.c.bf16 %v1461_v13, %v1457_v6  ;;  %v1463_v19 = vadd.f32 %v1462_v16, %v4082_v59 }
 0x118   : > { %v4094_v18 = vpack.c.bf16 %v1514_v14, %v1510_v7  ;;  %v1516_v21 = vadd.f32 %v1515_v17, %v4087_v3  ;;  %v1466_v22 = vpop.f32.mrf.mxu0 }
 0x119   : > { %v1519_v23 = vpop.f32.mrf.mxu1  ;;  %v2896_v26 = vmul.bf16 3216621497, %v4092_v35  ;;  %v4101_v28 = vpack.c.bf16 %v1463_v19, %v1459_v15  ;;  %v1467_v46 = vadd.f32 %v1466_v22, %v423_v52 }
 0x11a   : > { %v2898_v27 = vmul.bf16 3216621497, %v4094_v18  ;;  %v3238_v29 = vpop.eup %3237  ;;  %v4105_v34 = vpack.c.bf16 %v1516_v21, %v1512_v20  ;;  %v1468_v36 = vpop.f32.mrf.mxu0  ;;  %v1520_v56 = vadd.f32 %v1519_v23, %v4077_v54 }
 0x11b   : > { %v1521_v37 = vpop.f32.mrf.mxu1  ;;  %v3240_v38 = vpop.eup %3239  ;;  %v2087_v39 = vmul.bf16 1065369472, %v3238_v29  ;;  %3253 = vpow.bf16 %v2896_v26  ;;  %v2897_v45 = vmul.bf16 3216621497, %v4101_v28 }
 0x11c   : > { %v3242_v49 = vpop.eup %3241  ;;  %v2091_v53 = vmul.bf16 1065369472, %v3240_v38  ;;  %3255 = vpow.bf16 %v2898_v27  ;;  %v2899_v55 = vmul.bf16 3216621497, %v4105_v34  ;;  %v1470_v57 = vpop.f32.mrf.mxu0 }
 0x11d   : > { %v1523_v58 = vpop.f32.mrf.mxu1  ;;  %v3244_v60 = vpop.eup %3243  ;;  %v2166_v61 = vmul.bf16 %v2087_v39, %v4043_v63  ;;  %v2089_v62 = vmul.bf16 1065369472, %v3242_v49  ;;  %3257 = vpow.bf16 %v2897_v45  ;;  %v1471_v1 = vadd.f32 %v1470_v57, %v423_v52 }
 0x11e   : > { %v2168_v4 = vmul.bf16 %v2091_v53, %v4045_v0  ;;  %v2093_v5 = vmul.bf16 1065369472, %v3244_v60  ;;  %3259 = vpow.bf16 %v2899_v55  ;;  %v1524_v6 = vadd.f32 %v1523_v58, %v4077_v54  ;;  %v1472_v16 = vpop.f32.mrf.mxu0 }
 0x11f   : > { %v2209_v7 = vunpack.c.l.bf16 %v2166_v61  ;;  %v2229_v10 = vunpack.c.h.bf16 %v2166_v61  ;;  %v2167_v11 = vmul.bf16 %v2089_v62, %v4049_v8  ;;  %v4114_v12 = vpack.c.bf16 %v1471_v1, %v1467_v46  ;;  %v1525_v54 = vpop.f32.mrf.mxu1 }
 0x120   : > { %v2211_v13 = vunpack.c.l.bf16 %v2168_v4  ;;  %v2231_v14 = vunpack.c.h.bf16 %v2168_v4  ;;  %v2169_v15 = vmul.bf16 %v2093_v5, %v4051_v9  ;;  %v4117_v63 = vpack.c.bf16 %v1524_v6, %v1520_v56 }
 0x121   : > { %v2210_v52 = vunpack.c.l.bf16 %v2167_v11  ;;  %v2230_v17 = vunpack.c.h.bf16 %v2167_v11  ;;  %v1469_v0 = vadd.f32 %v1468_v36, %v4082_v59  ;;  %v2916_v19 = vmul.bf16 3216621497, %v4114_v12 }
 0x122   : > { %v3246_v20 = vpop.eup %3245  ;;  %v2212_v21 = vunpack.c.l.bf16 %v2169_v15  ;;  %v2232_v22 = vunpack.c.h.bf16 %v2169_v15  ;;  %v1522_v8 = vadd.f32 %v1521_v37, %v4087_v3  ;;  %v2918_v23 = vmul.bf16 3216621497, %v4117_v63 }
 0x123   : > { %v3248_v26 = vpop.eup %3247  ;;  %v2289_v27 = vadd.f32 %v2229_v10, %v2209_v7  ;;  %v2127_v9 = vmul.bf16 1065369472, %v3246_v20  ;;  %3261 = vpow.bf16 %v2916_v19  ;;  %v1473_v29 = vadd.f32 %v1472_v16, %v4082_v59 }
 0x124   : > { %v3250_v32 = vpop.eup %3249  ;;  %v2307_v38 = vadd.f32 %v2231_v14, %v2211_v13  ;;  %v2131_v39 = vmul.bf16 1065369472, %v3248_v26  ;;  %3263 = vpow.bf16 %v2918_v23  ;;  %v1526_v36 = vadd.f32 %v1525_v54, %v4087_v3 }
 0x125   : > { %v3252_v45 = vpop.eup %3251  ;;  %v2298_v46 = vadd.f32 %v2230_v17, %v2210_v52  ;;  %v2186_v49 = vmul.bf16 %v2127_v9, %v4055_v24  ;;  %v2129_v53 = vmul.bf16 1065369472, %v3250_v32  ;;  %v4126_v37 = vpack.c.bf16 %v1473_v29, %v1469_v0 }
 0x126   : > { %v2316_v55 = vadd.f32 %v2232_v22, %v2212_v21  ;;  %v2188_v56 = vmul.bf16 %v2131_v39, %v4057_v25  ;;  %v2133_v57 = vmul.bf16 1065369472, %v3252_v45  ;;  %v4129_v58 = vpack.c.bf16 %v1526_v36, %v1522_v8  ;;  %v4138_v8 = vld [vmem:[%s4461_s2 + $0x8] sm:$0xff] }
 0x127   : > { %v2249_v59 = vunpack.c.l.bf16 %v2186_v49  ;;  %v2269_v60 = vunpack.c.h.bf16 %v2186_v49  ;;  %v2187_v61 = vmul.bf16 %v2129_v53, %v4061_v30  ;;  %v2917_v62 = vmul.bf16 3216621497, %v4126_v37 }
 0x128   : > { %v2251_v3 = vunpack.c.l.bf16 %v2188_v56  ;;  %v2271_v1 = vunpack.c.h.bf16 %v2188_v56  ;;  %v2189_v4 = vmul.bf16 %v2133_v57, %v4063_v31  ;;  %v2919_v24 = vmul.bf16 3216621497, %v4129_v58 }
 0x129   : > { %v3254_v5 = vpop.eup %3253  ;;  %v2290_v6 = vadd.f32 %v2289_v27, %v2249_v59  ;;  %v2250_v7 = vunpack.c.l.bf16 %v2187_v61  ;;  %v2270_v10 = vunpack.c.h.bf16 %v2187_v61  ;;  %3265 = vpow.bf16 %v2917_v62 }
 0x12a   : > { %v3256_v25 = vpop.eup %3255  ;;  %v2308_v11 = vadd.f32 %v2307_v38, %v2251_v3  ;;  %v2252_v13 = vunpack.c.l.bf16 %v2189_v4  ;;  %v2272_v14 = vunpack.c.h.bf16 %v2189_v4  ;;  %v2050_v15 = vadd.bf16 1065369472, %v3254_v5 }
 0x12b   : > { %v3258_v16 = vpop.eup %3257  ;;  %v2291_v30 = vadd.f32 %v2290_v6, %v2269_v60  ;;  %v2299_v52 = vadd.f32 %v2298_v46, %v2250_v7  ;;  %v2052_v17 = vadd.bf16 1065369472, %v3256_v25  ;;  %3267 = vpow.bf16 %v2919_v24 }
 0x12c   : > { %v3260_v0 = vpop.eup %3259  ;;  %v2309_v19 = vadd.f32 %v2308_v11, %v2271_v1  ;;  %v2317_v31 = vadd.f32 %v2316_v55, %v2252_v13  ;;  %3269 = vrcp.bf16 %v2050_v15  ;;  %v2051_v54 = vadd.bf16 1065369472, %v3258_v16 }
 0x12d   : > { %v2292_v20 = vrot.slane %v2291_v30, 4  ;;  %v2300_v21 = vadd.f32 %v2299_v52, %v2270_v10  ;;  %3271 = vrcp.bf16 %v2052_v17  ;;  %v2053_v22 = vadd.bf16 1065369472, %v3260_v0 }
 0x12e   : > { %3273 = vrcp.bf16 %v2051_v54  ;;  %v2318_v23 = vadd.f32 %v2317_v31, %v2272_v14  ;;  %v2310_v26 = vrot.slane %v2309_v19, 4  ;;  %v2495_v9 = vunpack.c.0.s8 %v4103_v33 }
 0x12f   : > { %3275 = vrcp.bf16 %v2053_v22  ;;  %v2301_v27 = vrot.slane %v2300_v21, 4  ;;  %v2293_v39 = vadd.f32 %v2292_v20, %v2291_v30  ;;  %v4143_v36 = vrot.slane %v4138_v8, %v4019_v42 }
 0x130   : > { %v1562_v29 = vpop.f32.mrf.mxu0  ;;  %v1615_v32 = vpop.f32.mrf.mxu1  ;;  %v4147_v49 = vrot.slane %v4138_v8, %v4022_v43  ;;  %v2319_v56 = vrot.slane %v2318_v23, 4  ;;  %v4151_v33 = vrot.slane %v4138_v8, %v4030_v2  ;;  %v4155_v59 = vrot.slane %v4138_v8, %v4033_v44 }
 0x131   : > { %v3262_v38 = vpop.eup %3261  ;;  %v2311_v60 = vadd.f32 %v2310_v26, %v2309_v19  ;;  %v2302_v61 = vadd.f32 %v2301_v27, %v2300_v21  ;;  %v4158_v62 = vsub.s32 %v2495_v9, %v4016_v41  ;;  %v2294_v4 = vrot.slane %v2293_v39, 2 }
 0x132   : > { %v3264_v45 = vpop.eup %3263  ;;  %v2070_v46 = vadd.bf16 1065369472, %v3262_v38  ;;  %v1564_v53 = vpop.f32.mrf.mxu0  ;;  %v1563_v24 = vadd.f32 %v1562_v29, %v4143_v36  ;;  %v1616_v6 = vadd.f32 %v1615_v32, %v4147_v49  ;;  %v4167_v11 = vrot.slane %v4138_v8, %v422_v47 }
 0x133   : > { %v1617_v55 = vpop.f32.mrf.mxu1  ;;  %v2072_v57 = vadd.bf16 1065369472, %v3264_v45  ;;  %v4172_v13 = vrot.slane %v4138_v8, %v430_v48  ;;  %v2320_v15 = vadd.f32 %v2319_v56, %v2318_v23  ;;  %v1565_v16 = vadd.f32 %v1564_v53, %v4151_v33 }
 0x134   : > { %3277 = vrcp.bf16 %v2070_v46  ;;  %v1566_v3 = vpop.f32.mrf.mxu0  ;;  %v2312_v17 = vrot.slane %v2311_v60, 2  ;;  %v2303_v0 = vrot.slane %v2302_v61, 2  ;;  %v4180_v20 = vadd.f32 %v2294_v4, %v2293_v39 }
 0x135   : > { %v1619_v1 = vpop.f32.mrf.mxu1  ;;  %3279 = vrcp.bf16 %v2072_v57  ;;  %v1567_v5 = vadd.f32 %v1566_v3, %v4143_v36  ;;  %v1618_v9 = vadd.f32 %v1617_v55, %v4155_v59  ;;  %v2321_v38 = vrot.slane %v2320_v15, 2 }
 0x136   : > { %v1620_v7 = vadd.f32 %v1619_v1, %v4147_v49  ;;  %v1568_v10 = vpop.f32.mrf.mxu0  ;;  %v2304_v56 = vadd.f32 %v2303_v0, %v2302_v61  ;;  %v4191_v4 = vadd.f32 %v2312_v17, %v2311_v60  ;;  %v4202_v60 = vrot.slane %v4138_v8, %v426_v50 }
 0x137   : > { %v1621_v25 = vpop.f32.mrf.mxu1  ;;  %v3266_v14 = vpop.eup %3265  ;;  %v4175_v30 = vpack.c.bf16 %v1567_v5, %v1563_v24  ;;  %v1569_v52 = vadd.f32 %v1568_v10, %v4151_v33  ;;  %v4195_v10 = vadd.f32 %v2321_v38, %v2320_v15 }
 0x138   : > { %v2071_v19 = vadd.bf16 1065369472, %v3266_v14  ;;  %v4178_v31 = vpack.c.bf16 %v1620_v7, %v1616_v6  ;;  %v1572_v47 = vpop.f32.mrf.mxu0  ;;  %v1622_v22 = vadd.f32 %v1621_v25, %v4155_v59  ;;  %v2314_v15 = vrot.slane %v4191_v4, 1 }
 0x139   : > { %v3268_v54 = vpop.eup %3267  ;;  %v2900_v48 = vmul.bf16 3216621497, %v4175_v30  ;;  %v4183_v21 = vpack.c.bf16 %v1569_v52, %v1565_v16  ;;  %v1625_v23 = vpop.f32.mrf.mxu1 }
 0x13a   : > { %v3270_v26 = vpop.eup %3269  ;;  %3281 = vrcp.bf16 %v2071_v19  ;;  %v2073_v27 = vadd.bf16 1065369472, %v3268_v54  ;;  %v2902_v29 = vmul.bf16 3216621497, %v4178_v31  ;;  %v1574_v46 = vpop.f32.mrf.mxu0  ;;  %v4189_v3 = vpack.c.bf16 %v1622_v22, %v1618_v9 }
 0x13b   : > { %v3272_v32 = vpop.eup %3271  ;;  %v2095_v45 = vmul.bf16 1065369472, %v3270_v26  ;;  %3283 = vpow.bf16 %v2900_v48  ;;  %v2901_v39 = vmul.bf16 3216621497, %v4183_v21  ;;  %v1627_v5 = vpop.f32.mrf.mxu1 }
 0x13c   : > { %v3274_v53 = vpop.eup %3273  ;;  %v2099_v57 = vmul.bf16 1065369472, %v3272_v32  ;;  %3285 = vrcp.bf16 %v2073_v27  ;;  %v2903_v25 = vmul.bf16 3216621497, %v4189_v3  ;;  %v1576_v14 = vpop.f32.mrf.mxu0 }
 0x13d   : > { %v3276_v1 = vpop.eup %3275  ;;  %v2170_v55 = vmul.bf16 %v2095_v45, %v4092_v35  ;;  %v2097_v24 = vmul.bf16 1065369472, %v3274_v53  ;;  %3287 = vpow.bf16 %v2902_v29  ;;  %v2305_v35 = vrot.slane %v2304_v56, 1  ;;  %v1629_v0 = vpop.f32.mrf.mxu1 }
 0x13e   : > { %v2172_v6 = vmul.bf16 %v2099_v57, %v4094_v18  ;;  %v2101_v7 = vmul.bf16 1065369472, %v3276_v1  ;;  %3289 = vpow.bf16 %v2901_v39  ;;  %v2296_v18 = vrot.slane %v4180_v20, 1  ;;  %v1578_v32 = vpop.f32.mrf.mxu0 }
 0x13f   : > { %v2171_v61 = vmul.bf16 %v2097_v24, %v4101_v28  ;;  %v2213_v16 = vunpack.c.l.bf16 %v2170_v55  ;;  %v2233_v52 = vunpack.c.h.bf16 %v2170_v55  ;;  %3291 = vpow.bf16 %v2903_v25  ;;  %v1631_v1 = vpop.f32.mrf.mxu1 }
 0x140   : > { %v2173_v17 = vmul.bf16 %v2101_v7, %v4105_v34  ;;  %v4210_v28 = vrot.slane %v4138_v8, %v434_v51  ;;  %v2215_v54 = vunpack.c.l.bf16 %v2172_v6  ;;  %v2235_v50 = vunpack.c.h.bf16 %v2172_v6 }
 0x141   : > { %v2214_v48 = vunpack.c.l.bf16 %v2171_v61  ;;  %v2234_v22 = vunpack.c.h.bf16 %v2171_v61  ;;  %v1573_v29 = vadd.f32 %v1572_v47, %v4143_v36  ;;  %v4213_v38 = vadd.f32 %v2305_v35, %v2304_v56 }
 0x142   : > { %v3278_v19 = vpop.eup %3277  ;;  %v2216_v27 = vunpack.c.l.bf16 %v2173_v17  ;;  %v2236_v9 = vunpack.c.h.bf16 %v2173_v17  ;;  %v2323_v45 = vrot.slane %v4195_v10, 1  ;;  %v2325_v41 = vadd.f32 %v2233_v52, %v2213_v16 }
 0x143   : > { %v3280_v26 = vpop.eup %3279  ;;  %v2135_v34 = vmul.bf16 1065369472, %v3278_v19  ;;  %v1626_v8 = vadd.f32 %v1625_v23, %v4147_v49  ;;  %v1577_v53 = vadd.f32 %v1576_v14, %v4143_v36  ;;  %v1630_v57 = vadd.f32 %v1629_v0, %v4147_v49 }
 0x144   : > { %v2139_v39 = vmul.bf16 1065369472, %v3280_v26  ;;  %v2343_v55 = vadd.f32 %v2235_v50, %v2215_v54  ;;  %v1575_v47 = vadd.f32 %v1574_v46, %v4151_v33  ;;  %v1579_v56 = vadd.f32 %v1578_v32, %v4151_v33 }
 0x145   : > { %v2190_v51 = vmul.bf16 %v2135_v34, %v4114_v12  ;;  %v2334_v6 = vadd.f32 %v2234_v22, %v2214_v48  ;;  %v2352_v7 = vadd.f32 %v2236_v9, %v2216_v27  ;;  %v4223_v25 = vpack.c.bf16 %v1577_v53, %v1573_v29 }
 0x146   : > { %v2192_v24 = vmul.bf16 %v2139_v39, %v4117_v63  ;;  %v1628_v36 = vadd.f32 %v1627_v5, %v4155_v59  ;;  %v1632_v49 = vadd.f32 %v1631_v1, %v4155_v59  ;;  %v4228_v46 = vpack.c.bf16 %v1630_v57, %v1626_v8 }
 0x147   : > { %v2253_v61 = vunpack.c.l.bf16 %v2190_v51  ;;  %v2273_v35 = vunpack.c.h.bf16 %v2190_v51  ;;  %v2920_v63 = vmul.bf16 3216621497, %v4223_v25  ;;  %v4230_v54 = vpack.c.bf16 %v1579_v56, %v1575_v47 }
 0x148   : > { %v3282_v12 = vpop.eup %3281  ;;  %v2255_v23 = vunpack.c.l.bf16 %v2192_v24  ;;  %v2275_v17 = vunpack.c.h.bf16 %v2192_v24  ;;  %v4233_v9 = vpack.c.bf16 %v1632_v49, %v1628_v36  ;;  %v2922_v39 = vmul.bf16 3216621497, %v4228_v46 }
 0x149   : > { %v3284_v14 = vpop.eup %3283  ;;  %v2326_v16 = vadd.f32 %v2325_v41, %v2253_v61  ;;  %v2137_v52 = vmul.bf16 1065369472, %v3282_v12  ;;  %3293 = vpow.bf16 %v2920_v63  ;;  %v3423_v51 = vmov 0.0  }
 0x14a   : > { %v3286_v33 = vpop.eup %3285  ;;  %v2344_v0 = vadd.f32 %v2343_v55, %v2255_v23  ;;  %v2054_v19 = vadd.bf16 1065369472, %v3284_v14  ;;  %233 = vst.msk [vmem:[#allocation2 + $0x10] sm:$0xf] %vm4236_vm0, %v3423_v51  ;;  %v2921_v53 = vmul.bf16 3216621497, %v4230_v54  ;;  %v2297_v49 = vadd.f32 %v2296_v18, %v4180_v20 }
 0x14b   : > { %v3288_v50 = vpop.eup %3287  ;;  %v2327_v48 = vadd.f32 %v2326_v16, %v2273_v35  ;;  %v2191_v22 = vmul.bf16 %v2137_v52, %v4126_v37  ;;  %v2141_v5 = vmul.bf16 1065369472, %v3286_v33 }
 0x14c   : > { %v3290_v59 = vpop.eup %3289  ;;  %v2345_v26 = vadd.f32 %v2344_v0, %v2275_v17  ;;  %v2056_v27 = vadd.bf16 1065369472, %v3288_v50  ;;  %3295 = vrcp.bf16 %v2054_v19  ;;  %v2489_v0 = vcombine.low %v2297_v49, %v4213_v38 }
 0x14d   : > { %v2328_v29 = vrot.slane %v2327_v48, 4  ;;  %v2254_v32 = vunpack.c.l.bf16 %v2191_v22  ;;  %v2193_v41 = vmul.bf16 %v2141_v5, %v4129_v58  ;;  %v2055_v8 = vadd.bf16 1065369472, %v3290_v59  ;;  %v3292_v57 = vpop.eup %3291 }
 0x14e   : > { %v2346_v37 = vrot.slane %v2345_v26, 4  ;;  %v2274_v1 = vunpack.c.h.bf16 %v2191_v22  ;;  %3297 = vrcp.bf16 %v2056_v27  ;;  %v2923_v58 = vmul.bf16 3216621497, %v4233_v9 }
 0x14f   : > { %v2329_v40 = vadd.f32 %v2328_v29, %v2327_v48  ;;  %v2335_v55 = vadd.f32 %v2334_v6, %v2254_v32  ;;  %v2256_v24 = vunpack.c.l.bf16 %v2193_v41  ;;  %v2276_v56 = vunpack.c.h.bf16 %v2193_v41 }
 0x150   : > { %v2347_v47 = vadd.f32 %v2346_v37, %v2345_v26  ;;  %v1668_v61 = vpop.f32.mrf.mxu0  ;;  %v1721_v12 = vpop.f32.mrf.mxu1  ;;  %3299 = vpow.bf16 %v2922_v39  ;;  %v4252_v6 = vadd.f32 %v2323_v45, %v4195_v10  ;;  %v2057_v14 = vadd.bf16 1065369472, %v3292_v57 }
 0x151   : > { %v2330_v35 = vrot.slane %v2329_v40, 2  ;;  %v2336_v23 = vadd.f32 %v2335_v55, %v2274_v1  ;;  %v2353_v36 = vadd.f32 %v2352_v7, %v2256_v24  ;;  %3301 = vrcp.bf16 %v2055_v8 }
 0x152   : > { %v1670_v16 = vpop.f32.mrf.mxu0  ;;  %v1723_v52 = vpop.f32.mrf.mxu1  ;;  %v2348_v63 = vrot.slane %v2347_v47, 2  ;;  %3303 = vpow.bf16 %v2921_v53  ;;  %v2315_v7 = vadd.f32 %v2314_v15, %v4191_v4  ;;  %v1669_v20 = vadd.f32 %v1668_v61, %v4167_v11 }
 0x153   : > { %v2337_v33 = vrot.slane %v2336_v23, 4  ;;  %v2354_v17 = vadd.f32 %v2353_v36, %v2276_v56  ;;  %3305 = vpow.bf16 %v2923_v58  ;;  %v2331_v45 = vadd.f32 %v2330_v35, %v2329_v40 }
 0x154   : > { %v1672_v18 = vpop.f32.mrf.mxu0  ;;  %v1725_v10 = vpop.f32.mrf.mxu1  ;;  %v2490_v22 = vcombine.low %v2315_v7, %v4252_v6  ;;  %3307 = vrcp.bf16 %v2057_v14  ;;  %v1722_v5 = vadd.f32 %v1721_v12, %v4172_v13  ;;  %v2349_v38 = vadd.f32 %v2348_v63, %v2347_v47 }
 0x155   : > { %v2338_v19 = vadd.f32 %v2337_v33, %v2336_v23  ;;  %v2355_v50 = vrot.slane %v2354_v17, 4  ;;  %v1673_v48 = vadd.f32 %v1672_v18, %v4167_v11  ;;  %v1726_v59 = vadd.f32 %v1725_v10, %v4172_v13 }
 0x156   : > { %v1674_v4 = vpop.f32.mrf.mxu0  ;;  %v1727_v15 = vpop.f32.mrf.mxu1  ;;  %v1671_v32 = vadd.f32 %v1670_v16, %v4202_v60  ;;  %v2332_v57 = vrot.slane %v2331_v45, 1  ;;  %v1724_v47 = vadd.f32 %v1723_v52, %v4210_v28  ;;  %v2350_v61 = vrot.slane %v2349_v38, 1 }
 0x157   : > { %v2339_v26 = vrot.slane %v2338_v19, 2  ;;  %v2356_v27 = vadd.f32 %v2355_v50, %v2354_v17  ;;  %v4263_v29 = vpack.c.bf16 %v1673_v48, %v1669_v20  ;;  %v4266_v41 = vpack.c.bf16 %v1726_v59, %v1722_v5  ;;  %v3294_v53 = vpop.eup %3293 }
 0x158   : > { %v1675_v39 = vadd.f32 %v1674_v4, %v4202_v60  ;;  %v1728_v51 = vadd.f32 %v1727_v15, %v4210_v28  ;;  %v1678_v37 = vpop.f32.mrf.mxu0  ;;  %v1731_v8 = vpop.f32.mrf.mxu1  ;;  %v2074_v24 = vadd.bf16 1065369472, %v3294_v53  ;;  %v2333_v16 = vadd.f32 %v2332_v57, %v2331_v45 }
 0x159   : > { %v2340_v40 = vadd.f32 %v2339_v26, %v2338_v19  ;;  %v2357_v1 = vrot.slane %v2356_v27, 2  ;;  %v2904_v55 = vmul.bf16 3216621497, %v4263_v29  ;;  %v2906_v56 = vmul.bf16 3216621497, %v4266_v41 }
 0x15a   : > { %v4273_v58 = vpack.c.bf16 %v1675_v39, %v1671_v32  ;;  %v1680_v23 = vpop.f32.mrf.mxu0  ;;  %v3296_v36 = vpop.eup %3295  ;;  %v4277_v6 = vpack.c.bf16 %v1728_v51, %v1724_v47  ;;  %v2499_v17 = vrot.slane %v2489_v0, %v4158_v62  ;;  %v2506_v20 = vrot.slane %v2490_v22, %v4158_v62 }
 0x15b   : > { %v2341_v12 = vrot.slane %v2340_v40, 1  ;;  %v2358_v35 = vadd.f32 %v2357_v1, %v2356_v27  ;;  %3309 = vpow.bf16 %v2904_v55  ;;  %v1733_v14 = vpop.f32.mrf.mxu1  ;;  %v2351_v18 = vadd.f32 %v2350_v61, %v2349_v38 }
 0x15c   : > { %3311 = vrcp.bf16 %v2074_v24  ;;  %v2905_v49 = vmul.bf16 3216621497, %v4273_v58  ;;  %v4279_v33 = vpop.eup %3297  ;;  %v1682_v50 = vpop.f32.mrf.mxu0  ;;  %v2103_v45 = vmul.bf16 1065369472, %v3296_v36  ;;  %v2907_v0 = vmul.bf16 3216621497, %v4277_v6 }
 0x15d   : > { %v2342_v52 = vadd.f32 %v2341_v12, %v2340_v40  ;;  %v2359_v63 = vrot.slane %v2358_v35, 1  ;;  %3313 = vpow.bf16 %v2906_v56  ;;  %v1735_v59 = vpop.f32.mrf.mxu1  ;;  %v1679_v26 = vadd.f32 %v1678_v37, %v4167_v11 }
 0x15e   : > { %v3300_v7 = vpop.eup %3299  ;;  %3315 = vpow.bf16 %v2905_v49  ;;  %v1683_v27 = vadd.f32 %v1682_v50, %v4167_v11  ;;  %v2521_v32 = vcombine.low %v2499_v17, %v2506_v20  ;;  %v2174_v40 = vmul.bf16 %v2103_v45, %v4175_v30  ;;  %v1684_v55 = vpop.f32.mrf.mxu0 }
 0x15f   : > { %v2491_v10 = vcombine.low %v2333_v16, %v2342_v52  ;;  %v2360_v19 = vadd.f32 %v2359_v63, %v2358_v35  ;;  %v4288_v48 = vpop.eup %3301  ;;  %v2076_v5 = vadd.bf16 1065369472, %v3300_v7  ;;  %v1732_v1 = vadd.f32 %v1731_v8, %v4172_v13  ;;  %v1737_v24 = vpop.f32.mrf.mxu1 }
 0x160   : > { %v3304_v4 = vpop.eup %3303  ;;  %v1681_v37 = vadd.f32 %v1680_v23, %v4202_v60  ;;  %v1734_v11 = vadd.f32 %v1733_v14, %v4210_v28  ;;  %v4301_v56 = vpack.c.bf16 %v1683_v27, %v1679_v26  ;;  %v1736_v61 = vadd.f32 %v1735_v59, %v4172_v13 }
 0x161   : > { %v2513_v22 = vrot.slane %v2491_v10, %v4158_v62  ;;  %v2492_v15 = vcombine.low %v2351_v18, %v2360_v19  ;;  %v3306_v38 = vpop.eup %3305  ;;  %3317 = vrcp.bf16 %v2076_v5  ;;  %v2075_v51 = vadd.bf16 1065369472, %v3304_v4 }
 0x162   : > { %v2077_v53 = vadd.bf16 1065369472, %v3306_v38  ;;  %v3308_v57 = vpop.eup %3307  ;;  %3319 = vpow.bf16 %v2907_v0  ;;  %v2529_v12 = vrot.slane %v2521_v32, %v4158_v62  ;;  %v1685_v35 = vadd.f32 %v1684_v55, %v4202_v60 }
 0x163   : > { %v2520_v39 = vrot.slane %v2492_v15, %v4158_v62  ;;  %3321 = vrcp.bf16 %v2075_v51  ;;  %v1738_v8 = vadd.f32 %v1737_v24, %v4210_v28  ;;  %v2107_v36 = vmul.bf16 1065369472, %v4279_v33 }
 0x164   : > { %3323 = vrcp.bf16 %v2077_v53  ;;  %v2924_v23 = vmul.bf16 3216621497, %v4301_v56  ;;  %v4310_v49 = vpack.c.bf16 %v1736_v61, %v1732_v1  ;;  %v2217_v52 = vunpack.c.l.bf16 %v2174_v40 }
 0x165   : > { %v2522_v47 = vcombine.low %v2513_v22, %v2520_v39  ;;  %v4312_v63 = vpack.c.bf16 %v1685_v35, %v1681_v37  ;;  %v4314_v13 = vpack.c.bf16 %v1738_v8, %v1734_v11  ;;  %v2105_v7 = vmul.bf16 1065369472, %v4288_v48 }
 0x166   : > { %3325 = vpow.bf16 %v2924_v23  ;;  %v2926_v28 = vmul.bf16 3216621497, %v4310_v49  ;;  %v2237_v33 = vunpack.c.h.bf16 %v2174_v40  ;;  %v2176_v19 = vmul.bf16 %v2107_v36, %v4178_v31 }
 0x167   : > { %v2536_v30 = vrot.slane %v2522_v47, %v4158_v62  ;;  %v2925_v18 = vmul.bf16 3216621497, %v4312_v63  ;;  %v2109_v50 = vmul.bf16 1065369472, %v3308_v57  ;;  %v2927_v48 = vmul.bf16 3216621497, %v4314_v13 }
 0x168   : > { %v2175_v59 = vmul.bf16 %v2105_v7, %v4183_v21  ;;  %v2361_v4 = vadd.f32 %v2237_v33, %v2217_v52  ;;  %v2219_v26 = vunpack.c.l.bf16 %v2176_v19  ;;  %v2239_v39 = vunpack.c.h.bf16 %v2176_v19 }
 0x169   : > { %v3310_v14 = vpop.eup %3309  ;;  %v2537_v16 = vcombine.low %v2529_v12, %v2536_v30  ;;  %v2177_v31 = vmul.bf16 %v2109_v50, %v4189_v3 }
 0x16a   : > { %v3312_v17 = vpop.eup %3311  ;;  %v2058_v60 = vadd.bf16 1065369472, %v3310_v14  ;;  %v2218_v57 = vunpack.c.l.bf16 %v2175_v59  ;;  %v2238_v40 = vunpack.c.h.bf16 %v2175_v59  ;;  %v2379_v23 = vadd.f32 %v2239_v39, %v2219_v26 }
 0x16b   : > { %v2143_v20 = vmul.bf16 1065369472, %v3312_v17  ;;  %v3314_v10 = vpop.eup %3313  ;;  %2630 = vst [vmem:[%s4321_s8] sm:$0xff] %v2537_v16  ;;  %v2220_v12 = vunpack.c.l.bf16 %v2177_v31  ;;  %v2240_v30 = vunpack.c.h.bf16 %v2177_v31 }
 0x16c   : > { %3327 = vrcp.bf16 %v2058_v60  ;;  %v2060_v5 = vadd.bf16 1065369472, %v3314_v10  ;;  %v3316_v0 = vpop.eup %3315  ;;  %v2370_v17 = vadd.f32 %v2238_v40, %v2218_v57 }
 0x16d   : > { %v2194_v45 = vmul.bf16 %v2143_v20, %v4223_v25  ;;  %3329 = vpow.bf16 %v2926_v28  ;;  %v2059_v15 = vadd.bf16 1065369472, %v3316_v0  ;;  %v4333_v25 = vld [vmem:[%s4461_s2 + $0x10] sm:$0xf]  ;;  %v2388_v10 = vadd.f32 %v2240_v30, %v2220_v12 }
 0x16e   : > { %3331 = vpow.bf16 %v2925_v18  ;;  %v4340_v11 = vrot.slane %v4333_v25, %v4019_v42  ;;  %v4344_v8 = vrot.slane %v4333_v25, %v4022_v43  ;;  %v4349_v42 = vrot.slane %v4333_v25, %v4030_v2 }
 0x16f   : > { %v2257_v22 = vunpack.c.l.bf16 %v2194_v45  ;;  %3333 = vrcp.bf16 %v2060_v5  ;;  %v3318_v38 = vpop.eup %3317  ;;  %v2277_v3 = vunpack.c.h.bf16 %v2194_v45 }
 0x170   : > { %3335 = vpow.bf16 %v2927_v48  ;;  %v1774_v27 = vpop.f32.mrf.mxu0  ;;  %v1827_v32 = vpop.f32.mrf.mxu1  ;;  %v2147_v21 = vmul.bf16 1065369472, %v3318_v38 }
 0x171   : > { %v2362_v51 = vadd.f32 %v2361_v4, %v2257_v22  ;;  %3337 = vrcp.bf16 %v2059_v15  ;;  %v3320_v53 = vpop.eup %3319  ;;  %v1775_v50 = vadd.f32 %v1774_v27, %v4340_v11 }
 0x172   : > { %v1776_v1 = vpop.f32.mrf.mxu0  ;;  %v4335_v55 = vpop.f32.mrf.mxu1  ;;  %v2196_v47 = vmul.bf16 %v2147_v21, %v4228_v46  ;;  %v2061_v37 = vadd.bf16 1065369472, %v3320_v53 }
 0x173   : > { %v3322_v24 = vpop.eup %3321  ;;  %v2363_v14 = vadd.f32 %v2362_v51, %v2277_v3 }
 0x174   : > { %v3324_v61 = vpop.eup %3323  ;;  %v2145_v35 = vmul.bf16 1065369472, %v3322_v24  ;;  %v1778_v36 = vpop.f32.mrf.mxu0  ;;  %v2259_v16 = vunpack.c.l.bf16 %v2196_v47  ;;  %3339 = vrcp.bf16 %v2061_v37  ;;  %v2279_v60 = vunpack.c.h.bf16 %v2196_v47 }
 0x175   : > { %v2149_v52 = vmul.bf16 1065369472, %v3324_v61  ;;  %v1831_v7 = vpop.f32.mrf.mxu1  ;;  %v1779_v43 = vadd.f32 %v1778_v36, %v4340_v11  ;;  %v3326_v18 = vpop.eup %3325  ;;  %v2364_v48 = vrot.slane %v2363_v14, 4  ;;  %v1777_v24 = vadd.f32 %v1776_v1, %v4349_v42 }
 0x176   : > { %v2195_v46 = vmul.bf16 %v2145_v35, %v4230_v54  ;;  %v2380_v28 = vadd.f32 %v2379_v23, %v2259_v16  ;;  %v1780_v20 = vpop.f32.mrf.mxu0  ;;  %v1828_v54 = vadd.f32 %v1827_v32, %v4344_v8  ;;  %v1832_v2 = vadd.f32 %v1831_v7, %v4344_v8 }
 0x177   : > { %v2197_v33 = vmul.bf16 %v2149_v52, %v4233_v9  ;;  %v2078_v22 = vadd.bf16 1065369472, %v3326_v18  ;;  %v1781_v9 = vadd.f32 %v1780_v20, %v4349_v42  ;;  %v4357_v39 = vpack.c.bf16 %v1779_v43, %v1775_v50  ;;  %v1833_v27 = vpop.f32.mrf.mxu1 }
 0x178   : > { %v2258_v19 = vunpack.c.l.bf16 %v2195_v46  ;;  %v2381_v45 = vadd.f32 %v2380_v28, %v2279_v60  ;;  %v2278_v59 = vunpack.c.h.bf16 %v2195_v46  ;;  %v4360_v3 = vpack.c.bf16 %v1832_v2, %v1828_v54  ;;  %v1784_v47 = vpop.f32.mrf.mxu0 }
 0x179   : > { %v2260_v5 = vunpack.c.l.bf16 %v2197_v33  ;;  %v2280_v26 = vunpack.c.h.bf16 %v2197_v33  ;;  %3341 = vrcp.bf16 %v2078_v22  ;;  %v2365_v36 = vadd.f32 %v2364_v48, %v2363_v14  ;;  %v1837_v52 = vpop.f32.mrf.mxu1 }
 0x17a   : > { %v3328_v0 = vpop.eup %3327  ;;  %v2371_v4 = vadd.f32 %v2370_v17, %v2258_v19  ;;  %v2382_v38 = vrot.slane %v2381_v45, 4  ;;  %v4364_v16 = vrot.slane %v4333_v25, %v4033_v44  ;;  %v2908_v1 = vmul.bf16 3216621497, %v4357_v39  ;;  %v1786_v43 = vpop.f32.mrf.mxu0 }
 0x17b   : > { %v3330_v15 = vpop.eup %3329  ;;  %v2389_v31 = vadd.f32 %v2388_v10, %v2260_v5  ;;  %v2111_v21 = vmul.bf16 1065369472, %v3328_v0  ;;  %v4368_v7 = vpack.c.bf16 %v1781_v9, %v1777_v24  ;;  %v2910_v18 = vmul.bf16 3216621497, %v4360_v3 }
 0x17c   : > { %v3332_v51 = vpop.eup %3331  ;;  %v2372_v32 = vadd.f32 %v2371_v4, %v2278_v59  ;;  %v2080_v53 = vadd.bf16 1065369472, %v3330_v15  ;;  %v2383_v17 = vadd.f32 %v2382_v38, %v2381_v45  ;;  %v2366_v44 = vrot.slane %v2365_v36, 2  ;;  %v1788_v2 = vpop.f32.mrf.mxu0 }
 0x17d   : > { %v3334_v57 = vpop.eup %3333  ;;  %v2390_v40 = vadd.f32 %v2389_v31, %v2280_v26  ;;  %v2079_v30 = vadd.bf16 1065369472, %v3332_v51  ;;  %v2178_v46 = vmul.bf16 %v2111_v21, %v4263_v29  ;;  %v1830_v25 = vadd.f32 %v4335_v55, %v4364_v16  ;;  %v1839_v29 = vpop.f32.mrf.mxu1 }
 0x17e   : > { %v3336_v37 = vpop.eup %3335  ;;  %v2373_v61 = vrot.slane %v2372_v32, 4  ;;  %v2115_v12 = vmul.bf16 1065369472, %v3334_v57  ;;  %3343 = vrcp.bf16 %v2080_v53  ;;  %v2384_v19 = vrot.slane %v2383_v17, 2 }
 0x17f   : > { %v3338_v35 = vpop.eup %3337  ;;  %v2391_v23 = vrot.slane %v2390_v40, 4  ;;  %3345 = vrcp.bf16 %v2079_v30  ;;  %v2081_v33 = vadd.bf16 1065369472, %v3336_v37  ;;  %v2221_v50 = vunpack.c.l.bf16 %v2178_v46  ;;  %v1841_v55 = vpop.f32.mrf.mxu1 }
 0x180   : > { %v2374_v60 = vadd.f32 %v2373_v61, %v2372_v32  ;;  %v2180_v28 = vmul.bf16 %v2115_v12, %v4266_v41  ;;  %v2113_v20 = vmul.bf16 1065369472, %v3338_v35  ;;  %v2909_v54 = vmul.bf16 3216621497, %v4368_v7 }
 0x181   : > { %v2392_v14 = vadd.f32 %v2391_v23, %v2390_v40  ;;  %3347 = vrcp.bf16 %v2081_v33  ;;  %v2241_v48 = vunpack.c.h.bf16 %v2178_v46  ;;  %v1834_v4 = vadd.f32 %v1833_v27, %v4364_v16  ;;  %v1843_v30 = vpop.f32.mrf.mxu1 }
 0x182   : > { %v3340_v10 = vpop.eup %3339  ;;  %3349 = vpow.bf16 %v2908_v1  ;;  %v2375_v41 = vrot.slane %v2374_v60, 2  ;;  %v2223_v45 = vunpack.c.l.bf16 %v2180_v28  ;;  %v2243_v5 = vunpack.c.h.bf16 %v2180_v28 }
 0x183   : > { %v2393_v0 = vrot.slane %v2392_v14, 2  ;;  %v2179_v59 = vmul.bf16 %v2113_v20, %v4273_v58  ;;  %3351 = vpow.bf16 %v2910_v18  ;;  %v2117_v22 = vmul.bf16 1065369472, %v3340_v10  ;;  %v1790_v58 = vpop.f32.mrf.mxu0 }
 0x184   : > { %3353 = vpow.bf16 %v2909_v54  ;;  %v4377_v9 = vadd.f32 %v2366_v44, %v2365_v36  ;;  %v4379_v15 = vadd.f32 %v2384_v19, %v2383_v17  ;;  %v4381_v38 = vpack.c.bf16 %v1834_v4, %v1830_v25 }
 0x185   : > { %v4383_v26 = vadd.f32 %v2375_v41, %v2374_v60  ;;  %v2397_v31 = vadd.f32 %v2241_v48, %v2221_v50  ;;  %v1785_v51 = vadd.f32 %v1784_v47, %v4340_v11  ;;  %v1789_v32 = vadd.f32 %v1788_v2, %v4340_v11 }
 0x186   : > { %v4387_v53 = vadd.f32 %v2393_v0, %v2392_v14  ;;  %v2415_v27 = vadd.f32 %v2243_v5, %v2223_v45  ;;  %v2222_v57 = vunpack.c.l.bf16 %v2179_v59  ;;  %v2911_v40 = vmul.bf16 3216621497, %v4381_v38 }
 0x187   : > { %v3342_v21 = vpop.eup %3341  ;;  %v2181_v24 = vmul.bf16 %v2117_v22, %v4277_v6  ;;  %v4391_v61 = vpack.c.bf16 %v1789_v32, %v1785_v51  ;;  %v1842_v12 = vadd.f32 %v1841_v55, %v4344_v8  ;;  %v1838_v11 = vadd.f32 %v1837_v52, %v4344_v8 }
 0x188   : > { %v2151_v37 = vmul.bf16 1065369472, %v3342_v21  ;;  %3355 = vpow.bf16 %v2911_v40  ;;  %v1787_v47 = vadd.f32 %v1786_v43, %v4349_v42  ;;  %v1791_v36 = vadd.f32 %v1790_v58, %v4349_v42 }
 0x189   : > { %v2242_v23 = vunpack.c.h.bf16 %v2179_v59  ;;  %v2928_v6 = vmul.bf16 3216621497, %v4391_v61  ;;  %v1840_v1 = vadd.f32 %v1839_v29, %v4364_v16  ;;  %v4400_v60 = vpack.c.bf16 %v1842_v12, %v1838_v11 }
 0x18a   : > { %v2198_v17 = vmul.bf16 %v2151_v37, %v4301_v56  ;;  %v4402_v28 = vpack.c.bf16 %v1791_v36, %v1787_v47  ;;  %v1844_v33 = vadd.f32 %v1843_v30, %v4364_v16  ;;  %v2224_v8 = vunpack.c.l.bf16 %v2181_v24 }
 0x18b   : > { %v2244_v52 = vunpack.c.h.bf16 %v2181_v24  ;;  %3357 = vpow.bf16 %v2928_v6  ;;  %v2930_v56 = vmul.bf16 3216621497, %v4400_v60  ;;  %v2406_v2 = vadd.f32 %v2242_v23, %v2222_v57 }
 0x18c   : > { %v3344_v35 = vpop.eup %3343  ;;  %v2261_v43 = vunpack.c.l.bf16 %v2198_v17  ;;  %v2929_v18 = vmul.bf16 3216621497, %v4402_v28  ;;  %v2281_v25 = vunpack.c.h.bf16 %v2198_v17  ;;  %v4409_v41 = vpack.c.bf16 %v1844_v33, %v1840_v1 }
 0x18d   : > { %v2155_v46 = vmul.bf16 1065369472, %v3344_v35  ;;  %v3346_v14 = vpop.eup %3345  ;;  %3359 = vpow.bf16 %v2930_v56  ;;  %v2424_v0 = vadd.f32 %v2244_v52, %v2224_v8  ;;  %v2368_v17 = vrot.slane %v4377_v9, 1 }
 0x18e   : > { %v2153_v20 = vmul.bf16 1065369472, %v3346_v14  ;;  %v2398_v29 = vadd.f32 %v2397_v31, %v2261_v43  ;;  %3361 = vpow.bf16 %v2929_v18 }
 0x18f   : > { %v2200_v42 = vmul.bf16 %v2155_v46, %v4310_v49  ;;  %v3348_v44 = vpop.eup %3347  ;;  %v2386_v46 = vrot.slane %v4379_v15, 1 }
 0x190   : > { %v3350_v50 = vpop.eup %3349  ;;  %v2199_v16 = vmul.bf16 %v2153_v20, %v4312_v63  ;;  %v2157_v54 = vmul.bf16 1065369472, %v3348_v44  ;;  %v2399_v48 = vadd.f32 %v2398_v29, %v2281_v25  ;;  %v2931_v63 = vmul.bf16 3216621497, %v4409_v41 }
 0x191   : > { %v2263_v10 = vunpack.c.l.bf16 %v2200_v42  ;;  %v2283_v19 = vunpack.c.h.bf16 %v2200_v42  ;;  %v2062_v45 = vadd.bf16 1065369472, %v3350_v50  ;;  %v3352_v5 = vpop.eup %3351  ;;  %v2369_v44 = vadd.f32 %v2368_v17, %v4377_v9 }
 0x192   : > { %v2262_v59 = vunpack.c.l.bf16 %v2199_v16  ;;  %v2201_v4 = vmul.bf16 %v2157_v54, %v4314_v13  ;;  %v3354_v22 = vpop.eup %3353  ;;  %v2400_v55 = vrot.slane %v2399_v48, 4  ;;  %v2064_v51 = vadd.bf16 1065369472, %v3352_v5 }
 0x193   : > { %v2416_v49 = vadd.f32 %v2415_v27, %v2263_v10  ;;  %v2282_v32 = vunpack.c.h.bf16 %v2199_v16  ;;  %v2063_v40 = vadd.bf16 1065369472, %v3354_v22  ;;  %v2377_v27 = vrot.slane %v4383_v26, 1 }
 0x194   : > { %v2407_v58 = vadd.f32 %v2406_v2, %v2262_v59  ;;  %v2264_v21 = vunpack.c.l.bf16 %v2201_v4  ;;  %v2401_v24 = vadd.f32 %v2400_v55, %v2399_v48  ;;  %3363 = vrcp.bf16 %v2062_v45 }
 0x195   : > { %v2417_v31 = vadd.f32 %v2416_v49, %v2283_v19  ;;  %v2284_v12 = vunpack.c.h.bf16 %v2201_v4  ;;  %3365 = vrcp.bf16 %v2064_v51  ;;  %v2395_v13 = vrot.slane %v4387_v53, 1 }
 0x196   : > { %v2408_v57 = vadd.f32 %v2407_v58, %v2282_v32  ;;  %v2425_v30 = vadd.f32 %v2424_v0, %v2264_v21  ;;  %v2402_v35 = vrot.slane %v2401_v24, 2  ;;  %3367 = vpow.bf16 %v2931_v63  ;;  %v3356_v47 = vpop.eup %3355 }
 0x197   : > { %v2418_v37 = vrot.slane %v2417_v31, 4  ;;  %3369 = vrcp.bf16 %v2063_v40  ;;  %v2065_v8 = vadd.bf16 1065369472, %v3356_v47  ;;  %v2378_v52 = vadd.f32 %v2377_v27, %v4383_v26 }
 0x198   : > { %v2409_v36 = vrot.slane %v2408_v57, 4  ;;  %v2426_v23 = vadd.f32 %v2425_v30, %v2284_v12  ;;  %v2403_v1 = vadd.f32 %v2402_v35, %v2401_v24  ;;  %v2396_v43 = vadd.f32 %v2395_v13, %v4387_v53 }
 0x199   : > { %v2419_v11 = vadd.f32 %v2418_v37, %v2417_v31  ;;  %v3358_v42 = vpop.eup %3357  ;;  %v2387_v25 = vadd.f32 %v2386_v46, %v4379_v15  ;;  %3371 = vrcp.bf16 %v2065_v8  ;;  %v2538_v48 = vcombine.low %v2369_v44, %v2378_v52 }
 0x19a   : > { %v2410_v33 = vadd.f32 %v2409_v36, %v2408_v57  ;;  %v2427_v14 = vrot.slane %v2426_v23, 4  ;;  %v2082_v29 = vadd.bf16 1065369472, %v3358_v42  ;;  %v2404_v19 = vrot.slane %v2403_v1, 1 }
 0x19b   : > { %v2420_v6 = vrot.slane %v2419_v11, 2  ;;  %v3360_v10 = vpop.eup %3359  ;;  %v2539_v49 = vcombine.low %v2387_v25, %v2396_v43  ;;  %v2548_v4 = vrot.slane %v2538_v48, %v4158_v62 }
 0x19c   : > { %v2411_v56 = vrot.slane %v2410_v33, 2  ;;  %v2428_v18 = vadd.f32 %v2427_v14, %v2426_v23  ;;  %v3362_v54 = vpop.eup %3361  ;;  %3373 = vrcp.bf16 %v2082_v29  ;;  %v2084_v26 = vadd.bf16 1065369472, %v3360_v10 }
 0x19d   : > { %v2421_v20 = vadd.f32 %v2420_v6, %v2419_v11  ;;  %v2083_v2 = vadd.bf16 1065369472, %v3362_v54  ;;  %v2405_v0 = vadd.f32 %v2404_v19, %v2403_v1  ;;  %v2555_v55 = vrot.slane %v2539_v49, %v4158_v62 }
 0x19e   : > { %v2412_v50 = vadd.f32 %v2411_v56, %v2410_v33  ;;  %v2429_v16 = vrot.slane %v2428_v18, 2  ;;  %3375 = vrcp.bf16 %v2084_v26 }
 0x19f   : > { %v2422_v53 = vrot.slane %v2421_v20, 1  ;;  %3377 = vrcp.bf16 %v2083_v2  ;;  %v2570_v57 = vcombine.low %v2548_v4, %v2555_v55 }
 0x1a0   : > { %v2413_v45 = vrot.slane %v2412_v50, 1  ;;  %v2430_v5 = vadd.f32 %v2429_v16, %v2428_v18 }
 0x1a1   : > { %v2423_v31 = vadd.f32 %v2422_v53, %v2421_v20  ;;  %v2578_v36 = vrot.slane %v2570_v57, %v4158_v62 }
 0x1a2   : > { %v2414_v9 = vadd.f32 %v2413_v45, %v2412_v50  ;;  %v2431_v59 = vrot.slane %v2430_v5, 1  ;;  %v3364_v15 = vpop.eup %3363 }
 0x1a3   : > { %v3366_v22 = vpop.eup %3365  ;;  %v2119_v27 = vmul.bf16 1065369472, %v3364_v15 }
 0x1a4   : > { %v2540_v51 = vcombine.low %v2405_v0, %v2414_v9  ;;  %v2432_v63 = vadd.f32 %v2431_v59, %v2430_v5  ;;  %v3368_v32 = vpop.eup %3367  ;;  %v2123_v24 = vmul.bf16 1065369472, %v3366_v22 }
 0x1a5   : > { %v3370_v58 = vpop.eup %3369  ;;  %v2085_v37 = vadd.bf16 1065369472, %v3368_v32  ;;  %v2182_v35 = vmul.bf16 %v2119_v27, %v4357_v39 }
 0x1a6   : > { %v2562_v21 = vrot.slane %v2540_v51, %v4158_v62  ;;  %v2541_v40 = vcombine.low %v2423_v31, %v2432_v63  ;;  %v2121_v30 = vmul.bf16 1065369472, %v3370_v58  ;;  %v2184_v11 = vmul.bf16 %v2123_v24, %v4360_v3 }
 0x1a7   : > { %3379 = vrcp.bf16 %v2085_v37  ;;  %v3372_v47 = vpop.eup %3371  ;;  %v2225_v1 = vunpack.c.l.bf16 %v2182_v35  ;;  %v2245_v33 = vunpack.c.h.bf16 %v2182_v35 }
 0x1a8   : > { %v2569_v12 = vrot.slane %v2541_v40, %v4158_v62  ;;  %v2183_v46 = vmul.bf16 %v2121_v30, %v4368_v7  ;;  %v2227_v52 = vunpack.c.l.bf16 %v2184_v11  ;;  %v2247_v43 = vunpack.c.h.bf16 %v2184_v11 }
 0x1a9   : > { %v2125_v42 = vmul.bf16 1065369472, %v3372_v47  ;;  %v2433_v25 = vadd.f32 %v2245_v33, %v2225_v1 }
 0x1aa   : > { %v2571_v13 = vcombine.low %v2562_v21, %v2569_v12  ;;  %v3374_v17 = vpop.eup %3373  ;;  %v2226_v56 = vunpack.c.l.bf16 %v2183_v46  ;;  %v2246_v18 = vunpack.c.h.bf16 %v2183_v46  ;;  %v2451_v10 = vadd.f32 %v2247_v43, %v2227_v52 }
 0x1ab   : > { %v2159_v14 = vmul.bf16 1065369472, %v3374_v17  ;;  %v2185_v50 = vmul.bf16 %v2125_v42, %v4381_v38 }
 0x1ac   : > { %v2585_v23 = vrot.slane %v2571_v13, %v4158_v62  ;;  %v3376_v8 = vpop.eup %3375  ;;  %v2442_v49 = vadd.f32 %v2246_v18, %v2226_v56 }
 0x1ad   : > { %v3378_v39 = vpop.eup %3377  ;;  %v2202_v3 = vmul.bf16 %v2159_v14, %v4391_v61  ;;  %v2163_v20 = vmul.bf16 1065369472, %v3376_v8  ;;  %v2228_v9 = vunpack.c.l.bf16 %v2185_v50  ;;  %v2248_v59 = vunpack.c.h.bf16 %v2185_v50 }
 0x1ae   : > { %v2586_v6 = vcombine.low %v2578_v36, %v2585_v23  ;;  %v2161_v44 = vmul.bf16 1065369472, %v3378_v39 }
 0x1af   : > { %v2265_v29 = vunpack.c.l.bf16 %v2202_v3  ;;  %v2204_v7 = vmul.bf16 %v2163_v20, %v4400_v60  ;;  %v2285_v16 = vunpack.c.h.bf16 %v2202_v3  ;;  %v2460_v51 = vadd.f32 %v2248_v59, %v2228_v9  ;;  %v2208_v3 = vld [vmem:[#allocation2 + $0x10] sm:$0xf] }
 0x1b0   : > { %2631 = vst [vmem:[%s4321_s8 + $0x8] sm:$0xff] %v2586_v6  ;;  %v2203_v19 = vmul.bf16 %v2161_v44, %v4402_v28 }
 0x1b1   : > { %v2434_v54 = vadd.f32 %v2433_v25, %v2265_v29  ;;  %v2267_v48 = vunpack.c.l.bf16 %v2204_v7  ;;  %v2287_v53 = vunpack.c.h.bf16 %v2204_v7 }
 0x1b2   : > { %v2266_v26 = vunpack.c.l.bf16 %v2203_v19  ;;  %v2286_v5 = vunpack.c.h.bf16 %v2203_v19 }
 0x1b3   : > { %v2435_v61 = vadd.f32 %v2434_v54, %v2285_v16  ;;  %v2452_v45 = vadd.f32 %v2451_v10, %v2267_v48 }
 0x1b4   : > { %v2443_v2 = vadd.f32 %v2442_v49, %v2266_v26 }
 0x1b5   : > { %v3380_v0 = vpop.eup %3379  ;;  %v2436_v60 = vrot.slane %v2435_v61, 4  ;;  %v2453_v15 = vadd.f32 %v2452_v45, %v2287_v53 }
 0x1b6   : > { %v2444_v4 = vadd.f32 %v2443_v2, %v2286_v5  ;;  %v2165_v22 = vmul.bf16 1065369472, %v3380_v0 }
 0x1b7   : > { %v2437_v28 = vadd.f32 %v2436_v60, %v2435_v61  ;;  %v2454_v55 = vrot.slane %v2453_v15, 4 }
 0x1b8   : > { %v2445_v38 = vrot.slane %v2444_v4, 4  ;;  %v2205_v31 = vmul.bf16 %v2165_v22, %v4409_v41 }
 0x1b9   : > { %v2438_v63 = vrot.slane %v2437_v28, 2  ;;  %v2455_v32 = vadd.f32 %v2454_v55, %v2453_v15 }
 0x1ba   : > { %v2446_v58 = vadd.f32 %v2445_v38, %v2444_v4  ;;  %v2268_v21 = vunpack.c.l.bf16 %v2205_v31  ;;  %v2288_v27 = vunpack.c.h.bf16 %v2205_v31 }
 0x1bb   : > { %v2439_v37 = vadd.f32 %v2438_v63, %v2437_v28  ;;  %v2456_v57 = vrot.slane %v2455_v32, 2 }
 0x1bc   : > { %v2447_v40 = vrot.slane %v2446_v58, 2  ;;  %v2461_v24 = vadd.f32 %v2460_v51, %v2268_v21 }
 0x1bd   : > { %v2440_v11 = vrot.slane %v2439_v37, 1  ;;  %v2457_v47 = vadd.f32 %v2456_v57, %v2455_v32 }
 0x1be   : > { %v2448_v12 = vadd.f32 %v2447_v40, %v2446_v58  ;;  %v2462_v30 = vadd.f32 %v2461_v24, %v2288_v27 }
 0x1bf   : > { %v2441_v41 = vadd.f32 %v2440_v11, %v2439_v37  ;;  %v2458_v46 = vrot.slane %v2457_v47, 1 }
 0x1c0   : > { %v2449_v13 = vrot.slane %v2448_v12, 1  ;;  %v2463_v35 = vrot.slane %v2462_v30, 4 }
 0x1c1   : > { %v2459_v14 = vadd.f32 %v2458_v46, %v2457_v47 }
 0x1c2   : > { %v2464_v36 = vadd.f32 %v2463_v35, %v2462_v30  ;;  %v2450_v23 = vadd.f32 %v2449_v13, %v2448_v12 }
 0x1c4   : > { %v2465_v17 = vrot.slane %v2464_v36, 2  ;;  %v2587_v1 = vcombine.low %v2441_v41, %v2450_v23 }
 0x1c6   : > { %v2466_v6 = vadd.f32 %v2465_v17, %v2464_v36  ;;  %v2595_v52 = vrot.slane %v2587_v1, %v4158_v62 }
 0x1c8   : > { %v2467_v33 = vrot.slane %v2466_v6, 1 }
 0x1ca   : > { %v2468_v8 = vadd.f32 %v2467_v33, %v2466_v6 }
 0x1cc   : > { %v2588_v43 = vcombine.low %v2459_v14, %v2468_v8 }
 0x1ce   : > { %v2602_v39 = vrot.slane %v2588_v43, %v4158_v62 }
 0x1d0   : > { %v2603_v42 = vcombine.low %v2595_v52, %v2602_v39 }
 0x1d2   : > { %v2610_v20 = vrot.slane %v2603_v42, %v4158_v62 }
 0x1d4   : > { %v2616_v56 = vadd.f32 %v2610_v20, %v2208_v3 }
 0x1d6   : > { %2623 = vst.msk [vmem:[#allocation2 + $0x10] sm:$0xf] %vm4236_vm0, %v2616_v56 }
 0x1dd   : > { %v2629_v18 = vld [vmem:[#allocation2 + $0x10] sm:$0xf] }
 0x1de   : > { %2632 = vst.msk [vmem:[%s4321_s8 + $0x10] sm:$0xf] %vm4236_vm0, %v2629_v18 }
 0x1df PF: > { %s13_s16 = sadd.s32 1, %s3419_s16   ;;  %s4465_s12 = smov %s3411_s14 }
 0x1e0   : > { %p10_p8 = scmp.ge.s32.totalorder %s13_s16, 6   ;;  %s4466_s13 = smov %s3415_s15 }
 0x1e1   : > { %s4467_s14 = smov %s4470_s17  ;;  %s4468_s15 = smov %s4474_s18 }
 0x1e2   :  { %12 = sbr.rel (!%p10_p8) target bundleno = 3 (0x3), region = 70 }

// kernel: effnet_forward.3
= control target key start
LH: loop header
LB: loop body
LE: loop exit
PB: predicated region body
PF: predicated region fallthrough
CT: control target
= control target key end

     0   :  { %s3796_s2 = inlined_call_operand.vmem [shape: f32[2560,256], index: 2, kind: input, shape index: {}]   ;;  %s3797_s1 = inlined_call_operand.vmem [shape: f32[1,2560], index: 1, kind: input, shape index: {}]   ;;  %s3798_s0 = inlined_call_operand.vmem [shape: f32[2,2,2560], index: 0, kind: input, shape index: {}]   ;;  %s3799_s3 = inlined_call_operand.vmem [shape: f32[1,256], index: 3, kind: input, shape index: {}]   ;;  %s3800_s4 = inlined_call_operand.vmem [shape: f32[2,256], index: 4, kind: output, shape index: {}]  }
   0x1   :  { %v250_v0 = vld [vmem:[%s3796_s2 + $0xf8] sm:$0xff]  ;;  %v249_v2 = vld [vmem:[%s3796_s2 + $0xf0] sm:$0xff]  ;;  %v248_v4 = vld [vmem:[%s3796_s2 + $0xe8] sm:$0xff] }
   0x2   :  { %v314_v1 = vld [vmem:[%s3796_s2 + $0x2f8] sm:$0xff]  ;;  %981 = vmatprep.subr.mxu0 %v250_v0  ;;  %v313_v3 = vld [vmem:[%s3796_s2 + $0x2f0] sm:$0xff]  ;;  %v312_v5 = vld [vmem:[%s3796_s2 + $0x2e8] sm:$0xff] }
   0x3   :  { %1052 = vmatprep.subr.mxu1 %v314_v1  ;;  %982 = vmatpush1.msra.mxu0 %v249_v2  ;;  %v247_v6 = vld [vmem:[%s3796_s2 + $0xe0] sm:$0xff]  ;;  %v246_v8 = vld [vmem:[%s3796_s2 + $0xd8] sm:$0xff]  ;;  %v245_v10 = vld [vmem:[%s3796_s2 + $0xd0] sm:$0xff] }
   0x4   :  { %1053 = vmatpush1.msra.mxu1 %v313_v3  ;;  %v311_v7 = vld [vmem:[%s3796_s2 + $0x2e0] sm:$0xff]  ;;  %983 = vmatprep.subr.mxu0 %v248_v4  ;;  %v310_v9 = vld [vmem:[%s3796_s2 + $0x2d8] sm:$0xff]  ;;  %v309_v11 = vld [vmem:[%s3796_s2 + $0x2d0] sm:$0xff] }
   0x5   :  { %1054 = vmatprep.subr.mxu1 %v312_v5  ;;  %984 = vmatpush1.msra.mxu0 %v247_v6  ;;  %v244_v12 = vld [vmem:[%s3796_s2 + $0xc8] sm:$0xff]  ;;  %v243_v14 = vld [vmem:[%s3796_s2 + $0xc0] sm:$0xff]  ;;  %v242_v16 = vld [vmem:[%s3796_s2 + $0xb8] sm:$0xff]  ;;  %v39_v6 = vlaneseq }
   0x6   :  { %1055 = vmatpush1.msra.mxu1 %v311_v7  ;;  %v308_v13 = vld [vmem:[%s3796_s2 + $0x2c8] sm:$0xff]  ;;  %985 = vmatprep.subr.mxu0 %v246_v8  ;;  %v307_v15 = vld [vmem:[%s3796_s2 + $0x2c0] sm:$0xff]  ;;  %v306_v17 = vld [vmem:[%s3796_s2 + $0x2b8] sm:$0xff] }
   0x7   :  { %1056 = vmatprep.subr.mxu1 %v310_v9  ;;  %986 = vmatpush1.msra.mxu0 %v245_v10  ;;  %v241_v18 = vld [vmem:[%s3796_s2 + $0xb0] sm:$0xff]  ;;  %v240_v20 = vld [vmem:[%s3796_s2 + $0xa8] sm:$0xff]  ;;  %v239_v22 = vld [vmem:[%s3796_s2 + $0xa0] sm:$0xff] }
   0x8   :  { %1057 = vmatpush1.msra.mxu1 %v309_v11  ;;  %987 = vmatprep.subr.mxu0 %v244_v12  ;;  %v305_v19 = vld [vmem:[%s3796_s2 + $0x2b0] sm:$0xff]  ;;  %v304_v21 = vld [vmem:[%s3796_s2 + $0x2a8] sm:$0xff]  ;;  %v303_v23 = vld [vmem:[%s3796_s2 + $0x2a0] sm:$0xff] }
   0x9   :  { %1058 = vmatprep.subr.mxu1 %v308_v13  ;;  %988 = vmatpush1.msra.mxu0 %v243_v14  ;;  %v238_v24 = vld [vmem:[%s3796_s2 + $0x98] sm:$0xff]  ;;  %v237_v26 = vld [vmem:[%s3796_s2 + $0x90] sm:$0xff]  ;;  %v236_v28 = vld [vmem:[%s3796_s2 + $0x88] sm:$0xff]  ;;  %v1714_v13 = vmov 1983009808  }
   0xa   :  { %1059 = vmatpush1.msra.mxu1 %v307_v15  ;;  %989 = vmatprep.subr.mxu0 %v242_v16  ;;  %v302_v25 = vld [vmem:[%s3796_s2 + $0x298] sm:$0xff]  ;;  %v301_v27 = vld [vmem:[%s3796_s2 + $0x290] sm:$0xff]  ;;  %v300_v29 = vld [vmem:[%s3796_s2 + $0x288] sm:$0xff]  ;;  %v122_v14 = vunpack.c.l.s4 %v1714_v13 }
   0xb   :  { %1060 = vmatprep.subr.mxu1 %v306_v17  ;;  %990 = vmatpush1.msra.mxu0 %v241_v18  ;;  %v235_v30 = vld [vmem:[%s3796_s2 + $0x80] sm:$0xff]  ;;  %v234_v32 = vld [vmem:[%s3796_s2 + $0x78] sm:$0xff]  ;;  %v233_v34 = vld [vmem:[%s3796_s2 + $0x70] sm:$0xff]  ;;  %v1974_v17 = vshrl.u32 %v39_v6, 7 }
   0xc   :  { %1061 = vmatpush1.msra.mxu1 %v305_v19  ;;  %991 = vmatprep.subr.mxu0 %v240_v20  ;;  %v299_v31 = vld [vmem:[%s3796_s2 + $0x280] sm:$0xff]  ;;  %v298_v33 = vld [vmem:[%s3796_s2 + $0x278] sm:$0xff]  ;;  %v297_v35 = vld [vmem:[%s3796_s2 + $0x270] sm:$0xff] }
   0xd   :  { %1062 = vmatprep.subr.mxu1 %v304_v21  ;;  %992 = vmatpush1.msra.mxu0 %v239_v22  ;;  %v232_v36 = vld [vmem:[%s3796_s2 + $0x68] sm:$0xff]  ;;  %v231_v38 = vld [vmem:[%s3796_s2 + $0x60] sm:$0xff]  ;;  %v230_v40 = vld [vmem:[%s3796_s2 + $0x58] sm:$0xff] }
   0xe   :  { %1063 = vmatpush1.msra.mxu1 %v303_v23  ;;  %993 = vmatprep.subr.mxu0 %v238_v24  ;;  %v296_v37 = vld [vmem:[%s3796_s2 + $0x268] sm:$0xff]  ;;  %v295_v39 = vld [vmem:[%s3796_s2 + $0x260] sm:$0xff]  ;;  %v294_v41 = vld [vmem:[%s3796_s2 + $0x258] sm:$0xff]  ;;  %v123_v24 = vunpack.c.0.s8 %v122_v14 }
   0xf   :  { %1064 = vmatprep.subr.mxu1 %v302_v25  ;;  %994 = vmatpush1.msra.mxu0 %v237_v26  ;;  %v229_v42 = vld [vmem:[%s3796_s2 + $0x50] sm:$0xff]  ;;  %v228_v44 = vld [vmem:[%s3796_s2 + $0x48] sm:$0xff]  ;;  %v227_v46 = vld [vmem:[%s3796_s2 + $0x40] sm:$0xff] }
  0x10   :  { %1065 = vmatpush1.msra.mxu1 %v301_v27  ;;  %995 = vmatprep.subr.mxu0 %v236_v28  ;;  %v293_v43 = vld [vmem:[%s3796_s2 + $0x250] sm:$0xff]  ;;  %v292_v45 = vld [vmem:[%s3796_s2 + $0x248] sm:$0xff]  ;;  %v291_v47 = vld [vmem:[%s3796_s2 + $0x240] sm:$0xff]  ;;  %v2001_v27 = vsub.s32 0, %v1974_v17  ;;  %v2004_v28 = vsub.s32 1, %v1974_v17 }
  0x11   :  { %1066 = vmatprep.subr.mxu1 %v300_v29  ;;  %996 = vmatpush1.msra.mxu0 %v235_v30  ;;  %v226_v48 = vld [vmem:[%s3796_s2 + $0x38] sm:$0xff]  ;;  %v225_v50 = vld [vmem:[%s3796_s2 + $0x30] sm:$0xff]  ;;  %v224_v52 = vld [vmem:[%s3796_s2 + $0x28] sm:$0xff]  ;;  %v2007_v29 = vsub.s32 2, %v1974_v17 }
  0x12   :  { %1067 = vmatpush1.msra.mxu1 %v299_v31  ;;  %997 = vmatprep.subr.mxu0 %v234_v32  ;;  %v290_v49 = vld [vmem:[%s3796_s2 + $0x238] sm:$0xff]  ;;  %v289_v51 = vld [vmem:[%s3796_s2 + $0x230] sm:$0xff]  ;;  %v288_v53 = vld [vmem:[%s3796_s2 + $0x228] sm:$0xff]  ;;  %v2016_v32 = vsub.s32 3, %v1974_v17 }
  0x13   :  { %1068 = vmatprep.subr.mxu1 %v298_v33  ;;  %998 = vmatpush1.msra.mxu0 %v233_v34  ;;  %v223_v54 = vld [vmem:[%s3796_s2 + $0x20] sm:$0xff]  ;;  %v222_v56 = vld [vmem:[%s3796_s2 + $0x18] sm:$0xff]  ;;  %v221_v58 = vld [vmem:[%s3796_s2 + $0x10] sm:$0xff] }
  0x14   :  { %1069 = vmatpush1.msra.mxu1 %v297_v35  ;;  %999 = vmatprep.subr.mxu0 %v232_v36  ;;  %v287_v55 = vld [vmem:[%s3796_s2 + $0x220] sm:$0xff]  ;;  %v286_v57 = vld [vmem:[%s3796_s2 + $0x218] sm:$0xff]  ;;  %v285_v59 = vld [vmem:[%s3796_s2 + $0x210] sm:$0xff] }
  0x15   :  { %1070 = vmatprep.subr.mxu1 %v296_v37  ;;  %1000 = vmatpush1.msra.mxu0 %v231_v38  ;;  %v220_v60 = vld [vmem:[%s3796_s2 + $0x8] sm:$0xff]  ;;  %v219_v62 = vld [vmem:[%s3796_s2] sm:$0xff]  ;;  %v282_v0 = vld [vmem:[%s3796_s2 + $0x1f8] sm:$0xff]  ;;  %v2036_v38 = vsub.s32 %v123_v24, %v1974_v17 }
  0x16   :  { %1071 = vmatpush1.msra.mxu1 %v295_v39  ;;  %1001 = vmatprep.subr.mxu0 %v230_v40  ;;  %v284_v61 = vld [vmem:[%s3796_s2 + $0x208] sm:$0xff]  ;;  %v283_v63 = vld [vmem:[%s3796_s2 + $0x200] sm:$0xff]  ;;  %v346_v1 = vld [vmem:[%s3796_s2 + $0x3f8] sm:$0xff] }
  0x17   :  { %1072 = vmatprep.subr.mxu1 %v294_v41  ;;  %1002 = vmatpush1.msra.mxu0 %v229_v42  ;;  %v281_v2 = vld [vmem:[%s3796_s2 + $0x1f0] sm:$0xff]  ;;  %v280_v4 = vld [vmem:[%s3796_s2 + $0x1e8] sm:$0xff]  ;;  %v279_v7 = vld [vmem:[%s3796_s2 + $0x1e0] sm:$0xff] }
  0x18   :  { %1073 = vmatpush1.msra.mxu1 %v293_v43  ;;  %1003 = vmatprep.subr.mxu0 %v228_v44  ;;  %v345_v3 = vld [vmem:[%s3796_s2 + $0x3f0] sm:$0xff]  ;;  %v344_v5 = vld [vmem:[%s3796_s2 + $0x3e8] sm:$0xff]  ;;  %v343_v8 = vld [vmem:[%s3796_s2 + $0x3e0] sm:$0xff] }
  0x19   :  { %1074 = vmatprep.subr.mxu1 %v292_v45  ;;  %1004 = vmatpush1.msra.mxu0 %v227_v46  ;;  %v278_v9 = vld [vmem:[%s3796_s2 + $0x1d8] sm:$0xff]  ;;  %v277_v11 = vld [vmem:[%s3796_s2 + $0x1d0] sm:$0xff]  ;;  %v276_v15 = vld [vmem:[%s3796_s2 + $0x1c8] sm:$0xff] }
  0x1a   :  { %1075 = vmatpush1.msra.mxu1 %v291_v47  ;;  %1005 = vmatprep.subr.mxu0 %v226_v48  ;;  %v342_v10 = vld [vmem:[%s3796_s2 + $0x3d8] sm:$0xff]  ;;  %v341_v12 = vld [vmem:[%s3796_s2 + $0x3d0] sm:$0xff]  ;;  %v340_v16 = vld [vmem:[%s3796_s2 + $0x3c8] sm:$0xff] }
  0x1b   :  { %1076 = vmatprep.subr.mxu1 %v290_v49  ;;  %1006 = vmatpush1.msra.mxu0 %v225_v50  ;;  %v275_v18 = vld [vmem:[%s3796_s2 + $0x1c0] sm:$0xff]  ;;  %v274_v20 = vld [vmem:[%s3796_s2 + $0x1b8] sm:$0xff]  ;;  %v273_v22 = vld [vmem:[%s3796_s2 + $0x1b0] sm:$0xff] }
  0x1c   :  { %1077 = vmatpush1.msra.mxu1 %v289_v51  ;;  %1007 = vmatprep.subr.mxu0 %v224_v52  ;;  %v339_v19 = vld [vmem:[%s3796_s2 + $0x3c0] sm:$0xff]  ;;  %v338_v21 = vld [vmem:[%s3796_s2 + $0x3b8] sm:$0xff]  ;;  %v337_v23 = vld [vmem:[%s3796_s2 + $0x3b0] sm:$0xff] }
  0x1d   :  { %1078 = vmatprep.subr.mxu1 %v288_v53  ;;  %1008 = vmatpush1.msra.mxu0 %v223_v54  ;;  %v272_v25 = vld [vmem:[%s3796_s2 + $0x1a8] sm:$0xff]  ;;  %v271_v30 = vld [vmem:[%s3796_s2 + $0x1a0] sm:$0xff]  ;;  %v270_v33 = vld [vmem:[%s3796_s2 + $0x198] sm:$0xff] }
  0x1e   :  { %1079 = vmatpush1.msra.mxu1 %v287_v55  ;;  %1009 = vmatprep.subr.mxu0 %v222_v56  ;;  %v336_v26 = vld [vmem:[%s3796_s2 + $0x3a8] sm:$0xff]  ;;  %v335_v31 = vld [vmem:[%s3796_s2 + $0x3a0] sm:$0xff]  ;;  %v334_v34 = vld [vmem:[%s3796_s2 + $0x398] sm:$0xff] }
  0x1f   :  { %1080 = vmatprep.subr.mxu1 %v286_v57  ;;  %1010 = vmatpush1.msra.mxu0 %v221_v58  ;;  %v269_v35 = vld [vmem:[%s3796_s2 + $0x190] sm:$0xff]  ;;  %v2033_v37 = vld [vmem:[%s3797_s1] sm:$0xff]  ;;  %v268_v39 = vld [vmem:[%s3796_s2 + $0x188] sm:$0xff] }
  0x20   :  { %1081 = vmatpush1.msra.mxu1 %v285_v59  ;;  %1011 = vmatprep.subr.mxu0 %v220_v60  ;;  %v333_v36 = vld [vmem:[%s3796_s2 + $0x390] sm:$0xff]  ;;  %v332_v40 = vld [vmem:[%s3796_s2 + $0x388] sm:$0xff]  ;;  %v42_v41 = vrot.slane %v2033_v37, %v2001_v27  ;;  %v46_v42 = vrot.slane %v2033_v37, %v2004_v28  ;;  %v50_v43 = vrot.slane %v2033_v37, %v2007_v29  ;;  %v267_v44 = vld [vmem:[%s3796_s2 + $0x180] sm:$0xff] }
  0x21   :  { %1082 = vmatprep.subr.mxu1 %v284_v61  ;;  %1012 = vmatpush1.msra.mxu0 %v219_v62  ;;  %v331_v45 = vld [vmem:[%s3796_s2 + $0x380] sm:$0xff]  ;;  %v266_v46 = vld [vmem:[%s3796_s2 + $0x178] sm:$0xff]  ;;  %v54_v47 = vrot.slane %v2033_v37, %v2016_v32  ;;  %v1707_v50 = vld [vmem:[%s3798_s0 + $0x28] sm:$0xff] }
  0x22   :  { %1083 = vmatpush1.msra.mxu1 %v283_v63  ;;  %1013 = vmatprep.subr.mxu0 %v282_v0  ;;  %v330_v48 = vld [vmem:[%s3796_s2 + $0x378] sm:$0xff]  ;;  %v17_v49 = vld [vmem:[%s3798_s0] sm:$0xff]  ;;  %v119_v51 = vcombine.low %v42_v41, %v46_v42  ;;  %v265_v52 = vld [vmem:[%s3796_s2 + $0x170] sm:$0xff] }
  0x23   :  { %1084 = vmatprep.subr.mxu1 %v346_v1  ;;  %1014 = vmatpush2.msra.mxu0 %v281_v2  ;;  %v329_v53 = vld [vmem:[%s3796_s2 + $0x370] sm:$0xff]  ;;  %v120_v54 = vcombine.low %v50_v43, %v54_v47  ;;  %v264_v55 = vld [vmem:[%s3796_s2 + $0x168] sm:$0xff]  ;;  %v263_v58 = vld [vmem:[%s3796_s2 + $0x160] sm:$0xff]  ;;  %v28_v60 = vadd.f32 %v1707_v50, %v17_v49 }
  0x24   :  { %1085 = vmatpush2.msra.mxu1 %v345_v3  ;;  %1015 = vmatprep.subr.mxu0 %v280_v4  ;;  %v328_v56 = vld [vmem:[%s3796_s2 + $0x368] sm:$0xff]  ;;  %v127_v57 = vrot.slane %v119_v51, %v2036_v38  ;;  %v327_v59 = vld [vmem:[%s3796_s2 + $0x360] sm:$0xff]  ;;  %v262_v62 = vld [vmem:[%s3796_s2 + $0x158] sm:$0xff] }
  0x25   :  { %1086 = vmatprep.subr.mxu1 %v344_v5  ;;  %1016 = vmatpush2.msra.mxu0 %v279_v7  ;;  %v134_v61 = vrot.slane %v120_v54, %v2036_v38  ;;  %v326_v63 = vld [vmem:[%s3796_s2 + $0x358] sm:$0xff]  ;;  %v261_v0 = vld [vmem:[%s3796_s2 + $0x150] sm:$0xff]  ;;  %v260_v3 = vld [vmem:[%s3796_s2 + $0x148] sm:$0xff] }
  0x26   :  { %1087 = vmatpush2.msra.mxu1 %v343_v8  ;;  %1017 = vmatprep.subr.mxu0 %v278_v9  ;;  %v325_v1 = vld [vmem:[%s3796_s2 + $0x350] sm:$0xff]  ;;  %v324_v4 = vld [vmem:[%s3796_s2 + $0x348] sm:$0xff]  ;;  %v259_v5 = vld [vmem:[%s3796_s2 + $0x140] sm:$0xff] }
  0x27   :  { %1088 = vmatprep.subr.mxu1 %v342_v10  ;;  %1018 = vmatpush2.msra.mxu0 %v277_v11  ;;  %v135_v2 = vcombine.low %v127_v57, %v134_v61  ;;  %v323_v6 = vld [vmem:[%s3796_s2 + $0x340] sm:$0xff]  ;;  %v258_v8 = vld [vmem:[%s3796_s2 + $0x138] sm:$0xff]  ;;  %v257_v10 = vld [vmem:[%s3796_s2 + $0x130] sm:$0xff] }
  0x28   :  { %1089 = vmatpush2.msra.mxu1 %v341_v12  ;;  %1019 = vmatprep.subr.mxu0 %v276_v15  ;;  %v322_v9 = vld [vmem:[%s3796_s2 + $0x338] sm:$0xff]  ;;  %v321_v11 = vld [vmem:[%s3796_s2 + $0x330] sm:$0xff]  ;;  %v256_v13 = vld [vmem:[%s3796_s2 + $0x128] sm:$0xff] }
  0x29   :  { %1090 = vmatprep.subr.mxu1 %v340_v16  ;;  %1020 = vmatpush2.msra.mxu0 %v275_v18  ;;  %v209_v7 = vsub.f32 %v28_v60, %v135_v2  ;;  %v320_v14 = vld [vmem:[%s3796_s2 + $0x328] sm:$0xff]  ;;  %v255_v15 = vld [vmem:[%s3796_s2 + $0x120] sm:$0xff]  ;;  %v373_v47 = vld [vmem:[%s3796_s2 + $0x4d0] sm:$0xff] }
  0x2a   :  { %1091 = vmatpush2.msra.mxu1 %v339_v19  ;;  %1021 = vmatprep.subr.mxu0 %v274_v20  ;;  %v319_v16 = vld [vmem:[%s3796_s2 + $0x320] sm:$0xff]  ;;  %v254_v20 = vld [vmem:[%s3796_s2 + $0x118] sm:$0xff]  ;;  %v376_v41 = vld [vmem:[%s3796_s2 + $0x4e8] sm:$0xff] }
  0x2b   :  { %1092 = vmatprep.subr.mxu1 %v338_v21  ;;  %1022 = vmatpush2.msra.mxu0 %v273_v22  ;;  %v214_v12 = vmul.f32 0.015625, %v209_v7  ;;  %v318_v21 = vld [vmem:[%s3796_s2 + $0x318] sm:$0xff]  ;;  %v253_v22 = vld [vmem:[%s3796_s2 + $0x110] sm:$0xff]  ;;  %v440_v42 = vld [vmem:[%s3796_s2 + $0x6e8] sm:$0xff] }
  0x2c   :  { %1093 = vmatpush2.msra.mxu1 %v337_v23  ;;  %1023 = vmatprep.subr.mxu0 %v272_v25  ;;  %v317_v23 = vld [vmem:[%s3796_s2 + $0x310] sm:$0xff]  ;;  %v252_v25 = vld [vmem:[%s3796_s2 + $0x108] sm:$0xff]  ;;  %v375_v43 = vld [vmem:[%s3796_s2 + $0x4e0] sm:$0xff] }
  0x2d   :  { %1094 = vmatprep.subr.mxu1 %v336_v26  ;;  %1024 = vmatpush2.msra.mxu0 %v271_v30  ;;  %v883_v18 = vrot.slane %v214_v12, %v2036_v38  ;;  %v876_v19 = vcombine.high %v214_v12, %v214_v12  ;;  %v316_v26 = vld [vmem:[%s3796_s2 + $0x308] sm:$0xff]  ;;  %v371_v51 = vld [vmem:[%s3796_s2 + $0x4c0] sm:$0xff]  ;;  %v434_v54 = vld [vmem:[%s3796_s2 + $0x6b8] sm:$0xff] }
  0x2e   :  { %1095 = vmatpush2.msra.mxu1 %v335_v31  ;;  %1025 = vmatprep.subr.mxu0 %v270_v33  ;;  %v251_v31 = vld [vmem:[%s3796_s2 + $0x100] sm:$0xff]  ;;  %v372_v49 = vld [vmem:[%s3796_s2 + $0x4c8] sm:$0xff]  ;;  %v366_v61 = vld [vmem:[%s3796_s2 + $0x498] sm:$0xff] }
  0x2f   :  { %1096 = vmatprep.subr.mxu1 %v334_v34  ;;  %1026 = vmatpush2.msra.mxu0 %v269_v35  ;;  %v890_v24 = vrot.slane %v876_v19, %v2036_v38  ;;  %v891_v30 = vcombine.high %v883_v18, %v883_v18  ;;  %v315_v33 = vld [vmem:[%s3796_s2 + $0x300] sm:$0xff]  ;;  %v378_v35 = vld [vmem:[%s3796_s2 + $0x4f8] sm:$0xff]  ;;  %v436_v50 = vld [vmem:[%s3796_s2 + $0x6c8] sm:$0xff] }
  0x30   :  { %1097 = vmatpush2.msra.mxu1 %v333_v36  ;;  %1027 = vmatprep.subr.mxu0 %v268_v39  ;;  %v442_v36 = vld [vmem:[%s3796_s2 + $0x6f8] sm:$0xff]  ;;  %v377_v39 = vld [vmem:[%s3796_s2 + $0x4f0] sm:$0xff]  ;;  %v368_v57 = vld [vmem:[%s3796_s2 + $0x4a8] sm:$0xff] }
  0x31   :  { %1098 = vmatprep.subr.mxu1 %v332_v40  ;;  %1028 = vmatpush2.msra.mxu0 %v267_v44  ;;  %v892_v34 = vcombine.high %v890_v24, %v890_v24  ;;  %v441_v40 = vld [vmem:[%s3796_s2 + $0x6f0] sm:$0xff]  ;;  %v439_v44 = vld [vmem:[%s3796_s2 + $0x6e0] sm:$0xff]  ;;  %v428_v2 = vld [vmem:[%s3796_s2 + $0x688] sm:$0xff] }
  0x32   :  { %1099 = vmatpush2.msra.mxu1 %v331_v45  ;;  %1029 = vmatprep.subr.mxu0 %v266_v46  ;;  %v374_v45 = vld [vmem:[%s3796_s2 + $0x4d8] sm:$0xff]  ;;  %v431_v60 = vld [vmem:[%s3796_s2 + $0x6a0] sm:$0xff]  ;;  %v361_v7 = vld [vmem:[%s3796_s2 + $0x470] sm:$0xff] }
  0x33   :  { %1100 = vmatprep.subr.mxu1 %v330_v48  ;;  %1030 = vmatpush2.msra.mxu0 %v265_v52  ;;  %v438_v46 = vld [vmem:[%s3796_s2 + $0x6d8] sm:$0xff]  ;;  %v437_v48 = vld [vmem:[%s3796_s2 + $0x6d0] sm:$0xff]  ;;  %v435_v52 = vld [vmem:[%s3796_s2 + $0x6c0] sm:$0xff] }
  0x34   :  { %1101 = vmatpush2.msra.mxu1 %v329_v53  ;;  %1031 = vmatprep.subr.mxu0 %v264_v55  ;;  %v370_v53 = vld [vmem:[%s3796_s2 + $0x4b8] sm:$0xff]  ;;  %v369_v55 = vld [vmem:[%s3796_s2 + $0x4b0] sm:$0xff]  ;;  %v423_v12 = vld [vmem:[%s3796_s2 + $0x660] sm:$0xff] }
  0x35   :  { %1102 = vmatprep.subr.mxu1 %v328_v56  ;;  %1032 = vmatpush2.msra.mxu0 %v263_v58  ;;  %v433_v56 = vld [vmem:[%s3796_s2 + $0x6b0] sm:$0xff]  ;;  %v432_v58 = vld [vmem:[%s3796_s2 + $0x6a8] sm:$0xff] }
  0x36   :  { %1103 = vmatpush2.msra.mxu1 %v327_v59  ;;  %1033 = vmatprep.subr.mxu0 %v262_v62  ;;  %v367_v59 = vld [vmem:[%s3796_s2 + $0x4a0] sm:$0xff]  ;;  %v430_v62 = vld [vmem:[%s3796_s2 + $0x698] sm:$0xff]  ;;  %v420_v19 = vld [vmem:[%s3796_s2 + $0x648] sm:$0xff] }
  0x37   :  { %1104 = vmatprep.subr.mxu1 %v326_v63  ;;  %1034 = vmatpush2.msra.mxu0 %v261_v0  ;;  %v365_v63 = vld [vmem:[%s3796_s2 + $0x490] sm:$0xff] }
  0x38   :  { %1105 = vmatpush2.msra.mxu1 %v325_v1  ;;  %1035 = vmatprep.subr.mxu0 %v260_v3  ;;  %v429_v0 = vld [vmem:[%s3796_s2 + $0x690] sm:$0xff]  ;;  %v364_v1 = vld [vmem:[%s3796_s2 + $0x488] sm:$0xff]  ;;  %v363_v3 = vld [vmem:[%s3796_s2 + $0x480] sm:$0xff] }
  0x39   :  { %1106 = vmatprep.subr.mxu1 %v324_v4  ;;  %1036 = vmatpush2.msra.mxu0 %v259_v5  ;;  %v427_v4 = vld [vmem:[%s3796_s2 + $0x680] sm:$0xff]  ;;  %v362_v5 = vld [vmem:[%s3796_s2 + $0x478] sm:$0xff] }
  0x3a   :  { %1107 = vmatpush2.msra.mxu1 %v323_v6  ;;  %1037 = vmatprep.subr.mxu0 %v258_v8  ;;  %v426_v6 = vld [vmem:[%s3796_s2 + $0x678] sm:$0xff]  ;;  %v425_v8 = vld [vmem:[%s3796_s2 + $0x670] sm:$0xff] }
  0x3b   :  { %1108 = vmatprep.subr.mxu1 %v322_v9  ;;  %1038 = vmatpush2.msra.mxu0 %v257_v10  ;;  %v360_v9 = vld [vmem:[%s3796_s2 + $0x468] sm:$0xff] }
  0x3c   :  { %1109 = vmatpush2.msra.mxu1 %v321_v11  ;;  %1039 = vmatprep.subr.mxu0 %v256_v13  ;;  %v424_v10 = vld [vmem:[%s3796_s2 + $0x668] sm:$0xff]  ;;  %v359_v11 = vld [vmem:[%s3796_s2 + $0x460] sm:$0xff]  ;;  %v358_v13 = vld [vmem:[%s3796_s2 + $0x458] sm:$0xff] }
  0x3d   :  { %1110 = vmatprep.subr.mxu1 %v320_v14  ;;  %1040 = vmatpush2.msra.mxu0 %v255_v15  ;;  %v422_v14 = vld [vmem:[%s3796_s2 + $0x658] sm:$0xff]  ;;  %v357_v15 = vld [vmem:[%s3796_s2 + $0x450] sm:$0xff] }
  0x3e   :  { %1111 = vmatpush2.msra.mxu1 %v319_v16  ;;  %1041 = vmatprep.subr.mxu0 %v254_v20  ;;  %v421_v16 = vld [vmem:[%s3796_s2 + $0x650] sm:$0xff]  ;;  %v355_v20 = vld [vmem:[%s3796_s2 + $0x440] sm:$0xff] }
  0x3f   :  { %1112 = vmatprep.subr.mxu1 %v318_v21  ;;  %1042 = vmatpush2.msra.mxu0 %v253_v22  ;;  %v419_v21 = vld [vmem:[%s3796_s2 + $0x640] sm:$0xff]  ;;  %v354_v22 = vld [vmem:[%s3796_s2 + $0x438] sm:$0xff] }
  0x40   :  { %1113 = vmatpush2.msra.mxu1 %v317_v23  ;;  %1043 = vmatprep.subr.mxu0 %v252_v25  ;;  %v418_v23 = vld [vmem:[%s3796_s2 + $0x638] sm:$0xff]  ;;  %v417_v25 = vld [vmem:[%s3796_s2 + $0x630] sm:$0xff] }
  0x41   :  { %1114 = vmatprep.subr.mxu1 %v316_v26  ;;  %1044 = vmatpush2.msra.mxu0 %v251_v31  ;;  %v352_v26 = vld [vmem:[%s3796_s2 + $0x428] sm:$0xff]  ;;  %v351_v31 = vld [vmem:[%s3796_s2 + $0x420] sm:$0xff] }
  0x42   :  { %1045 = vmatprep.mubr.f32.mxu0 %v891_v30  ;;  %1115 = vmatpush2.msra.mxu1 %v315_v33  ;;  %v416_v30 = vld [vmem:[%s3796_s2 + $0x628] sm:$0xff]  ;;  %v415_v33 = vld [vmem:[%s3796_s2 + $0x620] sm:$0xff] }
  0x43   :  { %1046 = vmatmul.mubr.f32.vlgmr.msra.gmra.mxu0 %v883_v18  ;;  %1116 = vmatprep.mubr.f32.mxu1 %v892_v34  ;;  %v356_v18 = vld [vmem:[%s3796_s2 + $0x448] sm:$0xff]  ;;  %v57_v34 = vsub.s32 4, %v1974_v17 }
  0x44   :  { %1123 = vmatprep.subr.mxu0 %v378_v35  ;;  %1194 = vmatprep.subr.mxu1 %v442_v36  ;;  %v350_v35 = vld [vmem:[%s3796_s2 + $0x418] sm:$0xff] }
  0x45   :  { %1117 = vmatmul.mubr.f32.vlgmr.msra.gmra.mxu1 %v890_v24  ;;  %1124 = vmatpush1.msra.mxu0 %v377_v39  ;;  %v353_v24 = vld [vmem:[%s3796_s2 + $0x430] sm:$0xff]  ;;  %v414_v36 = vld [vmem:[%s3796_s2 + $0x618] sm:$0xff]  ;;  %v61_v39 = vsub.s32 5, %v1974_v17 }
  0x46   :  { %1195 = vmatpush1.msra.mxu1 %v441_v40  ;;  %1125 = vmatprep.subr.mxu0 %v376_v41  ;;  %v65_v40 = vsub.s32 6, %v1974_v17  ;;  %v69_v41 = vsub.s32 7, %v1974_v17  ;;  %v728_v17 = vld [vmem:[%s3796_s2 + $0xfe8] sm:$0xff] }
  0x47   :  { %1196 = vmatprep.subr.mxu1 %v440_v42  ;;  %1126 = vmatpush1.msra.mxu0 %v375_v43  ;;  %v349_v42 = vld [vmem:[%s3796_s2 + $0x410] sm:$0xff] }
  0x48   :  { %1197 = vmatpush1.msra.mxu1 %v439_v44  ;;  %1127 = vmatprep.subr.mxu0 %v374_v45  ;;  %v413_v43 = vld [vmem:[%s3796_s2 + $0x610] sm:$0xff]  ;;  %v348_v44 = vld [vmem:[%s3796_s2 + $0x408] sm:$0xff] }
  0x49   :  { %1198 = vmatprep.subr.mxu1 %v438_v46  ;;  %1128 = vmatpush1.msra.mxu0 %v373_v47  ;;  %v412_v45 = vld [vmem:[%s3796_s2 + $0x608] sm:$0xff]  ;;  %v347_v46 = vld [vmem:[%s3796_s2 + $0x400] sm:$0xff] }
  0x4a   :  { %1199 = vmatpush1.msra.mxu1 %v437_v48  ;;  %1129 = vmatprep.subr.mxu0 %v372_v49  ;;  %v411_v47 = vld [vmem:[%s3796_s2 + $0x600] sm:$0xff]  ;;  %v58_v48 = vrot.slane %v2033_v37, %v57_v34  ;;  %v410_v49 = vld [vmem:[%s3796_s2 + $0x5f8] sm:$0xff] }
  0x4b   :  { %1200 = vmatprep.subr.mxu1 %v436_v50  ;;  %1130 = vmatpush1.msra.mxu0 %v371_v51  ;;  %v474_v50 = vld [vmem:[%s3796_s2 + $0x7f8] sm:$0xff]  ;;  %v62_v51 = vrot.slane %v2033_v37, %v61_v39 }
  0x4c   :  { %1201 = vmatpush1.msra.mxu1 %v435_v52  ;;  %1131 = vmatprep.subr.mxu0 %v370_v53  ;;  %v66_v52 = vrot.slane %v2033_v37, %v65_v40  ;;  %v70_v53 = vrot.slane %v2033_v37, %v69_v41  ;;  %v472_v37 = vld [vmem:[%s3796_s2 + $0x7e8] sm:$0xff] }
  0x4d   :  { %1202 = vmatprep.subr.mxu1 %v434_v54  ;;  %1132 = vmatpush1.msra.mxu0 %v369_v55  ;;  %v409_v54 = vld [vmem:[%s3796_s2 + $0x5f0] sm:$0xff] }
  0x4e   :  { %1203 = vmatpush1.msra.mxu1 %v433_v56  ;;  %1133 = vmatprep.subr.mxu0 %v368_v57  ;;  %v473_v55 = vld [vmem:[%s3796_s2 + $0x7f0] sm:$0xff]  ;;  %v408_v56 = vld [vmem:[%s3796_s2 + $0x5e8] sm:$0xff]  ;;  %v407_v57 = vld [vmem:[%s3796_s2 + $0x5e0] sm:$0xff] }
  0x4f   :  { %1204 = vmatprep.subr.mxu1 %v432_v58  ;;  %1134 = vmatpush1.msra.mxu0 %v367_v59  ;;  %v471_v58 = vld [vmem:[%s3796_s2 + $0x7e0] sm:$0xff]  ;;  %v406_v59 = vld [vmem:[%s3796_s2 + $0x5d8] sm:$0xff] }
  0x50   :  { %1205 = vmatpush1.msra.mxu1 %v431_v60  ;;  %1135 = vmatprep.subr.mxu0 %v366_v61  ;;  %v470_v60 = vld [vmem:[%s3796_s2 + $0x7d8] sm:$0xff]  ;;  %v136_v61 = vcombine.low %v58_v48, %v62_v51  ;;  %v453_v51 = vld [vmem:[%s3796_s2 + $0x750] sm:$0xff] }
  0x51   :  { %1206 = vmatprep.subr.mxu1 %v430_v62  ;;  %1136 = vmatpush1.msra.mxu0 %v365_v63  ;;  %v137_v62 = vcombine.low %v66_v52, %v70_v53  ;;  %v405_v63 = vld [vmem:[%s3796_s2 + $0x5d0] sm:$0xff]  ;;  %v454_v48 = vld [vmem:[%s3796_s2 + $0x758] sm:$0xff]  ;;  %v388_v52 = vld [vmem:[%s3796_s2 + $0x548] sm:$0xff] }
  0x52   :  { %1207 = vmatpush1.msra.mxu1 %v429_v0  ;;  %1137 = vmatprep.subr.mxu0 %v364_v1  ;;  %v469_v0 = vld [vmem:[%s3796_s2 + $0x7d0] sm:$0xff]  ;;  %v404_v1 = vld [vmem:[%s3796_s2 + $0x5c8] sm:$0xff] }
  0x53   :  { %1208 = vmatprep.subr.mxu1 %v428_v2  ;;  %1138 = vmatpush1.msra.mxu0 %v363_v3  ;;  %v468_v2 = vld [vmem:[%s3796_s2 + $0x7c8] sm:$0xff]  ;;  %v403_v3 = vld [vmem:[%s3796_s2 + $0x5c0] sm:$0xff] }
  0x54   :  { %1209 = vmatpush1.msra.mxu1 %v427_v4  ;;  %1139 = vmatprep.subr.mxu0 %v362_v5  ;;  %v467_v4 = vld [vmem:[%s3796_s2 + $0x7c0] sm:$0xff]  ;;  %v402_v5 = vld [vmem:[%s3796_s2 + $0x5b8] sm:$0xff]  ;;  %v452_v53 = vld [vmem:[%s3796_s2 + $0x748] sm:$0xff] }
  0x55   :  { %1210 = vmatprep.subr.mxu1 %v426_v6  ;;  %1140 = vmatpush1.msra.mxu0 %v361_v7  ;;  %v466_v6 = vld [vmem:[%s3796_s2 + $0x7b8] sm:$0xff]  ;;  %v401_v7 = vld [vmem:[%s3796_s2 + $0x5b0] sm:$0xff] }
  0x56   :  { %1211 = vmatpush1.msra.mxu1 %v425_v8  ;;  %1141 = vmatprep.subr.mxu0 %v360_v9  ;;  %v144_v8 = vrot.slane %v136_v61, %v2036_v38  ;;  %v151_v9 = vrot.slane %v137_v62, %v2036_v38  ;;  %v448_v61 = vld [vmem:[%s3796_s2 + $0x728] sm:$0xff] }
  0x57   :  { %1212 = vmatprep.subr.mxu1 %v424_v10  ;;  %1142 = vmatpush1.msra.mxu0 %v359_v11  ;;  %v465_v10 = vld [vmem:[%s3796_s2 + $0x7b0] sm:$0xff]  ;;  %v18_v11 = vld [vmem:[%s3798_s0 + $0x8] sm:$0xff] }
  0x58   :  { %1213 = vmatpush1.msra.mxu1 %v423_v12  ;;  %1143 = vmatprep.subr.mxu0 %v358_v13  ;;  %v1708_v12 = vld [vmem:[%s3798_s0 + $0x30] sm:$0xff]  ;;  %v400_v13 = vld [vmem:[%s3796_s2 + $0x5a8] sm:$0xff] }
  0x59   :  { %1214 = vmatprep.subr.mxu1 %v422_v14  ;;  %1144 = vmatpush1.msra.mxu0 %v357_v15  ;;  %v464_v14 = vld [vmem:[%s3796_s2 + $0x7a8] sm:$0xff]  ;;  %v399_v15 = vld [vmem:[%s3796_s2 + $0x5a0] sm:$0xff] }
  0x5a   :  { %1215 = vmatpush1.msra.mxu1 %v421_v16  ;;  %1145 = vmatprep.subr.mxu0 %v356_v18  ;;  %v463_v16 = vld [vmem:[%s3796_s2 + $0x7a0] sm:$0xff]  ;;  %v398_v18 = vld [vmem:[%s3796_s2 + $0x598] sm:$0xff] }
  0x5b   :  { %1216 = vmatprep.subr.mxu1 %v420_v19  ;;  %1146 = vmatpush1.msra.mxu0 %v355_v20  ;;  %v462_v19 = vld [vmem:[%s3796_s2 + $0x798] sm:$0xff]  ;;  %v29_v20 = vadd.f32 %v1708_v12, %v18_v11 }
  0x5c   :  { %1217 = vmatpush1.msra.mxu1 %v419_v21  ;;  %1147 = vmatprep.subr.mxu0 %v354_v22  ;;  %v152_v21 = vcombine.low %v144_v8, %v151_v9  ;;  %v397_v22 = vld [vmem:[%s3796_s2 + $0x590] sm:$0xff]  ;;  %v379_v9 = vld [vmem:[%s3796_s2 + $0x500] sm:$0xff]  ;;  %v506_v12 = vld [vmem:[%s3796_s2 + $0x8f8] sm:$0xff] }
  0x5d   :  { %1218 = vmatprep.subr.mxu1 %v418_v23  ;;  %1148 = vmatpush1.msra.mxu0 %v353_v24  ;;  %v461_v23 = vld [vmem:[%s3796_s2 + $0x790] sm:$0xff]  ;;  %v396_v24 = vld [vmem:[%s3796_s2 + $0x588] sm:$0xff] }
  0x5e   :  { %1219 = vmatpush1.msra.mxu1 %v417_v25  ;;  %1149 = vmatprep.subr.mxu0 %v352_v26  ;;  %v460_v25 = vld [vmem:[%s3796_s2 + $0x788] sm:$0xff]  ;;  %v395_v26 = vld [vmem:[%s3796_s2 + $0x580] sm:$0xff] }
  0x5f   :  { %1220 = vmatprep.subr.mxu1 %v416_v30  ;;  %1150 = vmatpush1.msra.mxu0 %v351_v31  ;;  %v459_v30 = vld [vmem:[%s3796_s2 + $0x780] sm:$0xff]  ;;  %v394_v31 = vld [vmem:[%s3796_s2 + $0x578] sm:$0xff] }
  0x60   :  { %1221 = vmatpush1.msra.mxu1 %v415_v33  ;;  %1151 = vmatprep.subr.mxu0 %v350_v35  ;;  %v458_v33 = vld [vmem:[%s3796_s2 + $0x778] sm:$0xff]  ;;  %v210_v35 = vsub.f32 %v29_v20, %v152_v21  ;;  %v567_v20 = vld [vmem:[%s3796_s2 + $0xae0] sm:$0xff] }
  0x61   :  { %1222 = vmatprep.subr.mxu1 %v414_v36  ;;  %1152 = vmatpush1.msra.mxu0 %v349_v42  ;;  %v393_v36 = vld [vmem:[%s3796_s2 + $0x570] sm:$0xff]  ;;  %v502_v21 = vld [vmem:[%s3796_s2 + $0x8d8] sm:$0xff] }
  0x62   :  { %1223 = vmatpush1.msra.mxu1 %v413_v43  ;;  %1153 = vmatprep.subr.mxu0 %v348_v44  ;;  %v457_v42 = vld [vmem:[%s3796_s2 + $0x770] sm:$0xff]  ;;  %v392_v43 = vld [vmem:[%s3796_s2 + $0x568] sm:$0xff] }
  0x63   :  { %1224 = vmatprep.subr.mxu1 %v412_v45  ;;  %1154 = vmatpush1.msra.mxu0 %v347_v46  ;;  %v456_v44 = vld [vmem:[%s3796_s2 + $0x768] sm:$0xff]  ;;  %v391_v45 = vld [vmem:[%s3796_s2 + $0x560] sm:$0xff] }
  0x64   :  { %1225 = vmatpush1.msra.mxu1 %v411_v47  ;;  %1155 = vmatprep.subr.mxu0 %v410_v49  ;;  %v455_v46 = vld [vmem:[%s3796_s2 + $0x760] sm:$0xff]  ;;  %v390_v47 = vld [vmem:[%s3796_s2 + $0x558] sm:$0xff]  ;;  %v215_v49 = vmul.f32 0.015625, %v210_v35 }
  0x65   :  { %1226 = vmatprep.subr.mxu1 %v474_v50  ;;  %1156 = vmatpush2.msra.mxu0 %v409_v54  ;;  %v389_v50 = vld [vmem:[%s3796_s2 + $0x550] sm:$0xff]  ;;  %v387_v54 = vld [vmem:[%s3796_s2 + $0x540] sm:$0xff]  ;;  %v562_v35 = vld [vmem:[%s3796_s2 + $0xab8] sm:$0xff] }
  0x66   :  { %1227 = vmatpush2.msra.mxu1 %v473_v55  ;;  %1157 = vmatprep.subr.mxu0 %v408_v56  ;;  %v451_v55 = vld [vmem:[%s3796_s2 + $0x740] sm:$0xff]  ;;  %v386_v56 = vld [vmem:[%s3796_s2 + $0x538] sm:$0xff]  ;;  %v900_v62 = vrot.slane %v215_v49, %v2036_v38 }
  0x67   :  { %1228 = vmatprep.subr.mxu1 %v472_v37  ;;  %1158 = vmatpush2.msra.mxu0 %v407_v57  ;;  %v450_v37 = vld [vmem:[%s3796_s2 + $0x738] sm:$0xff]  ;;  %v893_v57 = vcombine.high %v215_v49, %v215_v49  ;;  %v493_v49 = vld [vmem:[%s3796_s2 + $0x890] sm:$0xff] }
  0x68   :  { %1229 = vmatpush2.msra.mxu1 %v471_v58  ;;  %1159 = vmatprep.subr.mxu0 %v406_v59  ;;  %v385_v58 = vld [vmem:[%s3796_s2 + $0x530] sm:$0xff]  ;;  %v908_v8 = vcombine.high %v900_v62, %v900_v62 }
  0x69   :  { %1230 = vmatprep.subr.mxu1 %v470_v60  ;;  %1160 = vmatpush2.msra.mxu0 %v405_v63  ;;  %v449_v59 = vld [vmem:[%s3796_s2 + $0x730] sm:$0xff]  ;;  %v384_v60 = vld [vmem:[%s3796_s2 + $0x528] sm:$0xff]  ;;  %v383_v63 = vld [vmem:[%s3796_s2 + $0x520] sm:$0xff] }
  0x6a   :  { %1231 = vmatpush2.msra.mxu1 %v469_v0  ;;  %1161 = vmatprep.subr.mxu0 %v404_v1  ;;  %v447_v0 = vld [vmem:[%s3796_s2 + $0x720] sm:$0xff]  ;;  %v382_v1 = vld [vmem:[%s3796_s2 + $0x518] sm:$0xff] }
  0x6b   :  { %1232 = vmatprep.subr.mxu1 %v468_v2  ;;  %1162 = vmatpush2.msra.mxu0 %v403_v3  ;;  %v446_v2 = vld [vmem:[%s3796_s2 + $0x718] sm:$0xff]  ;;  %v907_v3 = vrot.slane %v893_v57, %v2036_v38  ;;  %v553_v57 = vld [vmem:[%s3796_s2 + $0xa70] sm:$0xff] }
  0x6c   :  { %1233 = vmatpush2.msra.mxu1 %v467_v4  ;;  %1163 = vmatprep.subr.mxu0 %v402_v5  ;;  %v381_v4 = vld [vmem:[%s3796_s2 + $0x510] sm:$0xff] }
  0x6d   :  { %1234 = vmatprep.subr.mxu1 %v466_v6  ;;  %1164 = vmatpush2.msra.mxu0 %v401_v7  ;;  %v445_v5 = vld [vmem:[%s3796_s2 + $0x710] sm:$0xff]  ;;  %v380_v6 = vld [vmem:[%s3796_s2 + $0x508] sm:$0xff]  ;;  %v909_v11 = vcombine.high %v907_v3, %v907_v3 }
  0x6e   :  { %1235 = vmatpush2.msra.mxu1 %v465_v10  ;;  %1165 = vmatprep.subr.mxu0 %v400_v13  ;;  %v444_v7 = vld [vmem:[%s3796_s2 + $0x708] sm:$0xff]  ;;  %v443_v10 = vld [vmem:[%s3796_s2 + $0x700] sm:$0xff]  ;;  %v570_v13 = vld [vmem:[%s3796_s2 + $0xaf8] sm:$0xff] }
  0x6f   :  { %1236 = vmatprep.subr.mxu1 %v464_v14  ;;  %1166 = vmatpush2.msra.mxu0 %v399_v15  ;;  %v505_v14 = vld [vmem:[%s3796_s2 + $0x8f0] sm:$0xff] }
  0x70   :  { %1237 = vmatpush2.msra.mxu1 %v463_v16  ;;  %1167 = vmatprep.subr.mxu0 %v398_v18  ;;  %v569_v15 = vld [vmem:[%s3796_s2 + $0xaf0] sm:$0xff]  ;;  %v504_v16 = vld [vmem:[%s3796_s2 + $0x8e8] sm:$0xff] }
  0x71   :  { %1238 = vmatprep.subr.mxu1 %v462_v19  ;;  %1168 = vmatpush2.msra.mxu0 %v397_v22  ;;  %v568_v18 = vld [vmem:[%s3796_s2 + $0xae8] sm:$0xff]  ;;  %v503_v19 = vld [vmem:[%s3796_s2 + $0x8e0] sm:$0xff]  ;;  %v566_v22 = vld [vmem:[%s3796_s2 + $0xad8] sm:$0xff] }
  0x72   :  { %1239 = vmatpush2.msra.mxu1 %v461_v23  ;;  %1169 = vmatprep.subr.mxu0 %v396_v24  ;;  %v501_v23 = vld [vmem:[%s3796_s2 + $0x8d0] sm:$0xff] }
  0x73   :  { %1240 = vmatprep.subr.mxu1 %v460_v25  ;;  %1170 = vmatpush2.msra.mxu0 %v395_v26  ;;  %v565_v24 = vld [vmem:[%s3796_s2 + $0xad0] sm:$0xff]  ;;  %v500_v25 = vld [vmem:[%s3796_s2 + $0x8c8] sm:$0xff] }
  0x74   :  { %1241 = vmatpush2.msra.mxu1 %v459_v30  ;;  %1171 = vmatprep.subr.mxu0 %v394_v31  ;;  %v564_v26 = vld [vmem:[%s3796_s2 + $0xac8] sm:$0xff]  ;;  %v499_v30 = vld [vmem:[%s3796_s2 + $0x8c0] sm:$0xff] }
  0x75   :  { %1242 = vmatprep.subr.mxu1 %v458_v33  ;;  %1172 = vmatpush2.msra.mxu0 %v393_v36  ;;  %v563_v31 = vld [vmem:[%s3796_s2 + $0xac0] sm:$0xff]  ;;  %v498_v33 = vld [vmem:[%s3796_s2 + $0x8b8] sm:$0xff]  ;;  %v497_v36 = vld [vmem:[%s3796_s2 + $0x8b0] sm:$0xff] }
  0x76   :  { %1243 = vmatpush2.msra.mxu1 %v457_v42  ;;  %1173 = vmatprep.subr.mxu0 %v392_v43  ;;  %v561_v42 = vld [vmem:[%s3796_s2 + $0xab0] sm:$0xff]  ;;  %v496_v43 = vld [vmem:[%s3796_s2 + $0x8a8] sm:$0xff] }
  0x77   :  { %1244 = vmatprep.subr.mxu1 %v456_v44  ;;  %1174 = vmatpush2.msra.mxu0 %v391_v45  ;;  %v560_v44 = vld [vmem:[%s3796_s2 + $0xaa8] sm:$0xff]  ;;  %v495_v45 = vld [vmem:[%s3796_s2 + $0x8a0] sm:$0xff] }
  0x78   :  { %1245 = vmatpush2.msra.mxu1 %v455_v46  ;;  %1175 = vmatprep.subr.mxu0 %v390_v47  ;;  %v559_v46 = vld [vmem:[%s3796_s2 + $0xaa0] sm:$0xff]  ;;  %v494_v47 = vld [vmem:[%s3796_s2 + $0x898] sm:$0xff] }
  0x79   :  { %1246 = vmatprep.subr.mxu1 %v454_v48  ;;  %1176 = vmatpush2.msra.mxu0 %v389_v50  ;;  %v558_v48 = vld [vmem:[%s3796_s2 + $0xa98] sm:$0xff]  ;;  %v557_v50 = vld [vmem:[%s3796_s2 + $0xa90] sm:$0xff] }
  0x7a   :  { %1247 = vmatpush2.msra.mxu1 %v453_v51  ;;  %1177 = vmatprep.subr.mxu0 %v388_v52  ;;  %v492_v51 = vld [vmem:[%s3796_s2 + $0x888] sm:$0xff] }
  0x7b   :  { %1248 = vmatprep.subr.mxu1 %v452_v53  ;;  %1178 = vmatpush2.msra.mxu0 %v387_v54  ;;  %v556_v52 = vld [vmem:[%s3796_s2 + $0xa88] sm:$0xff]  ;;  %v491_v53 = vld [vmem:[%s3796_s2 + $0x880] sm:$0xff] }
  0x7c   :  { %1249 = vmatpush2.msra.mxu1 %v451_v55  ;;  %1179 = vmatprep.subr.mxu0 %v386_v56  ;;  %v555_v54 = vld [vmem:[%s3796_s2 + $0xa80] sm:$0xff]  ;;  %v490_v55 = vld [vmem:[%s3796_s2 + $0x878] sm:$0xff] }
  0x7d   :  { %1250 = vmatprep.subr.mxu1 %v450_v37  ;;  %1180 = vmatpush2.msra.mxu0 %v385_v58  ;;  %v554_v56 = vld [vmem:[%s3796_s2 + $0xa78] sm:$0xff]  ;;  %v489_v37 = vld [vmem:[%s3796_s2 + $0x870] sm:$0xff]  ;;  %v488_v58 = vld [vmem:[%s3796_s2 + $0x868] sm:$0xff] }
  0x7e   :  { %1251 = vmatpush2.msra.mxu1 %v449_v59  ;;  %1181 = vmatprep.subr.mxu0 %v384_v60  ;;  %v552_v59 = vld [vmem:[%s3796_s2 + $0xa68] sm:$0xff]  ;;  %v487_v60 = vld [vmem:[%s3796_s2 + $0x860] sm:$0xff] }
  0x7f   :  { %1252 = vmatprep.subr.mxu1 %v448_v61  ;;  %1182 = vmatpush2.msra.mxu0 %v383_v63  ;;  %v551_v61 = vld [vmem:[%s3796_s2 + $0xa60] sm:$0xff]  ;;  %v550_v63 = vld [vmem:[%s3796_s2 + $0xa58] sm:$0xff] }
  0x80   :  { %1253 = vmatpush2.msra.mxu1 %v447_v0  ;;  %1183 = vmatprep.subr.mxu0 %v382_v1  ;;  %v485_v0 = vld [vmem:[%s3796_s2 + $0x850] sm:$0xff] }
  0x81   :  { %1254 = vmatprep.subr.mxu1 %v446_v2  ;;  %1184 = vmatpush2.msra.mxu0 %v381_v4  ;;  %v549_v1 = vld [vmem:[%s3796_s2 + $0xa50] sm:$0xff]  ;;  %v484_v2 = vld [vmem:[%s3796_s2 + $0x848] sm:$0xff]  ;;  %v483_v4 = vld [vmem:[%s3796_s2 + $0x840] sm:$0xff] }
  0x82   :  { %1255 = vmatpush2.msra.mxu1 %v445_v5  ;;  %1185 = vmatprep.subr.mxu0 %v380_v6  ;;  %v547_v5 = vld [vmem:[%s3796_s2 + $0xa40] sm:$0xff]  ;;  %v482_v6 = vld [vmem:[%s3796_s2 + $0x838] sm:$0xff] }
  0x83   :  { %1256 = vmatprep.subr.mxu1 %v444_v7  ;;  %1186 = vmatpush2.msra.mxu0 %v379_v9  ;;  %v546_v7 = vld [vmem:[%s3796_s2 + $0xa38] sm:$0xff]  ;;  %v545_v9 = vld [vmem:[%s3796_s2 + $0xa30] sm:$0xff] }
  0x84   :  { %1187 = vmatprep.mubr.f32.mxu0 %v908_v8  ;;  %1257 = vmatpush2.msra.mxu1 %v443_v10  ;;  %v481_v8 = vld [vmem:[%s3796_s2 + $0x830] sm:$0xff]  ;;  %v480_v10 = vld [vmem:[%s3796_s2 + $0x828] sm:$0xff] }
  0x85   :  { %1188 = vmatmul.mubr.f32.vlgmr.msra.gmra.mxu0 %v900_v62  ;;  %1258 = vmatprep.mubr.f32.mxu1 %v909_v11  ;;  %v486_v62 = vld [vmem:[%s3796_s2 + $0x858] sm:$0xff]  ;;  %v544_v11 = vld [vmem:[%s3796_s2 + $0xa28] sm:$0xff] }
  0x86   :  { %1265 = vmatprep.subr.mxu0 %v506_v12  ;;  %1336 = vmatprep.subr.mxu1 %v570_v13  ;;  %v479_v12 = vld [vmem:[%s3796_s2 + $0x820] sm:$0xff] }
  0x87   :  { %1259 = vmatmul.mubr.f32.vlgmr.msra.gmra.mxu1 %v907_v3  ;;  %1266 = vmatpush1.msra.mxu0 %v505_v14  ;;  %v548_v3 = vld [vmem:[%s3796_s2 + $0xa48] sm:$0xff]  ;;  %v543_v13 = vld [vmem:[%s3796_s2 + $0xa20] sm:$0xff]  ;;  %v478_v14 = vld [vmem:[%s3796_s2 + $0x818] sm:$0xff] }
  0x88   :  { %1337 = vmatpush1.msra.mxu1 %v569_v15  ;;  %1267 = vmatprep.subr.mxu0 %v504_v16  ;;  %v542_v15 = vld [vmem:[%s3796_s2 + $0xa18] sm:$0xff]  ;;  %v2751_v16 = vld [vmem:[%s3797_s1 + $0x8] sm:$0xff] }
  0x89   :  { %1338 = vmatprep.subr.mxu1 %v568_v18  ;;  %1268 = vmatpush1.msra.mxu0 %v503_v19  ;;  %v477_v18 = vld [vmem:[%s3796_s2 + $0x810] sm:$0xff] }
  0x8a   :  { %1339 = vmatpush1.msra.mxu1 %v567_v20  ;;  %1269 = vmatprep.subr.mxu0 %v502_v21  ;;  %v541_v19 = vld [vmem:[%s3796_s2 + $0xa10] sm:$0xff]  ;;  %v476_v20 = vld [vmem:[%s3796_s2 + $0x808] sm:$0xff] }
  0x8b   :  { %1340 = vmatprep.subr.mxu1 %v566_v22  ;;  %1270 = vmatpush1.msra.mxu0 %v501_v23  ;;  %v540_v21 = vld [vmem:[%s3796_s2 + $0xa08] sm:$0xff]  ;;  %v475_v22 = vld [vmem:[%s3796_s2 + $0x800] sm:$0xff] }
  0x8c   :  { %1341 = vmatpush1.msra.mxu1 %v565_v24  ;;  %1271 = vmatprep.subr.mxu0 %v500_v25  ;;  %v539_v23 = vld [vmem:[%s3796_s2 + $0xa00] sm:$0xff]  ;;  %v74_v24 = vrot.slane %v2751_v16, %v2001_v27  ;;  %v538_v25 = vld [vmem:[%s3796_s2 + $0x9f8] sm:$0xff] }
  0x8d   :  { %1342 = vmatprep.subr.mxu1 %v564_v26  ;;  %1272 = vmatpush1.msra.mxu0 %v499_v30  ;;  %v602_v26 = vld [vmem:[%s3796_s2 + $0xbf8] sm:$0xff]  ;;  %v78_v30 = vrot.slane %v2751_v16, %v2004_v28 }
  0x8e   :  { %1343 = vmatpush1.msra.mxu1 %v563_v31  ;;  %1273 = vmatprep.subr.mxu0 %v498_v33  ;;  %v82_v31 = vrot.slane %v2751_v16, %v2007_v29  ;;  %v86_v33 = vrot.slane %v2751_v16, %v2016_v32 }
  0x8f   :  { %1344 = vmatprep.subr.mxu1 %v562_v35  ;;  %1274 = vmatpush1.msra.mxu0 %v497_v36  ;;  %v537_v35 = vld [vmem:[%s3796_s2 + $0x9f0] sm:$0xff] }
  0x90   :  { %1345 = vmatpush1.msra.mxu1 %v561_v42  ;;  %1275 = vmatprep.subr.mxu0 %v496_v43  ;;  %v601_v36 = vld [vmem:[%s3796_s2 + $0xbf0] sm:$0xff]  ;;  %v536_v42 = vld [vmem:[%s3796_s2 + $0x9e8] sm:$0xff] }
  0x91   :  { %1346 = vmatprep.subr.mxu1 %v560_v44  ;;  %1276 = vmatpush1.msra.mxu0 %v495_v45  ;;  %v600_v43 = vld [vmem:[%s3796_s2 + $0xbe8] sm:$0xff]  ;;  %v535_v44 = vld [vmem:[%s3796_s2 + $0x9e0] sm:$0xff] }
  0x92   :  { %1347 = vmatpush1.msra.mxu1 %v559_v46  ;;  %1277 = vmatprep.subr.mxu0 %v494_v47  ;;  %v599_v45 = vld [vmem:[%s3796_s2 + $0xbe0] sm:$0xff]  ;;  %v534_v46 = vld [vmem:[%s3796_s2 + $0x9d8] sm:$0xff] }
  0x93   :  { %1348 = vmatprep.subr.mxu1 %v558_v48  ;;  %1278 = vmatpush1.msra.mxu0 %v493_v49  ;;  %v598_v47 = vld [vmem:[%s3796_s2 + $0xbd8] sm:$0xff]  ;;  %v153_v48 = vcombine.low %v74_v24, %v78_v30  ;;  %v154_v49 = vcombine.low %v82_v31, %v86_v33  ;;  %v517_v30 = vld [vmem:[%s3796_s2 + $0x950] sm:$0xff]  ;;  %v516_v33 = vld [vmem:[%s3796_s2 + $0x948] sm:$0xff] }
  0x94   :  { %1349 = vmatpush1.msra.mxu1 %v557_v50  ;;  %1279 = vmatprep.subr.mxu0 %v492_v51  ;;  %v533_v50 = vld [vmem:[%s3796_s2 + $0x9d0] sm:$0xff]  ;;  %v518_v24 = vld [vmem:[%s3796_s2 + $0x958] sm:$0xff] }
  0x95   :  { %1350 = vmatprep.subr.mxu1 %v556_v52  ;;  %1280 = vmatpush1.msra.mxu0 %v491_v53  ;;  %v597_v51 = vld [vmem:[%s3796_s2 + $0xbd0] sm:$0xff]  ;;  %v532_v52 = vld [vmem:[%s3796_s2 + $0x9c8] sm:$0xff] }
  0x96   :  { %1351 = vmatpush1.msra.mxu1 %v555_v54  ;;  %1281 = vmatprep.subr.mxu0 %v490_v55  ;;  %v596_v53 = vld [vmem:[%s3796_s2 + $0xbc8] sm:$0xff]  ;;  %v531_v54 = vld [vmem:[%s3796_s2 + $0x9c0] sm:$0xff]  ;;  %v581_v31 = vld [vmem:[%s3796_s2 + $0xb50] sm:$0xff] }
  0x97   :  { %1352 = vmatprep.subr.mxu1 %v554_v56  ;;  %1282 = vmatpush1.msra.mxu0 %v489_v37  ;;  %v595_v55 = vld [vmem:[%s3796_s2 + $0xbc0] sm:$0xff]  ;;  %v530_v56 = vld [vmem:[%s3796_s2 + $0x9b8] sm:$0xff] }
  0x98   :  { %1353 = vmatpush1.msra.mxu1 %v553_v57  ;;  %1283 = vmatprep.subr.mxu0 %v488_v58  ;;  %v594_v37 = vld [vmem:[%s3796_s2 + $0xbb8] sm:$0xff]  ;;  %v529_v57 = vld [vmem:[%s3796_s2 + $0x9b0] sm:$0xff]  ;;  %v161_v58 = vrot.slane %v153_v48, %v2036_v38  ;;  %v512_v48 = vld [vmem:[%s3796_s2 + $0x928] sm:$0xff] }
  0x99   :  { %1354 = vmatprep.subr.mxu1 %v552_v59  ;;  %1284 = vmatpush1.msra.mxu0 %v487_v60  ;;  %v168_v59 = vrot.slane %v154_v49, %v2036_v38  ;;  %v593_v60 = vld [vmem:[%s3796_s2 + $0xbb0] sm:$0xff]  ;;  %v576_v49 = vld [vmem:[%s3796_s2 + $0xb28] sm:$0xff] }
  0x9a   :  { %1355 = vmatpush1.msra.mxu1 %v551_v61  ;;  %1285 = vmatprep.subr.mxu0 %v486_v62  ;;  %v19_v61 = vld [vmem:[%s3798_s0 + $0x10] sm:$0xff]  ;;  %v1709_v62 = vld [vmem:[%s3798_s0 + $0x38] sm:$0xff] }
  0x9b   :  { %1356 = vmatprep.subr.mxu1 %v550_v63  ;;  %1286 = vmatpush1.msra.mxu0 %v485_v0  ;;  %v528_v63 = vld [vmem:[%s3796_s2 + $0x9a8] sm:$0xff] }
  0x9c   :  { %1357 = vmatpush1.msra.mxu1 %v549_v1  ;;  %1287 = vmatprep.subr.mxu0 %v484_v2  ;;  %v592_v0 = vld [vmem:[%s3796_s2 + $0xba8] sm:$0xff]  ;;  %v527_v1 = vld [vmem:[%s3796_s2 + $0x9a0] sm:$0xff] }
  0x9d   :  { %1358 = vmatprep.subr.mxu1 %v548_v3  ;;  %1288 = vmatpush1.msra.mxu0 %v483_v4  ;;  %v591_v2 = vld [vmem:[%s3796_s2 + $0xba0] sm:$0xff]  ;;  %v526_v3 = vld [vmem:[%s3796_s2 + $0x998] sm:$0xff] }
  0x9e   :  { %1359 = vmatpush1.msra.mxu1 %v547_v5  ;;  %1289 = vmatprep.subr.mxu0 %v482_v6  ;;  %v590_v4 = vld [vmem:[%s3796_s2 + $0xb98] sm:$0xff]  ;;  %v30_v5 = vadd.f32 %v1709_v62, %v19_v61  ;;  %v169_v6 = vcombine.low %v161_v58, %v168_v59  ;;  %v572_v58 = vld [vmem:[%s3796_s2 + $0xb08] sm:$0xff]  ;;  %v571_v61 = vld [vmem:[%s3796_s2 + $0xb00] sm:$0xff] }
  0x9f   :  { %1360 = vmatprep.subr.mxu1 %v546_v7  ;;  %1290 = vmatpush1.msra.mxu0 %v481_v8  ;;  %v525_v7 = vld [vmem:[%s3796_s2 + $0x990] sm:$0xff] }
  0xa0   :  { %1361 = vmatpush1.msra.mxu1 %v545_v9  ;;  %1291 = vmatprep.subr.mxu0 %v480_v10  ;;  %v589_v8 = vld [vmem:[%s3796_s2 + $0xb90] sm:$0xff]  ;;  %v524_v9 = vld [vmem:[%s3796_s2 + $0x988] sm:$0xff] }
  0xa1   :  { %1362 = vmatprep.subr.mxu1 %v544_v11  ;;  %1292 = vmatpush1.msra.mxu0 %v479_v12  ;;  %v588_v10 = vld [vmem:[%s3796_s2 + $0xb88] sm:$0xff]  ;;  %v523_v11 = vld [vmem:[%s3796_s2 + $0x980] sm:$0xff] }
  0xa2   :  { %1363 = vmatpush1.msra.mxu1 %v543_v13  ;;  %1293 = vmatprep.subr.mxu0 %v478_v14  ;;  %v587_v12 = vld [vmem:[%s3796_s2 + $0xb80] sm:$0xff]  ;;  %v522_v13 = vld [vmem:[%s3796_s2 + $0x978] sm:$0xff] }
  0xa3   :  { %1364 = vmatprep.subr.mxu1 %v542_v15  ;;  %1294 = vmatpush1.msra.mxu0 %v477_v18  ;;  %v586_v14 = vld [vmem:[%s3796_s2 + $0xb78] sm:$0xff]  ;;  %v211_v15 = vsub.f32 %v30_v5, %v169_v6  ;;  %v521_v18 = vld [vmem:[%s3796_s2 + $0x970] sm:$0xff]  ;;  %v631_v5 = vld [vmem:[%s3796_s2 + $0xce0] sm:$0xff] }
  0xa4   :  { %1365 = vmatpush1.msra.mxu1 %v541_v19  ;;  %1295 = vmatprep.subr.mxu0 %v476_v20  ;;  %v585_v19 = vld [vmem:[%s3796_s2 + $0xb70] sm:$0xff]  ;;  %v520_v20 = vld [vmem:[%s3796_s2 + $0x968] sm:$0xff]  ;;  %v695_v6 = vld [vmem:[%s3796_s2 + $0xee0] sm:$0xff] }
  0xa5   :  { %1366 = vmatprep.subr.mxu1 %v540_v21  ;;  %1296 = vmatpush1.msra.mxu0 %v475_v22  ;;  %v584_v21 = vld [vmem:[%s3796_s2 + $0xb68] sm:$0xff]  ;;  %v519_v22 = vld [vmem:[%s3796_s2 + $0x960] sm:$0xff] }
  0xa6   :  { %1367 = vmatpush1.msra.mxu1 %v539_v23  ;;  %1297 = vmatprep.subr.mxu0 %v538_v25  ;;  %v583_v23 = vld [vmem:[%s3796_s2 + $0xb60] sm:$0xff]  ;;  %v582_v25 = vld [vmem:[%s3796_s2 + $0xb58] sm:$0xff] }
  0xa7   :  { %1368 = vmatprep.subr.mxu1 %v602_v26  ;;  %1298 = vmatpush2.msra.mxu0 %v537_v35  ;;  %v216_v26 = vmul.f32 0.015625, %v211_v15  ;;  %v580_v35 = vld [vmem:[%s3796_s2 + $0xb48] sm:$0xff]  ;;  %v626_v15 = vld [vmem:[%s3796_s2 + $0xcb8] sm:$0xff] }
  0xa8   :  { %1369 = vmatpush2.msra.mxu1 %v601_v36  ;;  %1299 = vmatprep.subr.mxu0 %v536_v42  ;;  %v515_v36 = vld [vmem:[%s3796_s2 + $0x940] sm:$0xff] }
  0xa9   :  { %1370 = vmatprep.subr.mxu1 %v600_v43  ;;  %1300 = vmatpush2.msra.mxu0 %v535_v44  ;;  %v579_v42 = vld [vmem:[%s3796_s2 + $0xb40] sm:$0xff]  ;;  %v514_v43 = vld [vmem:[%s3796_s2 + $0x938] sm:$0xff] }
  0xaa   :  { %1371 = vmatpush2.msra.mxu1 %v599_v45  ;;  %1301 = vmatprep.subr.mxu0 %v534_v46  ;;  %v578_v44 = vld [vmem:[%s3796_s2 + $0xb38] sm:$0xff]  ;;  %v910_v45 = vcombine.high %v216_v26, %v216_v26  ;;  %v513_v46 = vld [vmem:[%s3796_s2 + $0x930] sm:$0xff] }
  0xab   :  { %1372 = vmatprep.subr.mxu1 %v598_v47  ;;  %1302 = vmatpush2.msra.mxu0 %v533_v50  ;;  %v577_v47 = vld [vmem:[%s3796_s2 + $0xb30] sm:$0xff]  ;;  %v917_v50 = vrot.slane %v216_v26, %v2036_v38  ;;  %v686_v26 = vld [vmem:[%s3796_s2 + $0xe98] sm:$0xff] }
  0xac   :  { %1373 = vmatpush2.msra.mxu1 %v597_v51  ;;  %1303 = vmatprep.subr.mxu0 %v532_v52  ;;  %v511_v51 = vld [vmem:[%s3796_s2 + $0x920] sm:$0xff] }
  0xad   :  { %1374 = vmatprep.subr.mxu1 %v596_v53  ;;  %1304 = vmatpush2.msra.mxu0 %v531_v54  ;;  %v575_v52 = vld [vmem:[%s3796_s2 + $0xb20] sm:$0xff]  ;;  %v510_v53 = vld [vmem:[%s3796_s2 + $0x918] sm:$0xff]  ;;  %v925_v59 = vcombine.high %v917_v50, %v917_v50 }
  0xae   :  { %1375 = vmatpush2.msra.mxu1 %v595_v55  ;;  %1305 = vmatprep.subr.mxu0 %v530_v56  ;;  %v574_v54 = vld [vmem:[%s3796_s2 + $0xb18] sm:$0xff]  ;;  %v924_v55 = vrot.slane %v910_v45, %v2036_v38  ;;  %v509_v56 = vld [vmem:[%s3796_s2 + $0x910] sm:$0xff] }
  0xaf   :  { %1376 = vmatprep.subr.mxu1 %v594_v37  ;;  %1306 = vmatpush2.msra.mxu0 %v529_v57  ;;  %v573_v37 = vld [vmem:[%s3796_s2 + $0xb10] sm:$0xff]  ;;  %v508_v57 = vld [vmem:[%s3796_s2 + $0x908] sm:$0xff] }
  0xb0   :  { %1377 = vmatpush2.msra.mxu1 %v593_v60  ;;  %1307 = vmatprep.subr.mxu0 %v528_v63  ;;  %v507_v60 = vld [vmem:[%s3796_s2 + $0x900] sm:$0xff]  ;;  %v926_v62 = vcombine.high %v924_v55, %v924_v55  ;;  %v634_v63 = vld [vmem:[%s3796_s2 + $0xcf8] sm:$0xff]  ;;  %v617_v45 = vld [vmem:[%s3796_s2 + $0xc70] sm:$0xff] }
  0xb1   :  { %1378 = vmatprep.subr.mxu1 %v592_v0  ;;  %1308 = vmatpush2.msra.mxu0 %v527_v1  ;;  %v698_v0 = vld [vmem:[%s3796_s2 + $0xef8] sm:$0xff]  ;;  %v633_v1 = vld [vmem:[%s3796_s2 + $0xcf0] sm:$0xff] }
  0xb2   :  { %1379 = vmatpush2.msra.mxu1 %v591_v2  ;;  %1309 = vmatprep.subr.mxu0 %v526_v3  ;;  %v697_v2 = vld [vmem:[%s3796_s2 + $0xef0] sm:$0xff]  ;;  %v632_v3 = vld [vmem:[%s3796_s2 + $0xce8] sm:$0xff] }
  0xb3   :  { %1380 = vmatprep.subr.mxu1 %v590_v4  ;;  %1310 = vmatpush2.msra.mxu0 %v525_v7  ;;  %v696_v4 = vld [vmem:[%s3796_s2 + $0xee8] sm:$0xff]  ;;  %v630_v7 = vld [vmem:[%s3796_s2 + $0xcd8] sm:$0xff] }
  0xb4   :  { %1381 = vmatpush2.msra.mxu1 %v589_v8  ;;  %1311 = vmatprep.subr.mxu0 %v524_v9  ;;  %v694_v8 = vld [vmem:[%s3796_s2 + $0xed8] sm:$0xff]  ;;  %v629_v9 = vld [vmem:[%s3796_s2 + $0xcd0] sm:$0xff] }
  0xb5   :  { %1382 = vmatprep.subr.mxu1 %v588_v10  ;;  %1312 = vmatpush2.msra.mxu0 %v523_v11  ;;  %v693_v10 = vld [vmem:[%s3796_s2 + $0xed0] sm:$0xff]  ;;  %v628_v11 = vld [vmem:[%s3796_s2 + $0xcc8] sm:$0xff] }
  0xb6   :  { %1383 = vmatpush2.msra.mxu1 %v587_v12  ;;  %1313 = vmatprep.subr.mxu0 %v522_v13  ;;  %v692_v12 = vld [vmem:[%s3796_s2 + $0xec8] sm:$0xff]  ;;  %v627_v13 = vld [vmem:[%s3796_s2 + $0xcc0] sm:$0xff] }
  0xb7   :  { %1384 = vmatprep.subr.mxu1 %v586_v14  ;;  %1314 = vmatpush2.msra.mxu0 %v521_v18  ;;  %v691_v14 = vld [vmem:[%s3796_s2 + $0xec0] sm:$0xff]  ;;  %v690_v18 = vld [vmem:[%s3796_s2 + $0xeb8] sm:$0xff] }
  0xb8   :  { %1385 = vmatpush2.msra.mxu1 %v585_v19  ;;  %1315 = vmatprep.subr.mxu0 %v520_v20  ;;  %v625_v19 = vld [vmem:[%s3796_s2 + $0xcb0] sm:$0xff] }
  0xb9   :  { %1386 = vmatprep.subr.mxu1 %v584_v21  ;;  %1316 = vmatpush2.msra.mxu0 %v519_v22  ;;  %v689_v20 = vld [vmem:[%s3796_s2 + $0xeb0] sm:$0xff]  ;;  %v624_v21 = vld [vmem:[%s3796_s2 + $0xca8] sm:$0xff] }
  0xba   :  { %1387 = vmatpush2.msra.mxu1 %v583_v23  ;;  %1317 = vmatprep.subr.mxu0 %v518_v24  ;;  %v688_v22 = vld [vmem:[%s3796_s2 + $0xea8] sm:$0xff]  ;;  %v623_v23 = vld [vmem:[%s3796_s2 + $0xca0] sm:$0xff] }
  0xbb   :  { %1388 = vmatprep.subr.mxu1 %v582_v25  ;;  %1318 = vmatpush2.msra.mxu0 %v517_v30  ;;  %v687_v24 = vld [vmem:[%s3796_s2 + $0xea0] sm:$0xff]  ;;  %v622_v25 = vld [vmem:[%s3796_s2 + $0xc98] sm:$0xff]  ;;  %v621_v30 = vld [vmem:[%s3796_s2 + $0xc90] sm:$0xff] }
  0xbc   :  { %1389 = vmatpush2.msra.mxu1 %v581_v31  ;;  %1319 = vmatprep.subr.mxu0 %v516_v33  ;;  %v685_v31 = vld [vmem:[%s3796_s2 + $0xe90] sm:$0xff]  ;;  %v620_v33 = vld [vmem:[%s3796_s2 + $0xc88] sm:$0xff] }
  0xbd   :  { %1390 = vmatprep.subr.mxu1 %v580_v35  ;;  %1320 = vmatpush2.msra.mxu0 %v515_v36  ;;  %v684_v35 = vld [vmem:[%s3796_s2 + $0xe88] sm:$0xff]  ;;  %v619_v36 = vld [vmem:[%s3796_s2 + $0xc80] sm:$0xff] }
  0xbe   :  { %1391 = vmatpush2.msra.mxu1 %v579_v42  ;;  %1321 = vmatprep.subr.mxu0 %v514_v43  ;;  %v683_v42 = vld [vmem:[%s3796_s2 + $0xe80] sm:$0xff]  ;;  %v618_v43 = vld [vmem:[%s3796_s2 + $0xc78] sm:$0xff] }
  0xbf   :  { %1392 = vmatprep.subr.mxu1 %v578_v44  ;;  %1322 = vmatpush2.msra.mxu0 %v513_v46  ;;  %v682_v44 = vld [vmem:[%s3796_s2 + $0xe78] sm:$0xff]  ;;  %v681_v46 = vld [vmem:[%s3796_s2 + $0xe70] sm:$0xff] }
  0xc0   :  { %1393 = vmatpush2.msra.mxu1 %v577_v47  ;;  %1323 = vmatprep.subr.mxu0 %v512_v48  ;;  %v616_v47 = vld [vmem:[%s3796_s2 + $0xc68] sm:$0xff] }
  0xc1   :  { %1394 = vmatprep.subr.mxu1 %v576_v49  ;;  %1324 = vmatpush2.msra.mxu0 %v511_v51  ;;  %v680_v48 = vld [vmem:[%s3796_s2 + $0xe68] sm:$0xff]  ;;  %v615_v49 = vld [vmem:[%s3796_s2 + $0xc60] sm:$0xff]  ;;  %v614_v51 = vld [vmem:[%s3796_s2 + $0xc58] sm:$0xff] }
  0xc2   :  { %1395 = vmatpush2.msra.mxu1 %v575_v52  ;;  %1325 = vmatprep.subr.mxu0 %v510_v53  ;;  %v678_v52 = vld [vmem:[%s3796_s2 + $0xe58] sm:$0xff]  ;;  %v613_v53 = vld [vmem:[%s3796_s2 + $0xc50] sm:$0xff] }
  0xc3   :  { %1396 = vmatprep.subr.mxu1 %v574_v54  ;;  %1326 = vmatpush2.msra.mxu0 %v509_v56  ;;  %v677_v54 = vld [vmem:[%s3796_s2 + $0xe50] sm:$0xff]  ;;  %v676_v56 = vld [vmem:[%s3796_s2 + $0xe48] sm:$0xff] }
  0xc4   :  { %1397 = vmatpush2.msra.mxu1 %v573_v37  ;;  %1327 = vmatprep.subr.mxu0 %v508_v57  ;;  %v611_v37 = vld [vmem:[%s3796_s2 + $0xc40] sm:$0xff] }
  0xc5   :  { %1398 = vmatprep.subr.mxu1 %v572_v58  ;;  %1328 = vmatpush2.msra.mxu0 %v507_v60  ;;  %v675_v57 = vld [vmem:[%s3796_s2 + $0xe40] sm:$0xff]  ;;  %v610_v58 = vld [vmem:[%s3796_s2 + $0xc38] sm:$0xff]  ;;  %v609_v60 = vld [vmem:[%s3796_s2 + $0xc30] sm:$0xff] }
  0xc6   :  { %1329 = vmatprep.mubr.f32.mxu0 %v925_v59  ;;  %1399 = vmatpush2.msra.mxu1 %v571_v61  ;;  %v674_v59 = vld [vmem:[%s3796_s2 + $0xe38] sm:$0xff]  ;;  %v673_v61 = vld [vmem:[%s3796_s2 + $0xe30] sm:$0xff] }
  0xc7   :  { %1330 = vmatmul.mubr.f32.vlgmr.msra.gmra.mxu0 %v917_v50  ;;  %1400 = vmatprep.mubr.f32.mxu1 %v926_v62  ;;  %v679_v50 = vld [vmem:[%s3796_s2 + $0xe60] sm:$0xff]  ;;  %v608_v62 = vld [vmem:[%s3796_s2 + $0xc28] sm:$0xff] }
  0xc8   :  { %1407 = vmatprep.subr.mxu0 %v634_v63  ;;  %1478 = vmatprep.subr.mxu1 %v698_v0  ;;  %v672_v63 = vld [vmem:[%s3796_s2 + $0xe28] sm:$0xff]  ;;  %v607_v0 = vld [vmem:[%s3796_s2 + $0xc20] sm:$0xff] }
  0xc9   :  { %1401 = vmatmul.mubr.f32.vlgmr.msra.gmra.mxu1 %v924_v55  ;;  %1408 = vmatpush1.msra.mxu0 %v633_v1  ;;  %v612_v55 = vld [vmem:[%s3796_s2 + $0xc48] sm:$0xff]  ;;  %v671_v1 = vld [vmem:[%s3796_s2 + $0xe20] sm:$0xff] }
  0xca   :  { %1479 = vmatpush1.msra.mxu1 %v697_v2  ;;  %1409 = vmatprep.subr.mxu0 %v632_v3  ;;  %v606_v2 = vld [vmem:[%s3796_s2 + $0xc18] sm:$0xff] }
  0xcb   :  { %1480 = vmatprep.subr.mxu1 %v696_v4  ;;  %1410 = vmatpush1.msra.mxu0 %v631_v5  ;;  %v670_v3 = vld [vmem:[%s3796_s2 + $0xe18] sm:$0xff]  ;;  %v605_v4 = vld [vmem:[%s3796_s2 + $0xc10] sm:$0xff] }
  0xcc   :  { %1481 = vmatpush1.msra.mxu1 %v695_v6  ;;  %1411 = vmatprep.subr.mxu0 %v630_v7  ;;  %v669_v5 = vld [vmem:[%s3796_s2 + $0xe10] sm:$0xff]  ;;  %v604_v6 = vld [vmem:[%s3796_s2 + $0xc08] sm:$0xff] }
  0xcd   :  { %1482 = vmatprep.subr.mxu1 %v694_v8  ;;  %1412 = vmatpush1.msra.mxu0 %v629_v9  ;;  %v668_v7 = vld [vmem:[%s3796_s2 + $0xe08] sm:$0xff]  ;;  %v603_v8 = vld [vmem:[%s3796_s2 + $0xc00] sm:$0xff] }
  0xce   :  { %1483 = vmatpush1.msra.mxu1 %v693_v10  ;;  %1413 = vmatprep.subr.mxu0 %v628_v11  ;;  %v667_v9 = vld [vmem:[%s3796_s2 + $0xe00] sm:$0xff]  ;;  %v90_v10 = vrot.slane %v2751_v16, %v57_v34  ;;  %v666_v11 = vld [vmem:[%s3796_s2 + $0xdf8] sm:$0xff]  ;;  %v102_v34 = vrot.slane %v2751_v16, %v69_v41 }
  0xcf   :  { %1484 = vmatprep.subr.mxu1 %v692_v12  ;;  %1414 = vmatpush1.msra.mxu0 %v627_v13  ;;  %v730_v12 = vld [vmem:[%s3796_s2 + $0xff8] sm:$0xff]  ;;  %v94_v13 = vrot.slane %v2751_v16, %v61_v39  ;;  %v664_v39 = vld [vmem:[%s3796_s2 + $0xde8] sm:$0xff]  ;;  %v727_v41 = vld [vmem:[%s3796_s2 + $0xfe0] sm:$0xff] }
  0xd0   :  { %1485 = vmatpush1.msra.mxu1 %v691_v14  ;;  %1415 = vmatprep.subr.mxu0 %v626_v15  ;;  %v98_v14 = vrot.slane %v2751_v16, %v65_v40  ;;  %v665_v15 = vld [vmem:[%s3796_s2 + $0xdf0] sm:$0xff]  ;;  %v663_v40 = vld [vmem:[%s3796_s2 + $0xde0] sm:$0xff]  ;;  %v662_v16 = vld [vmem:[%s3796_s2 + $0xdd8] sm:$0xff] }
  0xd1   :  { %1486 = vmatprep.subr.mxu1 %v690_v18  ;;  %1416 = vmatpush1.msra.mxu0 %v625_v19  ;;  %v729_v18 = vld [vmem:[%s3796_s2 + $0xff0] sm:$0xff]  ;;  %v726_v19 = vld [vmem:[%s3796_s2 + $0xfd8] sm:$0xff] }
  0xd2   :  { %1487 = vmatpush1.msra.mxu1 %v689_v20  ;;  %1417 = vmatprep.subr.mxu0 %v624_v21  ;;  %v170_v20 = vcombine.low %v90_v10, %v94_v13  ;;  %v171_v21 = vcombine.low %v98_v14, %v102_v34  ;;  %v708_v10 = vld [vmem:[%s3796_s2 + $0xf48] sm:$0xff]  ;;  %v642_v13 = vld [vmem:[%s3796_s2 + $0xd38] sm:$0xff] }
  0xd3   :  { %1488 = vmatprep.subr.mxu1 %v688_v22  ;;  %1418 = vmatpush1.msra.mxu0 %v623_v23  ;;  %v661_v22 = vld [vmem:[%s3796_s2 + $0xdd0] sm:$0xff]  ;;  %v706_v14 = vld [vmem:[%s3796_s2 + $0xf38] sm:$0xff] }
  0xd4   :  { %1489 = vmatpush1.msra.mxu1 %v687_v24  ;;  %1419 = vmatprep.subr.mxu0 %v622_v25  ;;  %v725_v23 = vld [vmem:[%s3796_s2 + $0xfd0] sm:$0xff]  ;;  %v660_v24 = vld [vmem:[%s3796_s2 + $0xdc8] sm:$0xff] }
  0xd5   :  { %1490 = vmatprep.subr.mxu1 %v686_v26  ;;  %1420 = vmatpush1.msra.mxu0 %v621_v30  ;;  %v724_v25 = vld [vmem:[%s3796_s2 + $0xfc8] sm:$0xff]  ;;  %v659_v26 = vld [vmem:[%s3796_s2 + $0xdc0] sm:$0xff] }
  0xd6   :  { %1491 = vmatpush1.msra.mxu1 %v685_v31  ;;  %1421 = vmatprep.subr.mxu0 %v620_v33  ;;  %v723_v30 = vld [vmem:[%s3796_s2 + $0xfc0] sm:$0xff]  ;;  %v658_v31 = vld [vmem:[%s3796_s2 + $0xdb8] sm:$0xff] }
  0xd7   :  { %1492 = vmatprep.subr.mxu1 %v684_v35  ;;  %1422 = vmatpush1.msra.mxu0 %v619_v36  ;;  %v722_v33 = vld [vmem:[%s3796_s2 + $0xfb8] sm:$0xff]  ;;  %v657_v35 = vld [vmem:[%s3796_s2 + $0xdb0] sm:$0xff]  ;;  %v178_v36 = vrot.slane %v170_v20, %v2036_v38 }
  0xd8   :  { %1493 = vmatpush1.msra.mxu1 %v683_v42  ;;  %1423 = vmatprep.subr.mxu0 %v618_v43  ;;  %v185_v42 = vrot.slane %v171_v21, %v2036_v38  ;;  %v721_v43 = vld [vmem:[%s3796_s2 + $0xfb0] sm:$0xff]  ;;  %v702_v20 = vld [vmem:[%s3796_s2 + $0xf18] sm:$0xff] }
  0xd9   :  { %1494 = vmatprep.subr.mxu1 %v682_v44  ;;  %1424 = vmatpush1.msra.mxu0 %v617_v45  ;;  %v20_v44 = vld [vmem:[%s3798_s0 + $0x18] sm:$0xff]  ;;  %v1710_v45 = vld [vmem:[%s3798_s0 + $0x40] sm:$0xff] }
  0xda   :  { %1495 = vmatpush1.msra.mxu1 %v681_v46  ;;  %1425 = vmatprep.subr.mxu0 %v616_v47  ;;  %v656_v46 = vld [vmem:[%s3796_s2 + $0xda8] sm:$0xff] }
  0xdb   :  { %1496 = vmatprep.subr.mxu1 %v680_v48  ;;  %1426 = vmatpush1.msra.mxu0 %v615_v49  ;;  %v720_v47 = vld [vmem:[%s3796_s2 + $0xfa8] sm:$0xff]  ;;  %v655_v48 = vld [vmem:[%s3796_s2 + $0xda0] sm:$0xff] }
  0xdc   :  { %1497 = vmatpush1.msra.mxu1 %v679_v50  ;;  %1427 = vmatprep.subr.mxu0 %v614_v51  ;;  %v719_v49 = vld [vmem:[%s3796_s2 + $0xfa0] sm:$0xff]  ;;  %v654_v50 = vld [vmem:[%s3796_s2 + $0xd98] sm:$0xff] }
  0xdd   :  { %1498 = vmatprep.subr.mxu1 %v678_v52  ;;  %1428 = vmatpush1.msra.mxu0 %v613_v53  ;;  %v718_v51 = vld [vmem:[%s3796_s2 + $0xf98] sm:$0xff]  ;;  %v31_v52 = vadd.f32 %v1710_v45, %v20_v44  ;;  %v186_v53 = vcombine.low %v178_v36, %v185_v42  ;;  %v761_v42 = vld [vmem:[%s3796_s2 + $0x10f0] sm:$0xff]  ;;  %v760_v44 = vld [vmem:[%s3796_s2 + $0x10e8] sm:$0xff] }
  0xde   :  { %1499 = vmatpush1.msra.mxu1 %v677_v54  ;;  %1429 = vmatprep.subr.mxu0 %v612_v55  ;;  %v653_v54 = vld [vmem:[%s3796_s2 + $0xd90] sm:$0xff]  ;;  %v826_v36 = vld [vmem:[%s3796_s2 + $0x12f8] sm:$0xff]  ;;  %v824_v45 = vld [vmem:[%s3796_s2 + $0x12e8] sm:$0xff] }
  0xdf   :  { %1500 = vmatprep.subr.mxu1 %v676_v56  ;;  %1430 = vmatpush1.msra.mxu0 %v611_v37  ;;  %v717_v55 = vld [vmem:[%s3796_s2 + $0xf90] sm:$0xff]  ;;  %v652_v56 = vld [vmem:[%s3796_s2 + $0xd88] sm:$0xff] }
  0xe0   :  { %1501 = vmatpush1.msra.mxu1 %v675_v57  ;;  %1431 = vmatprep.subr.mxu0 %v610_v58  ;;  %v716_v37 = vld [vmem:[%s3796_s2 + $0xf88] sm:$0xff]  ;;  %v651_v57 = vld [vmem:[%s3796_s2 + $0xd80] sm:$0xff] }
  0xe1   :  { %1502 = vmatprep.subr.mxu1 %v674_v59  ;;  %1432 = vmatpush1.msra.mxu0 %v609_v60  ;;  %v715_v58 = vld [vmem:[%s3796_s2 + $0xf80] sm:$0xff]  ;;  %v650_v59 = vld [vmem:[%s3796_s2 + $0xd78] sm:$0xff] }
  0xe2   :  { %1503 = vmatpush1.msra.mxu1 %v673_v61  ;;  %1433 = vmatprep.subr.mxu0 %v608_v62  ;;  %v714_v60 = vld [vmem:[%s3796_s2 + $0xf78] sm:$0xff]  ;;  %v212_v61 = vsub.f32 %v31_v52, %v186_v53  ;;  %v649_v62 = vld [vmem:[%s3796_s2 + $0xd70] sm:$0xff]  ;;  %v756_v52 = vld [vmem:[%s3796_s2 + $0x10c8] sm:$0xff] }
  0xe3   :  { %1504 = vmatprep.subr.mxu1 %v672_v63  ;;  %1434 = vmatpush1.msra.mxu0 %v607_v0  ;;  %v713_v63 = vld [vmem:[%s3796_s2 + $0xf70] sm:$0xff]  ;;  %v648_v0 = vld [vmem:[%s3796_s2 + $0xd68] sm:$0xff] }
  0xe4   :  { %1505 = vmatpush1.msra.mxu1 %v671_v1  ;;  %1435 = vmatprep.subr.mxu0 %v606_v2  ;;  %v712_v1 = vld [vmem:[%s3796_s2 + $0xf68] sm:$0xff]  ;;  %v647_v2 = vld [vmem:[%s3796_s2 + $0xd60] sm:$0xff] }
  0xe5   :  { %1506 = vmatprep.subr.mxu1 %v670_v3  ;;  %1436 = vmatpush1.msra.mxu0 %v605_v4  ;;  %v711_v3 = vld [vmem:[%s3796_s2 + $0xf60] sm:$0xff]  ;;  %v646_v4 = vld [vmem:[%s3796_s2 + $0xd58] sm:$0xff]  ;;  %v820_v53 = vld [vmem:[%s3796_s2 + $0x12c8] sm:$0xff] }
  0xe6   :  { %1507 = vmatpush1.msra.mxu1 %v669_v5  ;;  %1437 = vmatprep.subr.mxu0 %v604_v6  ;;  %v710_v5 = vld [vmem:[%s3796_s2 + $0xf58] sm:$0xff]  ;;  %v217_v6 = vmul.f32 0.015625, %v212_v61  ;;  %v751_v61 = vld [vmem:[%s3796_s2 + $0x10a0] sm:$0xff] }
  0xe7   :  { %1508 = vmatprep.subr.mxu1 %v668_v7  ;;  %1438 = vmatpush1.msra.mxu0 %v603_v8  ;;  %v645_v7 = vld [vmem:[%s3796_s2 + $0xd50] sm:$0xff] }
  0xe8   :  { %1509 = vmatpush1.msra.mxu1 %v667_v9  ;;  %1439 = vmatprep.subr.mxu0 %v666_v11  ;;  %v709_v8 = vld [vmem:[%s3796_s2 + $0xf50] sm:$0xff]  ;;  %v644_v9 = vld [vmem:[%s3796_s2 + $0xd48] sm:$0xff]  ;;  %v643_v11 = vld [vmem:[%s3796_s2 + $0xd40] sm:$0xff]  ;;  %v927_v34 = vcombine.high %v217_v6, %v217_v6 }
  0xe9   :  { %1510 = vmatprep.subr.mxu1 %v730_v12  ;;  %1440 = vmatpush2.msra.mxu0 %v665_v15  ;;  %v707_v12 = vld [vmem:[%s3796_s2 + $0xf40] sm:$0xff]  ;;  %v641_v15 = vld [vmem:[%s3796_s2 + $0xd30] sm:$0xff] }
  0xea   :  { %1511 = vmatpush2.msra.mxu1 %v729_v18  ;;  %1441 = vmatprep.subr.mxu0 %v664_v39  ;;  %v705_v18 = vld [vmem:[%s3796_s2 + $0xf30] sm:$0xff]  ;;  %v640_v39 = vld [vmem:[%s3796_s2 + $0xd28] sm:$0xff]  ;;  %v941_v21 = vrot.slane %v927_v34, %v2036_v38  ;;  %v742_v34 = vld [vmem:[%s3796_s2 + $0x1058] sm:$0xff] }
  0xeb   :  { %1512 = vmatprep.subr.mxu1 %v728_v17  ;;  %1442 = vmatpush2.msra.mxu0 %v663_v40  ;;  %v704_v17 = vld [vmem:[%s3796_s2 + $0xf28] sm:$0xff]  ;;  %v934_v40 = vrot.slane %v217_v6, %v2036_v38  ;;  %v811_v6 = vld [vmem:[%s3796_s2 + $0x1280] sm:$0xff] }
  0xec   :  { %1513 = vmatpush2.msra.mxu1 %v727_v41  ;;  %1443 = vmatprep.subr.mxu0 %v662_v16  ;;  %v639_v41 = vld [vmem:[%s3796_s2 + $0xd20] sm:$0xff] }
  0xed   :  { %1514 = vmatprep.subr.mxu1 %v726_v19  ;;  %1444 = vmatpush2.msra.mxu0 %v661_v22  ;;  %v703_v16 = vld [vmem:[%s3796_s2 + $0xf20] sm:$0xff]  ;;  %v638_v19 = vld [vmem:[%s3796_s2 + $0xd18] sm:$0xff]  ;;  %v637_v22 = vld [vmem:[%s3796_s2 + $0xd10] sm:$0xff] }
  0xee   :  { %1515 = vmatpush2.msra.mxu1 %v725_v23  ;;  %1445 = vmatprep.subr.mxu0 %v660_v24  ;;  %v701_v23 = vld [vmem:[%s3796_s2 + $0xf10] sm:$0xff]  ;;  %v636_v24 = vld [vmem:[%s3796_s2 + $0xd08] sm:$0xff] }
  0xef   :  { %1516 = vmatprep.subr.mxu1 %v724_v25  ;;  %1446 = vmatpush2.msra.mxu0 %v659_v26  ;;  %v700_v25 = vld [vmem:[%s3796_s2 + $0xf08] sm:$0xff]  ;;  %v942_v26 = vcombine.high %v934_v40, %v934_v40 }
  0xf0   :  { %1517 = vmatpush2.msra.mxu1 %v723_v30  ;;  %1447 = vmatprep.subr.mxu0 %v658_v31  ;;  %v635_v30 = vld [vmem:[%s3796_s2 + $0xd00] sm:$0xff] }
  0xf1   :  { %1518 = vmatprep.subr.mxu1 %v722_v33  ;;  %1448 = vmatpush2.msra.mxu0 %v657_v35  ;;  %v699_v31 = vld [vmem:[%s3796_s2 + $0xf00] sm:$0xff]  ;;  %v943_v33 = vcombine.high %v941_v21, %v941_v21  ;;  %v762_v35 = vld [vmem:[%s3796_s2 + $0x10f8] sm:$0xff] }
  0xf2   :  { %1519 = vmatpush2.msra.mxu1 %v721_v43  ;;  %1449 = vmatprep.subr.mxu0 %v656_v46  ;;  %v825_v43 = vld [vmem:[%s3796_s2 + $0x12f0] sm:$0xff]  ;;  %v759_v46 = vld [vmem:[%s3796_s2 + $0x10e0] sm:$0xff] }
  0xf3   :  { %1520 = vmatprep.subr.mxu1 %v720_v47  ;;  %1450 = vmatpush2.msra.mxu0 %v655_v48  ;;  %v823_v47 = vld [vmem:[%s3796_s2 + $0x12e0] sm:$0xff]  ;;  %v758_v48 = vld [vmem:[%s3796_s2 + $0x10d8] sm:$0xff] }
  0xf4   :  { %1521 = vmatpush2.msra.mxu1 %v719_v49  ;;  %1451 = vmatprep.subr.mxu0 %v654_v50  ;;  %v822_v49 = vld [vmem:[%s3796_s2 + $0x12d8] sm:$0xff]  ;;  %v757_v50 = vld [vmem:[%s3796_s2 + $0x10d0] sm:$0xff] }
  0xf5   :  { %1522 = vmatprep.subr.mxu1 %v718_v51  ;;  %1452 = vmatpush2.msra.mxu0 %v653_v54  ;;  %v821_v51 = vld [vmem:[%s3796_s2 + $0x12d0] sm:$0xff]  ;;  %v755_v54 = vld [vmem:[%s3796_s2 + $0x10c0] sm:$0xff] }
  0xf6   :  { %1523 = vmatpush2.msra.mxu1 %v717_v55  ;;  %1453 = vmatprep.subr.mxu0 %v652_v56  ;;  %v819_v55 = vld [vmem:[%s3796_s2 + $0x12c0] sm:$0xff]  ;;  %v754_v56 = vld [vmem:[%s3796_s2 + $0x10b8] sm:$0xff] }
  0xf7   :  { %1524 = vmatprep.subr.mxu1 %v716_v37  ;;  %1454 = vmatpush2.msra.mxu0 %v651_v57  ;;  %v818_v37 = vld [vmem:[%s3796_s2 + $0x12b8] sm:$0xff]  ;;  %v753_v57 = vld [vmem:[%s3796_s2 + $0x10b0] sm:$0xff] }
  0xf8   :  { %1525 = vmatpush2.msra.mxu1 %v715_v58  ;;  %1455 = vmatprep.subr.mxu0 %v650_v59  ;;  %v817_v58 = vld [vmem:[%s3796_s2 + $0x12b0] sm:$0xff]  ;;  %v752_v59 = vld [vmem:[%s3796_s2 + $0x10a8] sm:$0xff] }
  0xf9   :  { %1526 = vmatprep.subr.mxu1 %v714_v60  ;;  %1456 = vmatpush2.msra.mxu0 %v649_v62  ;;  %v816_v60 = vld [vmem:[%s3796_s2 + $0x12a8] sm:$0xff]  ;;  %v815_v62 = vld [vmem:[%s3796_s2 + $0x12a0] sm:$0xff] }
  0xfa   :  { %1527 = vmatpush2.msra.mxu1 %v713_v63  ;;  %1457 = vmatprep.subr.mxu0 %v648_v0  ;;  %v750_v63 = vld [vmem:[%s3796_s2 + $0x1098] sm:$0xff] }
  0xfb   :  { %1528 = vmatprep.subr.mxu1 %v712_v1  ;;  %1458 = vmatpush2.msra.mxu0 %v647_v2  ;;  %v814_v0 = vld [vmem:[%s3796_s2 + $0x1298] sm:$0xff]  ;;  %v749_v1 = vld [vmem:[%s3796_s2 + $0x1090] sm:$0xff] }
  0xfc   :  { %1529 = vmatpush2.msra.mxu1 %v711_v3  ;;  %1459 = vmatprep.subr.mxu0 %v646_v4  ;;  %v813_v2 = vld [vmem:[%s3796_s2 + $0x1290] sm:$0xff]  ;;  %v748_v3 = vld [vmem:[%s3796_s2 + $0x1088] sm:$0xff] }
  0xfd   :  { %1530 = vmatprep.subr.mxu1 %v710_v5  ;;  %1460 = vmatpush2.msra.mxu0 %v645_v7  ;;  %v812_v4 = vld [vmem:[%s3796_s2 + $0x1288] sm:$0xff]  ;;  %v747_v5 = vld [vmem:[%s3796_s2 + $0x1080] sm:$0xff]  ;;  %v746_v7 = vld [vmem:[%s3796_s2 + $0x1078] sm:$0xff] }
  0xfe   :  { %1531 = vmatpush2.msra.mxu1 %v709_v8  ;;  %1461 = vmatprep.subr.mxu0 %v644_v9  ;;  %v810_v8 = vld [vmem:[%s3796_s2 + $0x1278] sm:$0xff]  ;;  %v745_v9 = vld [vmem:[%s3796_s2 + $0x1070] sm:$0xff] }
  0xff   :  { %1532 = vmatprep.subr.mxu1 %v708_v10  ;;  %1462 = vmatpush2.msra.mxu0 %v643_v11  ;;  %v809_v10 = vld [vmem:[%s3796_s2 + $0x1270] sm:$0xff]  ;;  %v744_v11 = vld [vmem:[%s3796_s2 + $0x1068] sm:$0xff] }
 0x100   :  { %1533 = vmatpush2.msra.mxu1 %v707_v12  ;;  %1463 = vmatprep.subr.mxu0 %v642_v13  ;;  %v808_v12 = vld [vmem:[%s3796_s2 + $0x1268] sm:$0xff]  ;;  %v743_v13 = vld [vmem:[%s3796_s2 + $0x1060] sm:$0xff] }
 0x101   :  { %1534 = vmatprep.subr.mxu1 %v706_v14  ;;  %1464 = vmatpush2.msra.mxu0 %v641_v15  ;;  %v807_v14 = vld [vmem:[%s3796_s2 + $0x1260] sm:$0xff]  ;;  %v806_v15 = vld [vmem:[%s3796_s2 + $0x1258] sm:$0xff] }
 0x102   :  { %1535 = vmatpush2.msra.mxu1 %v705_v18  ;;  %1465 = vmatprep.subr.mxu0 %v640_v39  ;;  %v741_v18 = vld [vmem:[%s3796_s2 + $0x1050] sm:$0xff] }
 0x103   :  { %1536 = vmatprep.subr.mxu1 %v704_v17  ;;  %1466 = vmatpush2.msra.mxu0 %v639_v41  ;;  %v805_v39 = vld [vmem:[%s3796_s2 + $0x1250] sm:$0xff]  ;;  %v740_v17 = vld [vmem:[%s3796_s2 + $0x1048] sm:$0xff]  ;;  %v739_v41 = vld [vmem:[%s3796_s2 + $0x1040] sm:$0xff] }
 0x104   :  { %1537 = vmatpush2.msra.mxu1 %v703_v16  ;;  %1467 = vmatprep.subr.mxu0 %v638_v19  ;;  %v803_v16 = vld [vmem:[%s3796_s2 + $0x1240] sm:$0xff]  ;;  %v738_v19 = vld [vmem:[%s3796_s2 + $0x1038] sm:$0xff] }
 0x105   :  { %1538 = vmatprep.subr.mxu1 %v702_v20  ;;  %1468 = vmatpush2.msra.mxu0 %v637_v22  ;;  %v802_v20 = vld [vmem:[%s3796_s2 + $0x1238] sm:$0xff]  ;;  %v801_v22 = vld [vmem:[%s3796_s2 + $0x1230] sm:$0xff] }
 0x106   :  { %1539 = vmatpush2.msra.mxu1 %v701_v23  ;;  %1469 = vmatprep.subr.mxu0 %v636_v24  ;;  %v736_v23 = vld [vmem:[%s3796_s2 + $0x1028] sm:$0xff] }
 0x107   :  { %1540 = vmatprep.subr.mxu1 %v700_v25  ;;  %1470 = vmatpush2.msra.mxu0 %v635_v30  ;;  %v800_v24 = vld [vmem:[%s3796_s2 + $0x1228] sm:$0xff]  ;;  %v735_v25 = vld [vmem:[%s3796_s2 + $0x1020] sm:$0xff]  ;;  %v35_v30 = vld [vmem:[%s3797_s1 + $0x10] sm:$0xf] }
 0x108   :  { %1471 = vmatprep.mubr.f32.mxu0 %v942_v26  ;;  %1541 = vmatpush2.msra.mxu1 %v699_v31  ;;  %v799_v26 = vld [vmem:[%s3796_s2 + $0x1220] sm:$0xff]  ;;  %v734_v31 = vld [vmem:[%s3796_s2 + $0x1018] sm:$0xff] }
 0x109   :  { %1472 = vmatmul.mubr.f32.vlgmr.msra.gmra.mxu0 %v934_v40  ;;  %1542 = vmatprep.mubr.f32.mxu1 %v943_v33  ;;  %v804_v40 = vld [vmem:[%s3796_s2 + $0x1248] sm:$0xff]  ;;  %v798_v33 = vld [vmem:[%s3796_s2 + $0x1218] sm:$0xff] }
 0x10a   :  { %1549 = vmatprep.subr.mxu0 %v762_v35  ;;  %1620 = vmatprep.subr.mxu1 %v826_v36  ;;  %v733_v35 = vld [vmem:[%s3796_s2 + $0x1010] sm:$0xff] }
 0x10b   :  { %1543 = vmatmul.mubr.f32.vlgmr.msra.gmra.mxu1 %v941_v21  ;;  %1550 = vmatpush1.msra.mxu0 %v761_v42  ;;  %v737_v21 = vld [vmem:[%s3796_s2 + $0x1030] sm:$0xff]  ;;  %v732_v42 = vld [vmem:[%s3796_s2 + $0x1008] sm:$0xff] }
 0x10c   :  { %1621 = vmatpush1.msra.mxu1 %v825_v43  ;;  %1551 = vmatprep.subr.mxu0 %v760_v44  ;;  %v797_v36 = vld [vmem:[%s3796_s2 + $0x1210] sm:$0xff]  ;;  %v796_v43 = vld [vmem:[%s3796_s2 + $0x1208] sm:$0xff]  ;;  %v106_v44 = vrot.slane %v35_v30, %v2001_v27 }
 0x10d   :  { %1622 = vmatprep.subr.mxu1 %v824_v45  ;;  %1552 = vmatpush1.msra.mxu0 %v759_v46  ;;  %v731_v45 = vld [vmem:[%s3796_s2 + $0x1000] sm:$0xff] }
 0x10e   :  { %1623 = vmatpush1.msra.mxu1 %v823_v47  ;;  %1553 = vmatprep.subr.mxu0 %v758_v48  ;;  %v795_v46 = vld [vmem:[%s3796_s2 + $0x1200] sm:$0xff]  ;;  %v110_v47 = vrot.slane %v35_v30, %v2004_v28  ;;  %v114_v48 = vrot.slane %v35_v30, %v2007_v29  ;;  %v857_v29 = vld [vmem:[%s3796_s2 + $0x13f0] sm:$0xff] }
 0x10f   :  { %1624 = vmatprep.subr.mxu1 %v822_v49  ;;  %1554 = vmatpush1.msra.mxu0 %v757_v50  ;;  %v118_v49 = vrot.slane %v35_v30, %v2016_v32  ;;  %v794_v50 = vld [vmem:[%s3796_s2 + $0x11f8] sm:$0xff]  ;;  %v792_v32 = vld [vmem:[%s3796_s2 + $0x11e8] sm:$0xff]  ;;  %v839_v30 = vld [vmem:[%s3796_s2 + $0x1360] sm:$0xff] }
 0x110   :  { %1625 = vmatpush1.msra.mxu1 %v821_v51  ;;  %1555 = vmatprep.subr.mxu0 %v756_v52  ;;  %v858_v51 = vld [vmem:[%s3796_s2 + $0x13f8] sm:$0xff]  ;;  %v793_v52 = vld [vmem:[%s3796_s2 + $0x11f0] sm:$0xff] }
 0x111   :  { %1626 = vmatprep.subr.mxu1 %v820_v53  ;;  %1556 = vmatpush1.msra.mxu0 %v755_v54  ;;  %v856_v53 = vld [vmem:[%s3796_s2 + $0x13e8] sm:$0xff]  ;;  %v791_v54 = vld [vmem:[%s3796_s2 + $0x11e0] sm:$0xff] }
 0x112   :  { %1627 = vmatpush1.msra.mxu1 %v819_v55  ;;  %1557 = vmatprep.subr.mxu0 %v754_v56  ;;  %v855_v55 = vld [vmem:[%s3796_s2 + $0x13e0] sm:$0xff]  ;;  %v187_v56 = vcombine.low %v106_v44, %v110_v47  ;;  %v836_v44 = vld [vmem:[%s3796_s2 + $0x1348] sm:$0xff] }
 0x113   :  { %1628 = vmatprep.subr.mxu1 %v818_v37  ;;  %1558 = vmatpush1.msra.mxu0 %v753_v57  ;;  %v188_v37 = vcombine.low %v114_v48, %v118_v49  ;;  %v790_v57 = vld [vmem:[%s3796_s2 + $0x11d8] sm:$0xff] }
 0x114   :  { %1629 = vmatpush1.msra.mxu1 %v817_v58  ;;  %1559 = vmatprep.subr.mxu0 %v752_v59  ;;  %v854_v58 = vld [vmem:[%s3796_s2 + $0x13d8] sm:$0xff]  ;;  %v789_v59 = vld [vmem:[%s3796_s2 + $0x11d0] sm:$0xff] }
 0x115   :  { %1630 = vmatprep.subr.mxu1 %v816_v60  ;;  %1560 = vmatpush1.msra.mxu0 %v751_v61  ;;  %v853_v60 = vld [vmem:[%s3796_s2 + $0x13d0] sm:$0xff]  ;;  %v788_v61 = vld [vmem:[%s3796_s2 + $0x11c8] sm:$0xff]  ;;  %v770_v48 = vld [vmem:[%s3796_s2 + $0x1138] sm:$0xff] }
 0x116   :  { %1631 = vmatpush1.msra.mxu1 %v815_v62  ;;  %1561 = vmatprep.subr.mxu0 %v750_v63  ;;  %v852_v62 = vld [vmem:[%s3796_s2 + $0x13c8] sm:$0xff]  ;;  %v787_v63 = vld [vmem:[%s3796_s2 + $0x11c0] sm:$0xff]  ;;  %v834_v49 = vld [vmem:[%s3796_s2 + $0x1338] sm:$0xff] }
 0x117   :  { %1632 = vmatprep.subr.mxu1 %v814_v0  ;;  %1562 = vmatpush1.msra.mxu0 %v749_v1  ;;  %v851_v0 = vld [vmem:[%s3796_s2 + $0x13c0] sm:$0xff]  ;;  %v786_v1 = vld [vmem:[%s3796_s2 + $0x11b8] sm:$0xff] }
 0x118   :  { %1633 = vmatpush1.msra.mxu1 %v813_v2  ;;  %1563 = vmatprep.subr.mxu0 %v748_v3  ;;  %v195_v2 = vrot.slane %v187_v56, %v2036_v38  ;;  %v202_v3 = vrot.slane %v188_v37, %v2036_v38  ;;  %v766_v56 = vld [vmem:[%s3796_s2 + $0x1118] sm:$0xff] }
 0x119   :  { %1634 = vmatprep.subr.mxu1 %v812_v4  ;;  %1564 = vmatpush1.msra.mxu0 %v747_v5  ;;  %v850_v4 = vld [vmem:[%s3796_s2 + $0x13b8] sm:$0xff]  ;;  %v21_v5 = vld [vmem:[%s3798_s0 + $0x20] sm:$0xff] }
 0x11a   :  { %1635 = vmatpush1.msra.mxu1 %v811_v6  ;;  %1565 = vmatprep.subr.mxu0 %v746_v7  ;;  %v1711_v6 = vld [vmem:[%s3798_s0 + $0x48] sm:$0xff]  ;;  %v785_v7 = vld [vmem:[%s3796_s2 + $0x11b0] sm:$0xff]  ;;  %v830_v37 = vld [vmem:[%s3796_s2 + $0x1318] sm:$0xff] }
 0x11b   :  { %1636 = vmatprep.subr.mxu1 %v810_v8  ;;  %1566 = vmatpush1.msra.mxu0 %v745_v9  ;;  %v849_v8 = vld [vmem:[%s3796_s2 + $0x13b0] sm:$0xff]  ;;  %v784_v9 = vld [vmem:[%s3796_s2 + $0x11a8] sm:$0xff] }
 0x11c   :  { %1637 = vmatpush1.msra.mxu1 %v809_v10  ;;  %1567 = vmatprep.subr.mxu0 %v744_v11  ;;  %v848_v10 = vld [vmem:[%s3796_s2 + $0x13a8] sm:$0xff]  ;;  %v783_v11 = vld [vmem:[%s3796_s2 + $0x11a0] sm:$0xff] }
 0x11d   :  { %1638 = vmatprep.subr.mxu1 %v808_v12  ;;  %1568 = vmatpush1.msra.mxu0 %v743_v13  ;;  %v847_v12 = vld [vmem:[%s3796_s2 + $0x13a0] sm:$0xff]  ;;  %v32_v13 = vadd.f32 %v1711_v6, %v21_v5 }
 0x11e   :  { %1639 = vmatpush1.msra.mxu1 %v807_v14  ;;  %1569 = vmatprep.subr.mxu0 %v742_v34  ;;  %v203_v14 = vcombine.low %v195_v2, %v202_v3  ;;  %v782_v34 = vld [vmem:[%s3796_s2 + $0x1198] sm:$0xff] }
 0x11f   :  { %1640 = vmatprep.subr.mxu1 %v806_v15  ;;  %1570 = vmatpush1.msra.mxu0 %v741_v18  ;;  %v846_v15 = vld [vmem:[%s3796_s2 + $0x1398] sm:$0xff]  ;;  %v781_v18 = vld [vmem:[%s3796_s2 + $0x1190] sm:$0xff] }
 0x120   :  { %1641 = vmatpush1.msra.mxu1 %v805_v39  ;;  %1571 = vmatprep.subr.mxu0 %v740_v17  ;;  %v845_v39 = vld [vmem:[%s3796_s2 + $0x1390] sm:$0xff]  ;;  %v780_v17 = vld [vmem:[%s3796_s2 + $0x1188] sm:$0xff] }
 0x121   :  { %1642 = vmatprep.subr.mxu1 %v804_v40  ;;  %1572 = vmatpush1.msra.mxu0 %v739_v41  ;;  %v844_v40 = vld [vmem:[%s3796_s2 + $0x1388] sm:$0xff]  ;;  %v779_v41 = vld [vmem:[%s3796_s2 + $0x1180] sm:$0xff] }
 0x122   :  { %1643 = vmatpush1.msra.mxu1 %v803_v16  ;;  %1573 = vmatprep.subr.mxu0 %v738_v19  ;;  %v843_v16 = vld [vmem:[%s3796_s2 + $0x1380] sm:$0xff]  ;;  %v213_v19 = vsub.f32 %v32_v13, %v203_v14 }
 0x123   :  { %1644 = vmatprep.subr.mxu1 %v802_v20  ;;  %1574 = vmatpush1.msra.mxu0 %v737_v21  ;;  %v778_v20 = vld [vmem:[%s3796_s2 + $0x1178] sm:$0xff] }
 0x124   :  { %1645 = vmatpush1.msra.mxu1 %v801_v22  ;;  %1575 = vmatprep.subr.mxu0 %v736_v23  ;;  %v842_v21 = vld [vmem:[%s3796_s2 + $0x1378] sm:$0xff]  ;;  %v777_v22 = vld [vmem:[%s3796_s2 + $0x1170] sm:$0xff] }
 0x125   :  { %1646 = vmatprep.subr.mxu1 %v800_v24  ;;  %1576 = vmatpush1.msra.mxu0 %v735_v25  ;;  %v841_v23 = vld [vmem:[%s3796_s2 + $0x1370] sm:$0xff]  ;;  %v776_v24 = vld [vmem:[%s3796_s2 + $0x1168] sm:$0xff] }
 0x126   :  { %1647 = vmatpush1.msra.mxu1 %v799_v26  ;;  %1577 = vmatprep.subr.mxu0 %v734_v31  ;;  %v840_v25 = vld [vmem:[%s3796_s2 + $0x1368] sm:$0xff]  ;;  %v775_v26 = vld [vmem:[%s3796_s2 + $0x1160] sm:$0xff]  ;;  %v218_v31 = vmul.f32 0.015625, %v213_v19 }
 0x127   :  { %1648 = vmatprep.subr.mxu1 %v798_v33  ;;  %1578 = vmatpush1.msra.mxu0 %v733_v35  ;;  %v774_v33 = vld [vmem:[%s3796_s2 + $0x1158] sm:$0xff] }
 0x128   :  { %1649 = vmatpush1.msra.mxu1 %v797_v36  ;;  %1579 = vmatprep.subr.mxu0 %v732_v42  ;;  %v838_v35 = vld [vmem:[%s3796_s2 + $0x1358] sm:$0xff]  ;;  %v773_v36 = vld [vmem:[%s3796_s2 + $0x1150] sm:$0xff]  ;;  %v944_v47 = vcombine.high %v218_v31, %v218_v31 }
 0x129   :  { %1650 = vmatprep.subr.mxu1 %v796_v43  ;;  %1580 = vmatpush1.msra.mxu0 %v731_v45  ;;  %v837_v42 = vld [vmem:[%s3796_s2 + $0x1350] sm:$0xff]  ;;  %v772_v43 = vld [vmem:[%s3796_s2 + $0x1148] sm:$0xff]  ;;  %v771_v45 = vld [vmem:[%s3796_s2 + $0x1140] sm:$0xff] }
 0x12a   :  { %1651 = vmatpush1.msra.mxu1 %v795_v46  ;;  %1581 = vmatprep.subr.mxu0 %v794_v50  ;;  %v835_v46 = vld [vmem:[%s3796_s2 + $0x1340] sm:$0xff]  ;;  %v769_v50 = vld [vmem:[%s3796_s2 + $0x1130] sm:$0xff] }
 0x12b   :  { %1652 = vmatprep.subr.mxu1 %v858_v51  ;;  %1582 = vmatpush2.msra.mxu0 %v793_v52  ;;  %v833_v51 = vld [vmem:[%s3796_s2 + $0x1330] sm:$0xff]  ;;  %v768_v52 = vld [vmem:[%s3796_s2 + $0x1128] sm:$0xff] }
 0x12c   :  { %1653 = vmatpush2.msra.mxu1 %v857_v29  ;;  %1583 = vmatprep.subr.mxu0 %v792_v32  ;;  %v832_v29 = vld [vmem:[%s3796_s2 + $0x1328] sm:$0xff]  ;;  %v951_v32 = vrot.slane %v218_v31, %v2036_v38 }
 0x12d   :  { %1654 = vmatprep.subr.mxu1 %v856_v53  ;;  %1584 = vmatpush2.msra.mxu0 %v791_v54  ;;  %v767_v53 = vld [vmem:[%s3796_s2 + $0x1120] sm:$0xff] }
 0x12e   :  { %1655 = vmatpush2.msra.mxu1 %v855_v55  ;;  %1585 = vmatprep.subr.mxu0 %v790_v57  ;;  %v831_v54 = vld [vmem:[%s3796_s2 + $0x1320] sm:$0xff]  ;;  %v958_v55 = vrot.slane %v944_v47, %v2036_v38  ;;  %v765_v57 = vld [vmem:[%s3796_s2 + $0x1110] sm:$0xff] }
 0x12f   :  { %1656 = vmatprep.subr.mxu1 %v854_v58  ;;  %1586 = vmatpush2.msra.mxu0 %v789_v59  ;;  %v829_v38 = vld [vmem:[%s3796_s2 + $0x1310] sm:$0xff]  ;;  %v764_v58 = vld [vmem:[%s3796_s2 + $0x1108] sm:$0xff] }
 0x130   :  { %1657 = vmatpush2.msra.mxu1 %v853_v60  ;;  %1587 = vmatprep.subr.mxu0 %v788_v61  ;;  %v828_v59 = vld [vmem:[%s3796_s2 + $0x1308] sm:$0xff]  ;;  %v959_v60 = vcombine.high %v951_v32, %v951_v32  ;;  %v763_v61 = vld [vmem:[%s3796_s2 + $0x1100] sm:$0xff] }
 0x131   :  { %1658 = vmatprep.subr.mxu1 %v852_v62  ;;  %1588 = vmatpush2.msra.mxu0 %v787_v63  ;;  %v960_v62 = vcombine.high %v958_v55, %v958_v55  ;;  %v827_v63 = vld [vmem:[%s3796_s2 + $0x1300] sm:$0xff] }
 0x132   :  { %1659 = vmatpush2.msra.mxu1 %v851_v0  ;;  %1589 = vmatprep.subr.mxu0 %v786_v1  ;;  %v859_v0 = vld [vmem:[%s3799_s3] sm:$0x3]  ;;  %v1047_v1 = vpop.f32.mrf.mxu0 }
 0x133   :  { %1660 = vmatprep.subr.mxu1 %v850_v4  ;;  %1590 = vmatpush2.msra.mxu0 %v785_v7  ;;  %v864_v2 = vrot.slane %v859_v0, %v2001_v27  ;;  %v868_v3 = vrot.slane %v859_v0, %v2004_v28  ;;  %v1118_v4 = vpop.f32.mrf.mxu1 }
 0x134   :  { %1661 = vmatpush2.msra.mxu1 %v849_v8  ;;  %1591 = vmatprep.subr.mxu0 %v784_v9  ;;  %v1049_v5 = vpop.f32.mrf.mxu0 }
 0x135   :  { %1662 = vmatprep.subr.mxu1 %v848_v10  ;;  %1592 = vmatpush2.msra.mxu0 %v783_v11  ;;  %v1048_v6 = vadd.f32 %v1047_v1, %v864_v2  ;;  %v1050_v8 = vadd.f32 %v1049_v5, %v868_v3  ;;  %v1120_v9 = vpop.f32.mrf.mxu1 }
 0x136   :  { %1663 = vmatpush2.msra.mxu1 %v847_v12  ;;  %1593 = vmatprep.subr.mxu0 %v782_v34 }
 0x137   :  { %1664 = vmatprep.subr.mxu1 %v846_v15  ;;  %1594 = vmatpush2.msra.mxu0 %v781_v18  ;;  %v1119_v10 = vadd.f32 %v1118_v4, %v1048_v6  ;;  %v1121_v13 = vadd.f32 %v1120_v9, %v1050_v8 }
 0x138   :  { %1665 = vmatpush2.msra.mxu1 %v845_v39  ;;  %1595 = vmatprep.subr.mxu0 %v780_v17 }
 0x139   :  { %1666 = vmatprep.subr.mxu1 %v844_v40  ;;  %1596 = vmatpush2.msra.mxu0 %v779_v41 }
 0x13a   :  { %1667 = vmatpush2.msra.mxu1 %v843_v16  ;;  %1597 = vmatprep.subr.mxu0 %v778_v20 }
 0x13b   :  { %1668 = vmatprep.subr.mxu1 %v842_v21  ;;  %1598 = vmatpush2.msra.mxu0 %v777_v22 }
 0x13c   :  { %1669 = vmatpush2.msra.mxu1 %v841_v23  ;;  %1599 = vmatprep.subr.mxu0 %v776_v24 }
 0x13d   :  { %1670 = vmatprep.subr.mxu1 %v840_v25  ;;  %1600 = vmatpush2.msra.mxu0 %v775_v26 }
 0x13e   :  { %1671 = vmatpush2.msra.mxu1 %v839_v30  ;;  %1601 = vmatprep.subr.mxu0 %v774_v33 }
 0x13f   :  { %1672 = vmatprep.subr.mxu1 %v838_v35  ;;  %1602 = vmatpush2.msra.mxu0 %v773_v36 }
 0x140   :  { %1673 = vmatpush2.msra.mxu1 %v837_v42  ;;  %1603 = vmatprep.subr.mxu0 %v772_v43 }
 0x141   :  { %1674 = vmatprep.subr.mxu1 %v836_v44  ;;  %1604 = vmatpush2.msra.mxu0 %v771_v45 }
 0x142   :  { %1675 = vmatpush2.msra.mxu1 %v835_v46  ;;  %1605 = vmatprep.subr.mxu0 %v770_v48 }
 0x143   :  { %1676 = vmatprep.subr.mxu1 %v834_v49  ;;  %1606 = vmatpush2.msra.mxu0 %v769_v50 }
 0x144   :  { %1677 = vmatpush2.msra.mxu1 %v833_v51  ;;  %1607 = vmatprep.subr.mxu0 %v768_v52 }
 0x145   :  { %1678 = vmatprep.subr.mxu1 %v832_v29  ;;  %1608 = vmatpush2.msra.mxu0 %v767_v53  ;;  %v1189_v7 = vpop.f32.mrf.mxu0 }
 0x146   :  { %1679 = vmatpush2.msra.mxu1 %v831_v54  ;;  %1609 = vmatprep.subr.mxu0 %v766_v56  ;;  %v1190_v14 = vadd.f32 %v1189_v7, %v1119_v10 }
 0x147   :  { %1680 = vmatprep.subr.mxu1 %v830_v37  ;;  %1610 = vmatpush2.msra.mxu0 %v765_v57  ;;  %v1260_v11 = vpop.f32.mrf.mxu1  ;;  %v1191_v12 = vpop.f32.mrf.mxu0 }
 0x148   :  { %1681 = vmatpush2.msra.mxu1 %v829_v38  ;;  %1611 = vmatprep.subr.mxu0 %v764_v58  ;;  %v1192_v15 = vadd.f32 %v1191_v12, %v1121_v13  ;;  %v1261_v39 = vadd.f32 %v1260_v11, %v1190_v14 }
 0x149   :  { %1682 = vmatprep.subr.mxu1 %v828_v59  ;;  %1612 = vmatpush2.msra.mxu0 %v763_v61  ;;  %v1262_v18 = vpop.f32.mrf.mxu1 }
 0x14a   :  { %1613 = vmatprep.mubr.f32.mxu0 %v959_v60  ;;  %1683 = vmatpush2.msra.mxu1 %v827_v63  ;;  %v1263_v27 = vadd.f32 %v1262_v18, %v1192_v15 }
 0x14b   :  { %1684 = vmatprep.mubr.f32.mxu1 %v960_v62  ;;  %1614 = vmatmul.mubr.f32.vlgmr.msra.gmra.mxu0 %v951_v32 }
 0x14c   :  { %1685 = vmatmul.mubr.f32.vlgmr.msra.gmra.mxu1 %v958_v55 }
 0x187   :  { %v1331_v34 = vpop.f32.mrf.mxu0 }
 0x188   :  { %v1332_v41 = vadd.f32 %v1331_v34, %v1261_v39 }
 0x189   :  { %v1402_v17 = vpop.f32.mrf.mxu1  ;;  %v1333_v40 = vpop.f32.mrf.mxu0 }
 0x18a   :  { %v1334_v16 = vadd.f32 %v1333_v40, %v1263_v27  ;;  %v1403_v20 = vadd.f32 %v1402_v17, %v1332_v41 }
 0x18b   :  { %v1404_v19 = vpop.f32.mrf.mxu1 }
 0x18c   :  { %v1405_v23 = vadd.f32 %v1404_v19, %v1334_v16 }
 0x1c9   :  { %v1473_v28 = vpop.f32.mrf.mxu0 }
 0x1ca   :  { %v1474_v24 = vadd.f32 %v1473_v28, %v1403_v20 }
 0x1cb   :  { %v1544_v21 = vpop.f32.mrf.mxu1  ;;  %v1475_v22 = vpop.f32.mrf.mxu0 }
 0x1cc   :  { %v1476_v25 = vadd.f32 %v1475_v22, %v1405_v23  ;;  %v1545_v30 = vadd.f32 %v1544_v21, %v1474_v24 }
 0x1cd   :  { %v1546_v26 = vpop.f32.mrf.mxu1 }
 0x1ce   :  { %v1547_v35 = vadd.f32 %v1546_v26, %v1476_v25 }
 0x20b   :  { %v1615_v31 = vpop.f32.mrf.mxu0 }
 0x20c   :  { %v1686_v33 = vpop.f32.mrf.mxu1  ;;  %v1616_v36 = vadd.f32 %v1615_v31, %v1545_v30 }
 0x20d   :  { %v1617_v42 = vpop.f32.mrf.mxu0 }
 0x20e   :  { %v1618_v43 = vadd.f32 %v1617_v42, %v1547_v35  ;;  %v1688_v44 = vpop.f32.mrf.mxu1  ;;  %v1687_v45 = vadd.f32 %v1686_v33, %v1616_v36 }
 0x210   :  { %v1689_v46 = vadd.f32 %v1688_v44, %v1618_v43 }
 0x212   :  { %v1693_v47 = vcombine.low %v1687_v45, %v1689_v46 }
 0x214   :  { %1712 = vst.sshfl [vmem:[%s3800_s4] sm:$0x33 pattern:$0x76325410] %v1693_v47 }

</bundles_post_ra>
